<compile_context>
chip_gen: v5e
topology: v5e:2x2
jax: 0.10.0
libtpu: 0.0.40
codegen_flags: <defaults>
</compile_context>

<pallas_src>
import math

import jax
import jax.numpy as jnp
from jax import lax
from jax.experimental import pallas as pl
from jax.experimental.pallas import tpu as pltpu


def lstm_fc_kernel(xg_ref, whh_ref, wfc_ref, bfc_ref, out_ref, h_sc, c_sc):
    """xg_ref:  [Tt, Bb, 4H] bf16 precomputed x@W_ih + b per timestep (streamed;
                g columns pre-scaled by 2 for the fused-sigmoid trick)
       whh_ref: [H, 4H]      bf16 recurrent weight (g cols pre-scaled by 2)
       wfc_ref: [H, O]       bf16 FC weight (resident)
       bfc_ref: [1, O]       f32  FC bias
       out_ref: [Bb, O]      f32  logits (written on the last time chunk)
       h_sc, c_sc: [Bb, H]   f32  VMEM carry across time chunks."""
    t_blk = pl.program_id(1)
    n_t = pl.num_programs(1)
    Tt = xg_ref.shape[0]
    H = whh_ref.shape[0]

    @pl.when(t_blk == 0)
    def _():
        h_sc[...] = jnp.zeros_like(h_sc)
        c_sc[...] = jnp.zeros_like(c_sc)

    whh = whh_ref[...]  # hoist the resident weight load out of the time loop

    def step(t, carry):
        h, c = carry
        # Only the small recurrent matmul sits on the serial chain; operands
        # are bf16 for the MXU, accumulation and gate math stay f32.
        gates = xg_ref[t].astype(jnp.float32) + jnp.dot(
            h.astype(jnp.bfloat16), whh,
            preferred_element_type=jnp.float32)            # [Bb, 4H], i|f|g|o
        # Single EUP pass over the whole gate tensor: the g columns were
        # pre-scaled by 2, so sigmoid gives i/f/o directly and
        # tanh(x) = 2*sigmoid(2x) - 1 recovers g with one FMA.
        sg = jax.nn.sigmoid(gates)
        i = sg[:, 0:H]
        f = sg[:, H:2 * H]
        g = 2.0 * sg[:, 2 * H:3 * H] - 1.0
        o = sg[:, 3 * H:4 * H]
        c_new = f * c + i * g
        h_new = o * jnp.tanh(c_new)
        return (h_new, c_new)

    h, c = lax.fori_loop(0, Tt, step, (h_sc[...], c_sc[...]), unroll=True)
    h_sc[...] = h
    c_sc[...] = c

    @pl.when(t_blk == n_t - 1)
    def _():
        out_ref[...] = (
            jnp.dot(h.astype(jnp.bfloat16), wfc_ref[...],
                    preferred_element_type=jnp.float32)
            + bfc_ref[...]
        )


def _largest_divisor_leq(n, cap):
    cap = max(1, min(int(cap), n))
    for d in range(cap, 0, -1):
        if n % d == 0:
            return d
    return 1


def chess_model_forward(tokens, params, *, t_chunk=16):
    """tokens: [B, T] int32.  Returns logits [B, output_dim] (f32)."""
    emb = params["embedding"]          # [V, E]
    w_ih_t = params["w_ih_t"]          # [E, 4H]
    w_hh_t = params["w_hh_t"]          # [H, 4H]
    b_gates = params["b_gates"]        # [1, 4H] (b_ih + b_hh)
    w_fc_t = params["w_fc_t"]          # [H, O]
    b_fc = params["b_fc"]              # [1, O]

    B, T = tokens.shape
    H = w_hh_t.shape[0]
    O = w_fc_t.shape[1]

    # --- JAX glue: fuse embedding with the input projection (both linear). ---
    # Pre-scale the g-gate columns by 2 (here and in W_hh) so the kernel can
    # run one sigmoid over all 4 gates and recover tanh via 2*sig(2x)-1.
    g_scale = jnp.concatenate([
        jnp.ones((2 * H,), jnp.float32),
        jnp.full((H,), 2.0, jnp.float32),
        jnp.ones((H,), jnp.float32)])                              # [4H]
    e_proj = (jnp.dot(emb, w_ih_t, preferred_element_type=jnp.float32)
              + b_gates) * g_scale                                 # [V, 4H] f32
    e_proj_bf = e_proj.astype(jnp.bfloat16)                        # [V, 4H] bf16
    # Gather directly in time-major layout (no materialized transpose), bf16
    # so the only B*T-scaled HBM traffic is halved.
    x_tm = jnp.take(e_proj_bf, tokens.T, axis=0)                   # [T, B, 4H]

    # Pad batch to a multiple of 16 sublanes (bf16 MXU min tile); split into
    # two batch blocks when possible so the "parallel" axis shards across
    # v7x's two TensorCores.
    if B <= 128:
        Bp = max(16, -(-B // 16) * 16)
    else:
        Bp = -(-B // 128) * 128
    if Bp > 128:
        Bb = 128
    elif Bp >= 32 and Bp % 32 == 0:
        Bb = Bp // 2
    else:
        Bb = Bp
    if Bp != B:
        x_tm = jnp.pad(x_tm, ((0, 0), (0, Bp - B), (0, 0)))
    nb = Bp // Bb

    # Time chunk: amortize the ~0.35us/grid-step overhead over 16+ LSTM steps,
    # capped by an explicit VMEM budget for the double-buffered bf16 stream
    # (keeps the tile comfortable inside v7x's 64 MiB VMEM).
    bytes_per_t = Bb * 4 * H * 2                      # bf16 per timestep tile
    per_buf_budget = 8 * 1024 * 1024
    cap = max(1, per_buf_budget // bytes_per_t)
    Tt = _largest_divisor_leq(T, min(t_chunk, cap))
    if Tt < min(8, T):
        # prime-ish T: widen the cap instead of falling off the Tt=1 cliff.
        Tt = _largest_divisor_leq(T, min(2 * t_chunk, cap))
    nt = T // Tt

    whh_bf = (w_hh_t * g_scale).astype(jnp.bfloat16)
    wfc_bf = w_fc_t.astype(jnp.bfloat16)
    b_fc = b_fc.astype(jnp.float32)

    # Explicit VMEM limit sized from the actual tile footprint (+slack):
    # default scoped limits (16/32 MiB) can be too tight once Tt is raised.
    vmem_bytes = (2 * Tt * Bb * 4 * H * 2             # xg stream (x2 buffers)
                  + 2 * (H * 4 * H * 2 + H * O * 2 + 8 * O * 4)   # weights/bias
                  + 2 * Bb * O * 4                    # output block
                  + 2 * Bb * H * 4)                   # h/c scratch
    vmem_limit = int(min(48 * 1024 * 1024,
                         max(32 * 1024 * 1024, 2 * vmem_bytes)))

    out = pl.pallas_call(
        lstm_fc_kernel,
        out_shape=jax.ShapeDtypeStruct((Bp, O), jnp.float32),
        grid_spec=pltpu.PrefetchScalarGridSpec(
            num_scalar_prefetch=0,
            grid=(nb, nt),
            in_specs=[
                # streamed, double-buffered bf16 time chunks of gate pre-acts
                pl.BlockSpec((Tt, Bb, 4 * H), lambda b, t: (t, b, 0)),
                # weights resident in VMEM across the whole grid
                pl.BlockSpec((H, 4 * H), lambda b, t: (0, 0)),
                pl.BlockSpec((H, O), lambda b, t: (0, 0)),
                pl.BlockSpec((1, O), lambda b, t: (0, 0)),
            ],
            out_specs=pl.BlockSpec((Bb, O), lambda b, t: (b, 0)),
            scratch_shapes=[pltpu.VMEM((Bb, H), jnp.float32),   # h carry
                            pltpu.VMEM((Bb, H), jnp.float32)],  # c carry
        ),
        compiler_params=pltpu.CompilerParams(
            dimension_semantics=("parallel", "arbitrary"),
            vmem_limit_bytes=vmem_limit),
    )(x_tm, whh_bf, wfc_bf, b_fc)
    return out[:B]


def reference_forward(tokens, params):
    """Pure-JAX f32 reference mirroring torch.nn.LSTM / the PyTorch module."""
    x = jnp.take(params["embedding"], tokens, axis=0)  # [B, T, E]
    B, T, _ = x.shape
    H = params["w_hh_t"].shape[0]
    h = jnp.zeros((B, H), jnp.float32)
    c = jnp.zeros((B, H), jnp.float32)
    for t in range(T):
        gates = (x[:, t, :] @ params["w_ih_t"] + h @ params["w_hh_t"]
                 + params["b_gates"])
        i = jax.nn.sigmoid(gates[:, 0:H])
        f = jax.nn.sigmoid(gates[:, H:2 * H])
        g = jnp.tanh(gates[:, 2 * H:3 * H])
        o = jax.nn.sigmoid(gates[:, 3 * H:4 * H])
        c = f * c + i * g
        h = o * jnp.tanh(c)
    return h @ params["w_fc_t"] + params["b_fc"]


def init_params(key, vocab_size, embed_dim, hidden_dim, output_dim):
    ks = jax.random.split(key, 7)
    scale = 1.0 / jnp.sqrt(hidden_dim)
    return {
        "embedding": jax.random.normal(ks[0], (vocab_size, embed_dim),
                                       jnp.float32),
        # Stored pre-transposed for the kernel (PyTorch stores [4H,E]/[4H,H]).
        "w_ih_t": jax.random.uniform(ks[1], (embed_dim, 4 * hidden_dim),
                                     jnp.float32, -scale, scale),
        "w_hh_t": jax.random.uniform(ks[2], (hidden_dim, 4 * hidden_dim),
                                     jnp.float32, -scale, scale),
        "b_gates": (jax.random.uniform(ks[3], (1, 4 * hidden_dim), jnp.float32,
                                       -scale, scale)
                    + jax.random.uniform(ks[4], (1, 4 * hidden_dim),
                                         jnp.float32, -scale, scale)),
        "w_fc_t": jax.random.uniform(ks[5], (hidden_dim, output_dim),
                                     jnp.float32, -scale, scale),
        "b_fc": jax.random.uniform(ks[6], (1, output_dim), jnp.float32,
                                   -scale, scale),
    }


if __name__ == "__main__":
    # Small shapes consistent with the module (vocab/output shrunk from 10000,
    # embed/hidden shrunk from 128/256).  H=128 keeps each gate lane-aligned.
    VOCAB, EMBED, HIDDEN, OUTPUT = 512, 64, 128, 256
    B, T = 2, 8

    key = jax.random.PRNGKey(0)
    pkey, tkey = jax.random.split(key)
    params = init_params(pkey, VOCAB, EMBED, HIDDEN, OUTPUT)
    tokens = jax.random.randint(tkey, (B, T), 0, VOCAB, dtype=jnp.int32)

    out = jax.block_until_ready(chess_model_forward(tokens, params))
    ref = jax.block_until_ready(reference_forward(tokens, params))

    assert out.shape == (B, OUTPUT), out.shape
    # bf16 MXU operands / bf16 streamed pre-activations (f32 accumulation and
    # gate math) => loosened tolerance vs f32 reference.
    assert jnp.allclose(out, ref, atol=5e-2, rtol=5e-2), (
        "mismatch vs JAX reference; max abs err = "
        f"{float(jnp.max(jnp.abs(out - ref)))}")
    print("KERNEL_OK")
</pallas_src>

<mosaic_0001>
module attributes {stable_mosaic.version = 11 : i64} {
  func.func @lstm_fc_kernel(%arg0: i32, %arg1: i32, %arg2: memref<8x16x512xbf16, #tpu.memory_space<vmem>>, %arg3: memref<128x512xbf16, #tpu.memory_space<vmem>>, %arg4: memref<128x256xbf16, #tpu.memory_space<vmem>>, %arg5: memref<1x256xf32, #tpu.memory_space<vmem>>, %arg6: memref<16x256xf32, #tpu.memory_space<vmem>>, %arg7: memref<16x128xf32, #tpu.memory_space<vmem>>, %arg8: memref<16x128xf32, #tpu.memory_space<vmem>>) attributes {dimension_semantics = [#tpu.dimension_semantics<parallel>, #tpu.dimension_semantics<arbitrary>], iteration_bounds = array<i64: 1, 1>, scalar_prefetch = 0 : i64, scratch_operands = 2 : i64, tpu.core_type = #tpu.core_type<tc>, window_params = [{transform_indices = @transform_0, window_bounds = array<i64: 8, 16, 512>}, {pipeline_mode = #tpu.pipeline_mode<synchronous>, transform_indices = @transform_1, window_bounds = array<i64: 128, 512>}, {pipeline_mode = #tpu.pipeline_mode<synchronous>, transform_indices = @transform_2, window_bounds = array<i64: 128, 256>}, {pipeline_mode = #tpu.pipeline_mode<synchronous>, transform_indices = @transform_3, window_bounds = array<i64: 1, 256>}, {transform_indices = @transform_4, window_bounds = array<i64: 16, 256>}]} {
    %c0_i32 = arith.constant 0 : i32
    %0 = arith.cmpi eq, %arg1, %c0_i32 : i32
    %1 = arith.extui %0 : i1 to i32
    %c0_i32_0 = arith.constant 0 : i32
    %2 = arith.cmpi ne, %1, %c0_i32_0 : i32
    scf.if %2 {
      %cst_60 = arith.constant 0.000000e+00 : f32
      %211 = vector.broadcast %cst_60 : f32 to vector<16x128xf32>
      %c0_61 = arith.constant 0 : index
      %c0_62 = arith.constant 0 : index
      %212 = vector.load %arg7[%c0_61, %c0_62] : memref<16x128xf32, #tpu.memory_space<vmem>>, vector<16x128xf32>
      tpu.vector_store %arg7[%c0_61, %c0_62], %211 {strides = array<i32>} : memref<16x128xf32, #tpu.memory_space<vmem>>, vector<16x128xf32>,
      %cst_63 = arith.constant 0.000000e+00 : f32
      %213 = vector.broadcast %cst_63 : f32 to vector<16x128xf32>
      %c0_64 = arith.constant 0 : index
      %c0_65 = arith.constant 0 : index
      %214 = vector.load %arg8[%c0_64, %c0_65] : memref<16x128xf32, #tpu.memory_space<vmem>>, vector<16x128xf32>
      tpu.vector_store %arg8[%c0_64, %c0_65], %213 {strides = array<i32>} : memref<16x128xf32, #tpu.memory_space<vmem>>, vector<16x128xf32>,
    } else {
    }
    %c0 = arith.constant 0 : index
    %c0_1 = arith.constant 0 : index
    %3 = vector.load %arg3[%c0, %c0_1] : memref<128x512xbf16, #tpu.memory_space<vmem>>, vector<128x512xbf16>
    %c0_2 = arith.constant 0 : index
    %c0_3 = arith.constant 0 : index
    %4 = vector.load %arg7[%c0_2, %c0_3] : memref<16x128xf32, #tpu.memory_space<vmem>>, vector<16x128xf32>
    %c0_4 = arith.constant 0 : index
    %c0_5 = arith.constant 0 : index
    %5 = vector.load %arg8[%c0_4, %c0_5] : memref<16x128xf32, #tpu.memory_space<vmem>>, vector<16x128xf32>
    %c0_i32_6 = arith.constant 0 : i32
    %6 = arith.index_cast %c0_i32_6 : i32 to index
    %c0_7 = arith.constant 0 : index
    %c0_8 = arith.constant 0 : index
    %7 = vector.load %arg2[%6, %c0_7, %c0_8] : memref<8x16x512xbf16, #tpu.memory_space<vmem>>, vector<1x16x512xbf16>
    %8 = vector.shape_cast %7 : vector<1x16x512xbf16> to vector<16x512xbf16>
    %9 = arith.extf %8 : vector<16x512xbf16> to vector<16x512xf32>
    %10 = arith.truncf %4 : vector<16x128xf32> to vector<16x128xbf16>
    %cst = arith.constant dense<0.000000e+00> : vector<16x512xf32>
    %11 = tpu.matmul %10, %3, %cst {dimension_numbers = #tpu.dot_dimension_numbers<[1], [0], [0], [1], [0, 0, 1, 1], [], []>} : vector<16x128xbf16>, vector<128x512xbf16>, vector<16x512xf32> -> vector<16x512xf32>
    %12 = arith.addf %9, %11 : vector<16x512xf32>
    %13 = arith.negf %12 : vector<16x512xf32>
    %14 = math.exp %13 : vector<16x512xf32>
    %cst_9 = arith.constant 1.000000e+00 : f32
    %15 = vector.broadcast %cst_9 : f32 to vector<16x512xf32>
    %16 = arith.addf %15, %14 : vector<16x512xf32>
    %17 = arith.divf %15, %16 : vector<16x512xf32>
    %18 = vector.extract_strided_slice %17 {offsets = [0, 0], sizes = [16, 128], strides = [1, 1]} : vector<16x512xf32> to vector<16x128xf32>
    %19 = vector.extract_strided_slice %17 {offsets = [0, 128], sizes = [16, 128], strides = [1, 1]} : vector<16x512xf32> to vector<16x128xf32>
    %20 = vector.extract_strided_slice %17 {offsets = [0, 256], sizes = [16, 128], strides = [1, 1]} : vector<16x512xf32> to vector<16x128xf32>
    %cst_10 = arith.constant 2.000000e+00 : f32
    %21 = vector.broadcast %cst_10 : f32 to vector<16x128xf32>
    %22 = arith.mulf %21, %20 : vector<16x128xf32>
    %cst_11 = arith.constant 1.000000e+00 : f32
    %23 = vector.broadcast %cst_11 : f32 to vector<16x128xf32>
    %24 = arith.subf %22, %23 : vector<16x128xf32>
    %25 = vector.extract_strided_slice %17 {offsets = [0, 384], sizes = [16, 128], strides = [1, 1]} : vector<16x512xf32> to vector<16x128xf32>
    %26 = arith.mulf %19, %5 : vector<16x128xf32>
    %27 = arith.mulf %18, %24 : vector<16x128xf32>
    %28 = arith.addf %26, %27 : vector<16x128xf32>
    %29 = math.tanh %28 : vector<16x128xf32>
    %30 = arith.mulf %25, %29 : vector<16x128xf32>
    %c1_i32 = arith.constant 1 : i32
    %31 = arith.index_cast %c1_i32 : i32 to index
    %c0_12 = arith.constant 0 : index
    %c0_13 = arith.constant 0 : index
    %32 = vector.load %arg2[%31, %c0_12, %c0_13] : memref<8x16x512xbf16, #tpu.memory_space<vmem>>, vector<1x16x512xbf16>
    %33 = vector.shape_cast %32 : vector<1x16x512xbf16> to vector<16x512xbf16>
    %34 = arith.extf %33 : vector<16x512xbf16> to vector<16x512xf32>
    %35 = arith.truncf %30 : vector<16x128xf32> to vector<16x128xbf16>
    %cst_14 = arith.constant dense<0.000000e+00> : vector<16x512xf32>
    %36 = tpu.matmul %35, %3, %cst_14 {dimension_numbers = #tpu.dot_dimension_numbers<[1], [0], [0], [1], [0, 0, 1, 1], [], []>} : vector<16x128xbf16>, vector<128x512xbf16>, vector<16x512xf32> -> vector<16x512xf32>
    %37 = arith.addf %34, %36 : vector<16x512xf32>
    %38 = arith.negf %37 : vector<16x512xf32>
    %39 = math.exp %38 : vector<16x512xf32>
    %cst_15 = arith.constant 1.000000e+00 : f32
    %40 = vector.broadcast %cst_15 : f32 to vector<16x512xf32>
    %41 = arith.addf %40, %39 : vector<16x512xf32>
    %42 = arith.divf %40, %41 : vector<16x512xf32>
    %43 = vector.extract_strided_slice %42 {offsets = [0, 0], sizes = [16, 128], strides = [1, 1]} : vector<16x512xf32> to vector<16x128xf32>
    %44 = vector.extract_strided_slice %42 {offsets = [0, 128], sizes = [16, 128], strides = [1, 1]} : vector<16x512xf32> to vector<16x128xf32>
    %45 = vector.extract_strided_slice %42 {offsets = [0, 256], sizes = [16, 128], strides = [1, 1]} : vector<16x512xf32> to vector<16x128xf32>
    %cst_16 = arith.constant 2.000000e+00 : f32
    %46 = vector.broadcast %cst_16 : f32 to vector<16x128xf32>
    %47 = arith.mulf %46, %45 : vector<16x128xf32>
    %cst_17 = arith.constant 1.000000e+00 : f32
    %48 = vector.broadcast %cst_17 : f32 to vector<16x128xf32>
    %49 = arith.subf %47, %48 : vector<16x128xf32>
    %50 = vector.extract_strided_slice %42 {offsets = [0, 384], sizes = [16, 128], strides = [1, 1]} : vector<16x512xf32> to vector<16x128xf32>
    %51 = arith.mulf %44, %28 : vector<16x128xf32>
    %52 = arith.mulf %43, %49 : vector<16x128xf32>
    %53 = arith.addf %51, %52 : vector<16x128xf32>
    %54 = math.tanh %53 : vector<16x128xf32>
    %55 = arith.mulf %50, %54 : vector<16x128xf32>
    %c2_i32 = arith.constant 2 : i32
    %56 = arith.index_cast %c2_i32 : i32 to index
    %c0_18 = arith.constant 0 : index
    %c0_19 = arith.constant 0 : index
    %57 = vector.load %arg2[%56, %c0_18, %c0_19] : memref<8x16x512xbf16, #tpu.memory_space<vmem>>, vector<1x16x512xbf16>
    %58 = vector.shape_cast %57 : vector<1x16x512xbf16> to vector<16x512xbf16>
    %59 = arith.extf %58 : vector<16x512xbf16> to vector<16x512xf32>
    %60 = arith.truncf %55 : vector<16x128xf32> to vector<16x128xbf16>
    %cst_20 = arith.constant dense<0.000000e+00> : vector<16x512xf32>
    %61 = tpu.matmul %60, %3, %cst_20 {dimension_numbers = #tpu.dot_dimension_numbers<[1], [0], [0], [1], [0, 0, 1, 1], [], []>} : vector<16x128xbf16>, vector<128x512xbf16>, vector<16x512xf32> -> vector<16x512xf32>
    %62 = arith.addf %59, %61 : vector<16x512xf32>
    %63 = arith.negf %62 : vector<16x512xf32>
    %64 = math.exp %63 : vector<16x512xf32>
    %cst_21 = arith.constant 1.000000e+00 : f32
    %65 = vector.broadcast %cst_21 : f32 to vector<16x512xf32>
    %66 = arith.addf %65, %64 : vector<16x512xf32>
    %67 = arith.divf %65, %66 : vector<16x512xf32>
    %68 = vector.extract_strided_slice %67 {offsets = [0, 0], sizes = [16, 128], strides = [1, 1]} : vector<16x512xf32> to vector<16x128xf32>
    %69 = vector.extract_strided_slice %67 {offsets = [0, 128], sizes = [16, 128], strides = [1, 1]} : vector<16x512xf32> to vector<16x128xf32>
    %70 = vector.extract_strided_slice %67 {offsets = [0, 256], sizes = [16, 128], strides = [1, 1]} : vector<16x512xf32> to vector<16x128xf32>
    %cst_22 = arith.constant 2.000000e+00 : f32
    %71 = vector.broadcast %cst_22 : f32 to vector<16x128xf32>
    %72 = arith.mulf %71, %70 : vector<16x128xf32>
    %cst_23 = arith.constant 1.000000e+00 : f32
    %73 = vector.broadcast %cst_23 : f32 to vector<16x128xf32>
    %74 = arith.subf %72, %73 : vector<16x128xf32>
    %75 = vector.extract_strided_slice %67 {offsets = [0, 384], sizes = [16, 128], strides = [1, 1]} : vector<16x512xf32> to vector<16x128xf32>
    %76 = arith.mulf %69, %53 : vector<16x128xf32>
    %77 = arith.mulf %68, %74 : vector<16x128xf32>
    %78 = arith.addf %76, %77 : vector<16x128xf32>
    %79 = math.tanh %78 : vector<16x128xf32>
    %80 = arith.mulf %75, %79 : vector<16x128xf32>
    %c3_i32 = arith.constant 3 : i32
    %81 = arith.index_cast %c3_i32 : i32 to index
    %c0_24 = arith.constant 0 : index
    %c0_25 = arith.constant 0 : index
    %82 = vector.load %arg2[%81, %c0_24, %c0_25] : memref<8x16x512xbf16, #tpu.memory_space<vmem>>, vector<1x16x512xbf16>
    %83 = vector.shape_cast %82 : vector<1x16x512xbf16> to vector<16x512xbf16>
    %84 = arith.extf %83 : vector<16x512xbf16> to vector<16x512xf32>
    %85 = arith.truncf %80 : vector<16x128xf32> to vector<16x128xbf16>
    %cst_26 = arith.constant dense<0.000000e+00> : vector<16x512xf32>
    %86 = tpu.matmul %85, %3, %cst_26 {dimension_numbers = #tpu.dot_dimension_numbers<[1], [0], [0], [1], [0, 0, 1, 1], [], []>} : vector<16x128xbf16>, vector<128x512xbf16>, vector<16x512xf32> -> vector<16x512xf32>
    %87 = arith.addf %84, %86 : vector<16x512xf32>
    %88 = arith.negf %87 : vector<16x512xf32>
    %89 = math.exp %88 : vector<16x512xf32>
    %cst_27 = arith.constant 1.000000e+00 : f32
    %90 = vector.broadcast %cst_27 : f32 to vector<16x512xf32>
    %91 = arith.addf %90, %89 : vector<16x512xf32>
    %92 = arith.divf %90, %91 : vector<16x512xf32>
    %93 = vector.extract_strided_slice %92 {offsets = [0, 0], sizes = [16, 128], strides = [1, 1]} : vector<16x512xf32> to vector<16x128xf32>
    %94 = vector.extract_strided_slice %92 {offsets = [0, 128], sizes = [16, 128], strides = [1, 1]} : vector<16x512xf32> to vector<16x128xf32>
    %95 = vector.extract_strided_slice %92 {offsets = [0, 256], sizes = [16, 128], strides = [1, 1]} : vector<16x512xf32> to vector<16x128xf32>
    %cst_28 = arith.constant 2.000000e+00 : f32
    %96 = vector.broadcast %cst_28 : f32 to vector<16x128xf32>
    %97 = arith.mulf %96, %95 : vector<16x128xf32>
    %cst_29 = arith.constant 1.000000e+00 : f32
    %98 = vector.broadcast %cst_29 : f32 to vector<16x128xf32>
    %99 = arith.subf %97, %98 : vector<16x128xf32>
    %100 = vector.extract_strided_slice %92 {offsets = [0, 384], sizes = [16, 128], strides = [1, 1]} : vector<16x512xf32> to vector<16x128xf32>
    %101 = arith.mulf %94, %78 : vector<16x128xf32>
    %102 = arith.mulf %93, %99 : vector<16x128xf32>
    %103 = arith.addf %101, %102 : vector<16x128xf32>
    %104 = math.tanh %103 : vector<16x128xf32>
    %105 = arith.mulf %100, %104 : vector<16x128xf32>
    %c4_i32 = arith.constant 4 : i32
    %106 = arith.index_cast %c4_i32 : i32 to index
    %c0_30 = arith.constant 0 : index
    %c0_31 = arith.constant 0 : index
    %107 = vector.load %arg2[%106, %c0_30, %c0_31] : memref<8x16x512xbf16, #tpu.memory_space<vmem>>, vector<1x16x512xbf16>
    %108 = vector.shape_cast %107 : vector<1x16x512xbf16> to vector<16x512xbf16>
    %109 = arith.extf %108 : vector<16x512xbf16> to vector<16x512xf32>
    %110 = arith.truncf %105 : vector<16x128xf32> to vector<16x128xbf16>
    %cst_32 = arith.constant dense<0.000000e+00> : vector<16x512xf32>
    %111 = tpu.matmul %110, %3, %cst_32 {dimension_numbers = #tpu.dot_dimension_numbers<[1], [0], [0], [1], [0, 0, 1, 1], [], []>} : vector<16x128xbf16>, vector<128x512xbf16>, vector<16x512xf32> -> vector<16x512xf32>
    %112 = arith.addf %109, %111 : vector<16x512xf32>
    %113 = arith.negf %112 : vector<16x512xf32>
    %114 = math.exp %113 : vector<16x512xf32>
    %cst_33 = arith.constant 1.000000e+00 : f32
    %115 = vector.broadcast %cst_33 : f32 to vector<16x512xf32>
    %116 = arith.addf %115, %114 : vector<16x512xf32>
    %117 = arith.divf %115, %116 : vector<16x512xf32>
    %118 = vector.extract_strided_slice %117 {offsets = [0, 0], sizes = [16, 128], strides = [1, 1]} : vector<16x512xf32> to vector<16x128xf32>
    %119 = vector.extract_strided_slice %117 {offsets = [0, 128], sizes = [16, 128], strides = [1, 1]} : vector<16x512xf32> to vector<16x128xf32>
    %120 = vector.extract_strided_slice %117 {offsets = [0, 256], sizes = [16, 128], strides = [1, 1]} : vector<16x512xf32> to vector<16x128xf32>
    %cst_34 = arith.constant 2.000000e+00 : f32
    %121 = vector.broadcast %cst_34 : f32 to vector<16x128xf32>
    %122 = arith.mulf %121, %120 : vector<16x128xf32>
    %cst_35 = arith.constant 1.000000e+00 : f32
    %123 = vector.broadcast %cst_35 : f32 to vector<16x128xf32>
    %124 = arith.subf %122, %123 : vector<16x128xf32>
    %125 = vector.extract_strided_slice %117 {offsets = [0, 384], sizes = [16, 128], strides = [1, 1]} : vector<16x512xf32> to vector<16x128xf32>
    %126 = arith.mulf %119, %103 : vector<16x128xf32>
    %127 = arith.mulf %118, %124 : vector<16x128xf32>
    %128 = arith.addf %126, %127 : vector<16x128xf32>
    %129 = math.tanh %128 : vector<16x128xf32>
    %130 = arith.mulf %125, %129 : vector<16x128xf32>
    %c5_i32 = arith.constant 5 : i32
    %131 = arith.index_cast %c5_i32 : i32 to index
    %c0_36 = arith.constant 0 : index
    %c0_37 = arith.constant 0 : index
    %132 = vector.load %arg2[%131, %c0_36, %c0_37] : memref<8x16x512xbf16, #tpu.memory_space<vmem>>, vector<1x16x512xbf16>
    %133 = vector.shape_cast %132 : vector<1x16x512xbf16> to vector<16x512xbf16>
    %134 = arith.extf %133 : vector<16x512xbf16> to vector<16x512xf32>
    %135 = arith.truncf %130 : vector<16x128xf32> to vector<16x128xbf16>
    %cst_38 = arith.constant dense<0.000000e+00> : vector<16x512xf32>
    %136 = tpu.matmul %135, %3, %cst_38 {dimension_numbers = #tpu.dot_dimension_numbers<[1], [0], [0], [1], [0, 0, 1, 1], [], []>} : vector<16x128xbf16>, vector<128x512xbf16>, vector<16x512xf32> -> vector<16x512xf32>
    %137 = arith.addf %134, %136 : vector<16x512xf32>
    %138 = arith.negf %137 : vector<16x512xf32>
    %139 = math.exp %138 : vector<16x512xf32>
    %cst_39 = arith.constant 1.000000e+00 : f32
    %140 = vector.broadcast %cst_39 : f32 to vector<16x512xf32>
    %141 = arith.addf %140, %139 : vector<16x512xf32>
    %142 = arith.divf %140, %141 : vector<16x512xf32>
    %143 = vector.extract_strided_slice %142 {offsets = [0, 0], sizes = [16, 128], strides = [1, 1]} : vector<16x512xf32> to vector<16x128xf32>
    %144 = vector.extract_strided_slice %142 {offsets = [0, 128], sizes = [16, 128], strides = [1, 1]} : vector<16x512xf32> to vector<16x128xf32>
    %145 = vector.extract_strided_slice %142 {offsets = [0, 256], sizes = [16, 128], strides = [1, 1]} : vector<16x512xf32> to vector<16x128xf32>
    %cst_40 = arith.constant 2.000000e+00 : f32
    %146 = vector.broadcast %cst_40 : f32 to vector<16x128xf32>
    %147 = arith.mulf %146, %145 : vector<16x128xf32>
    %cst_41 = arith.constant 1.000000e+00 : f32
    %148 = vector.broadcast %cst_41 : f32 to vector<16x128xf32>
    %149 = arith.subf %147, %148 : vector<16x128xf32>
    %150 = vector.extract_strided_slice %142 {offsets = [0, 384], sizes = [16, 128], strides = [1, 1]} : vector<16x512xf32> to vector<16x128xf32>
    %151 = arith.mulf %144, %128 : vector<16x128xf32>
    %152 = arith.mulf %143, %149 : vector<16x128xf32>
    %153 = arith.addf %151, %152 : vector<16x128xf32>
    %154 = math.tanh %153 : vector<16x128xf32>
    %155 = arith.mulf %150, %154 : vector<16x128xf32>
    %c6_i32 = arith.constant 6 : i32
    %156 = arith.index_cast %c6_i32 : i32 to index
    %c0_42 = arith.constant 0 : index
    %c0_43 = arith.constant 0 : index
    %157 = vector.load %arg2[%156, %c0_42, %c0_43] : memref<8x16x512xbf16, #tpu.memory_space<vmem>>, vector<1x16x512xbf16>
    %158 = vector.shape_cast %157 : vector<1x16x512xbf16> to vector<16x512xbf16>
    %159 = arith.extf %158 : vector<16x512xbf16> to vector<16x512xf32>
    %160 = arith.truncf %155 : vector<16x128xf32> to vector<16x128xbf16>
    %cst_44 = arith.constant dense<0.000000e+00> : vector<16x512xf32>
    %161 = tpu.matmul %160, %3, %cst_44 {dimension_numbers = #tpu.dot_dimension_numbers<[1], [0], [0], [1], [0, 0, 1, 1], [], []>} : vector<16x128xbf16>, vector<128x512xbf16>, vector<16x512xf32> -> vector<16x512xf32>
    %162 = arith.addf %159, %161 : vector<16x512xf32>
    %163 = arith.negf %162 : vector<16x512xf32>
    %164 = math.exp %163 : vector<16x512xf32>
    %cst_45 = arith.constant 1.000000e+00 : f32
    %165 = vector.broadcast %cst_45 : f32 to vector<16x512xf32>
    %166 = arith.addf %165, %164 : vector<16x512xf32>
    %167 = arith.divf %165, %166 : vector<16x512xf32>
    %168 = vector.extract_strided_slice %167 {offsets = [0, 0], sizes = [16, 128], strides = [1, 1]} : vector<16x512xf32> to vector<16x128xf32>
    %169 = vector.extract_strided_slice %167 {offsets = [0, 128], sizes = [16, 128], strides = [1, 1]} : vector<16x512xf32> to vector<16x128xf32>
    %170 = vector.extract_strided_slice %167 {offsets = [0, 256], sizes = [16, 128], strides = [1, 1]} : vector<16x512xf32> to vector<16x128xf32>
    %cst_46 = arith.constant 2.000000e+00 : f32
    %171 = vector.broadcast %cst_46 : f32 to vector<16x128xf32>
    %172 = arith.mulf %171, %170 : vector<16x128xf32>
    %cst_47 = arith.constant 1.000000e+00 : f32
    %173 = vector.broadcast %cst_47 : f32 to vector<16x128xf32>
    %174 = arith.subf %172, %173 : vector<16x128xf32>
    %175 = vector.extract_strided_slice %167 {offsets = [0, 384], sizes = [16, 128], strides = [1, 1]} : vector<16x512xf32> to vector<16x128xf32>
    %176 = arith.mulf %169, %153 : vector<16x128xf32>
    %177 = arith.mulf %168, %174 : vector<16x128xf32>
    %178 = arith.addf %176, %177 : vector<16x128xf32>
    %179 = math.tanh %178 : vector<16x128xf32>
    %180 = arith.mulf %175, %179 : vector<16x128xf32>
    %c7_i32 = arith.constant 7 : i32
    %181 = arith.index_cast %c7_i32 : i32 to index
    %c0_48 = arith.constant 0 : index
    %c0_49 = arith.constant 0 : index
    %182 = vector.load %arg2[%181, %c0_48, %c0_49] : memref<8x16x512xbf16, #tpu.memory_space<vmem>>, vector<1x16x512xbf16>
    %183 = vector.shape_cast %182 : vector<1x16x512xbf16> to vector<16x512xbf16>
    %184 = arith.extf %183 : vector<16x512xbf16> to vector<16x512xf32>
    %185 = arith.truncf %180 : vector<16x128xf32> to vector<16x128xbf16>
    %cst_50 = arith.constant dense<0.000000e+00> : vector<16x512xf32>
    %186 = tpu.matmul %185, %3, %cst_50 {dimension_numbers = #tpu.dot_dimension_numbers<[1], [0], [0], [1], [0, 0, 1, 1], [], []>} : vector<16x128xbf16>, vector<128x512xbf16>, vector<16x512xf32> -> vector<16x512xf32>
    %187 = arith.addf %184, %186 : vector<16x512xf32>
    %188 = arith.negf %187 : vector<16x512xf32>
    %189 = math.exp %188 : vector<16x512xf32>
    %cst_51 = arith.constant 1.000000e+00 : f32
    %190 = vector.broadcast %cst_51 : f32 to vector<16x512xf32>
    %191 = arith.addf %190, %189 : vector<16x512xf32>
    %192 = arith.divf %190, %191 : vector<16x512xf32>
    %193 = vector.extract_strided_slice %192 {offsets = [0, 0], sizes = [16, 128], strides = [1, 1]} : vector<16x512xf32> to vector<16x128xf32>
    %194 = vector.extract_strided_slice %192 {offsets = [0, 128], sizes = [16, 128], strides = [1, 1]} : vector<16x512xf32> to vector<16x128xf32>
    %195 = vector.extract_strided_slice %192 {offsets = [0, 256], sizes = [16, 128], strides = [1, 1]} : vector<16x512xf32> to vector<16x128xf32>
    %cst_52 = arith.constant 2.000000e+00 : f32
    %196 = vector.broadcast %cst_52 : f32 to vector<16x128xf32>
    %197 = arith.mulf %196, %195 : vector<16x128xf32>
    %cst_53 = arith.constant 1.000000e+00 : f32
    %198 = vector.broadcast %cst_53 : f32 to vector<16x128xf32>
    %199 = arith.subf %197, %198 : vector<16x128xf32>
    %200 = vector.extract_strided_slice %192 {offsets = [0, 384], sizes = [16, 128], strides = [1, 1]} : vector<16x512xf32> to vector<16x128xf32>
    %201 = arith.mulf %194, %178 : vector<16x128xf32>
    %202 = arith.mulf %193, %199 : vector<16x128xf32>
    %203 = arith.addf %201, %202 : vector<16x128xf32>
    %204 = math.tanh %203 : vector<16x128xf32>
    %205 = arith.mulf %200, %204 : vector<16x128xf32>
    %c8_i32 = arith.constant 8 : i32
    %c0_54 = arith.constant 0 : index
    %c0_55 = arith.constant 0 : index
    %206 = vector.load %arg7[%c0_54, %c0_55] : memref<16x128xf32, #tpu.memory_space<vmem>>, vector<16x128xf32>
    tpu.vector_store %arg7[%c0_54, %c0_55], %205 {strides = array<i32>} : memref<16x128xf32, #tpu.memory_space<vmem>>, vector<16x128xf32>,
    %c0_56 = arith.constant 0 : index
    %c0_57 = arith.constant 0 : index
    %207 = vector.load %arg8[%c0_56, %c0_57] : memref<16x128xf32, #tpu.memory_space<vmem>>, vector<16x128xf32>
    tpu.vector_store %arg8[%c0_56, %c0_57], %203 {strides = array<i32>} : memref<16x128xf32, #tpu.memory_space<vmem>>, vector<16x128xf32>,
    %c0_i32_58 = arith.constant 0 : i32
    %208 = arith.cmpi eq, %arg1, %c0_i32_58 : i32
    %209 = arith.extui %208 : i1 to i32
    %c0_i32_59 = arith.constant 0 : i32
    %210 = arith.cmpi ne, %209, %c0_i32_59 : i32
    scf.if %210 {
      %211 = arith.truncf %205 : vector<16x128xf32> to vector<16x128xbf16>
      %c0_60 = arith.constant 0 : index
      %c0_61 = arith.constant 0 : index
      %212 = vector.load %arg4[%c0_60, %c0_61] : memref<128x256xbf16, #tpu.memory_space<vmem>>, vector<128x256xbf16>
      %cst_62 = arith.constant dense<0.000000e+00> : vector<16x256xf32>
      %213 = tpu.matmul %211, %212, %cst_62 {dimension_numbers = #tpu.dot_dimension_numbers<[1], [0], [0], [1], [0, 0, 1, 1], [], []>} : vector<16x128xbf16>, vector<128x256xbf16>, vector<16x256xf32> -> vector<16x256xf32>
      %c0_63 = arith.constant 0 : index
      %c0_64 = arith.constant 0 : index
      %214 = vector.load %arg5[%c0_63, %c0_64] : memref<1x256xf32, #tpu.memory_space<vmem>>, vector<1x256xf32>
      %215 = vector.broadcast %214 : vector<1x256xf32> to vector<16x256xf32>
      %216 = arith.addf %213, %215 : vector<16x256xf32>
      %c0_65 = arith.constant 0 : index
      %c0_66 = arith.constant 0 : index
      %217 = vector.load %arg6[%c0_65, %c0_66] : memref<16x256xf32, #tpu.memory_space<vmem>>, vector<16x256xf32>
      tpu.vector_store %arg6[%c0_65, %c0_66], %216 {strides = array<i32>} : memref<16x256xf32, #tpu.memory_space<vmem>>, vector<16x256xf32>,
    } else {
    }
    return
  }
  func.func @transform_0(%arg0: i32, %arg1: i32) -> (i32, i32, i32) {
    %c0_i32 = arith.constant 0 : i32
    %c0_i32_0 = arith.constant 0 : i32
    return %arg1, %arg0, %c0_i32 : i32, i32, i32
  }
  func.func @transform_1(%arg0: i32, %arg1: i32) -> (i32, i32) {
    %c0_i32 = arith.constant 0 : i32
    %c0_i32_0 = arith.constant 0 : i32
    %c0_i32_1 = arith.constant 0 : i32
    return %c0_i32, %c0_i32_0 : i32, i32
  }
  func.func @transform_2(%arg0: i32, %arg1: i32) -> (i32, i32) {
    %c0_i32 = arith.constant 0 : i32
    %c0_i32_0 = arith.constant 0 : i32
    %c0_i32_1 = arith.constant 0 : i32
    return %c0_i32, %c0_i32_0 : i32, i32
  }
  func.func @transform_3(%arg0: i32, %arg1: i32) -> (i32, i32) {
    %c0_i32 = arith.constant 0 : i32
    %c0_i32_0 = arith.constant 0 : i32
    %c0_i32_1 = arith.constant 0 : i32
    return %c0_i32, %c0_i32_0 : i32, i32
  }
  func.func @transform_4(%arg0: i32, %arg1: i32) -> (i32, i32) {
    %c0_i32 = arith.constant 0 : i32
    %c0_i32_0 = arith.constant 0 : i32
    return %arg0, %c0_i32 : i32, i32
  }
}

</mosaic_0001>

<bundles_post_ra>
// kernel: tpu_custom_call.1
= control target key start
LH: loop header
LB: loop body
LE: loop exit
PB: predicated region body
PF: predicated region fallthrough
CT: control target
= control target key end

     0   :  { %9 = vsyncpa [#allocation5], 0  ;;  %s4536_s0 = inlined_call_operand.hbm [shape: bf16[8,16,512], index: 0, kind: input, shape index: {}]   ;;  %s4537_s1 = inlined_call_operand.hbm [shape: bf16[128,512], index: 1, kind: input, shape index: {}]   ;;  %s4538_s2 = inlined_call_operand.hbm [shape: bf16[128,256], index: 2, kind: input, shape index: {}]   ;;  %s4539_s3 = inlined_call_operand.vmem [shape: f32[1,256], index: 3, kind: input, shape index: {}]   ;;  %s4540_s4 = inlined_call_operand.hbm [shape: f32[16,256], index: 4, kind: output, shape index: {}]  }
   0x1   :  { %10 = vsyncpa [#allocation8], 0 }
   0x2   :  { %11 = vsyncpa [#allocation6], 0  ;;  %s29_s17 = sshll.u32 %s4537_s1, 4  ;;  %s3101_s18 = smov [#allocation7]   ;;  %s30_s17 = int_to_ptr.hbm [resolvable:$true] %s29_s17 }
   0x3   :  { %s31_s19 = sshll.u32 %s3101_s18, 4  ;;  %s16_s22 = sshll.u32 %s4536_s0, 4  ;;  %s32_s19 = int_to_ptr.vmem [resolvable:$true] %s31_s19  ;;  %s17_s22 = int_to_ptr.hbm [resolvable:$true] %s16_s22 }
   0x4   :  { %s3102_s23 = smov 256   ;;  %s3103_s24 = smov 16  }
   0x5   :  { %37 = dma.hbm_to_vmem [thread:$0]  %s30_s17, 4096, %s32_s19, [#allocation8], %s3102_s23, %s3102_s23, %s3103_s24  }
   0x6   :  { %s3104_s25 = smov [#allocation4]   ;;  %s42_s1 = sshll.u32 %s4538_s2, 4  ;;  %s43_s1 = int_to_ptr.hbm [resolvable:$true] %s42_s1 }
   0x7   :  { %s18_s26 = sshll.u32 %s3104_s25, 4  ;;  %s3105_s0 = smov [#allocation9]   ;;  %s19_s26 = int_to_ptr.vmem [resolvable:$true] %s18_s26 }
   0x8   :  { %24 = dma.hbm_to_vmem [thread:$0]  %s17_s22, 4096, %s19_s26, [#allocation5], %s3102_s23, %s3102_s23, %s3103_s24  }
   0x9   :  { %s44_s29 = sshll.u32 %s3105_s0, 4  ;;  %s3106_s30 = smov 128   ;;  %s45_s29 = int_to_ptr.vmem [resolvable:$true] %s44_s29 }
   0xa   :  { %s3107_s5 = smov 8  }
   0xb   :  { %50 = dma.hbm_to_vmem [thread:$0]  %s43_s1, 2048, %s45_s29, [#allocation8], %s3106_s30, %s3106_s30, %s3107_s5  }
   0xc   :  { %3095 = dma.done.wait [#allocation5], 4096  }
   0xd   :  { %3096 = vsyncadd [#allocation5], 4294963200 }
   0xe   :  { %3097 = dma.done.wait [#allocation8], 6144  }
   0xf   :  { %3098 = vsyncadd [#allocation8], 4294961152  ;;  %v2496_v0 = vld [vmem:[#allocation7 + $0xe0] sm:$0xf]  ;;  %v2684_v1 = vld [vmem:[#allocation7 + $0xec] sm:$0xf0] }
  0x10   :  { %v2682_v2 = vld [vmem:[#allocation7 + $0xe4] sm:$0xf]  ;;  %v3150_v3 = vor.u32 %v2684_v1, %v2496_v0  ;;  %v2498_v4 = vld [vmem:[#allocation7 + $0xf0] sm:$0xf0]  ;;  %v2504_v5 = vld [vmem:[#allocation7 + $0xe8] sm:$0xf] }
  0x11   :  { %v2685_v6 = vld [vmem:[#allocation7 + $0xf4] sm:$0xf0]  ;;  %v3152_v7 = vor.u32 %v2682_v2, %v2498_v4  ;;  %v2683_v9 = vld [vmem:[#allocation7 + $0xec] sm:$0xf]  ;;  %v2506_v10 = vld [vmem:[#allocation7 + $0xf8] sm:$0xf0] }
  0x12   :  { %v3154_v8 = vor.u32 %v2685_v6, %v2504_v5  ;;  %v2480_v11 = vld [vmem:[#allocation7 + $0xc0] sm:$0xf]  ;;  %282 = vmatpush.bf16.msra.mxu0 %v3150_v3  ;;  %v3157_v12 = vor.u32 %v2683_v9, %v2506_v10  ;;  %v2680_v13 = vld [vmem:[#allocation7 + $0xcc] sm:$0xf0]  ;;  %v2678_v14 = vld [vmem:[#allocation7 + $0xc4] sm:$0xf] }
  0x13   :  { %v2482_v15 = vld [vmem:[#allocation7 + $0xd0] sm:$0xf0]  ;;  %296 = vmatpush.bf16.msra.mxu1 %v3152_v7  ;;  %v3161_v16 = vor.u32 %v2680_v13, %v2480_v11  ;;  %v2488_v18 = vld [vmem:[#allocation7 + $0xc8] sm:$0xf]  ;;  %v2681_v19 = vld [vmem:[#allocation7 + $0xd4] sm:$0xf0] }
  0x14   :  { %310 = vmatpush.bf16.msra.mxu2 %v3154_v8  ;;  %v3163_v17 = vor.u32 %v2678_v14, %v2482_v15  ;;  %v2679_v20 = vld [vmem:[#allocation7 + $0xcc] sm:$0xf]  ;;  %324 = vmatpush.bf16.msra.mxu3 %v3157_v12  ;;  %v3166_v21 = vor.u32 %v2681_v19, %v2488_v18  ;;  %v2490_v22 = vld [vmem:[#allocation7 + $0xd8] sm:$0xf0]  ;;  %v2464_v23 = vld [vmem:[#allocation7 + $0xa0] sm:$0xf] }
  0x15   :  { %v2676_v24 = vld [vmem:[#allocation7 + $0xac] sm:$0xf0]  ;;  %v3168_v25 = vor.u32 %v2679_v20, %v2490_v22  ;;  %v2674_v26 = vld [vmem:[#allocation7 + $0xa4] sm:$0xf]  ;;  %v2466_v27 = vld [vmem:[#allocation7 + $0xb0] sm:$0xf0] }
  0x16   :  { %v2472_v28 = vld [vmem:[#allocation7 + $0xa8] sm:$0xf]  ;;  %283 = vmatpush.bf16.msra.mxu0 %v3161_v16  ;;  %v3171_v29 = vor.u32 %v2676_v24, %v2464_v23  ;;  %v2677_v30 = vld [vmem:[#allocation7 + $0xb4] sm:$0xf0]  ;;  %v2675_v31 = vld [vmem:[#allocation7 + $0xac] sm:$0xf]  ;;  %v3175_v33 = vor.u32 %v2674_v26, %v2466_v27 }
  0x17   :  { %v2474_v32 = vld [vmem:[#allocation7 + $0xb8] sm:$0xf0]  ;;  %297 = vmatpush.bf16.msra.mxu1 %v3163_v17  ;;  %v3177_v34 = vor.u32 %v2677_v30, %v2472_v28  ;;  %v2448_v35 = vld [vmem:[#allocation7 + $0x80] sm:$0xf]  ;;  %v2672_v36 = vld [vmem:[#allocation7 + $0x8c] sm:$0xf0] }
  0x18   :  { %311 = vmatpush.bf16.msra.mxu2 %v3166_v21  ;;  %v2670_v37 = vld [vmem:[#allocation7 + $0x84] sm:$0xf]  ;;  %325 = vmatpush.bf16.msra.mxu3 %v3168_v25  ;;  %v3180_v38 = vor.u32 %v2675_v31, %v2474_v32  ;;  %v2450_v39 = vld [vmem:[#allocation7 + $0x90] sm:$0xf0]  ;;  %v2456_v40 = vld [vmem:[#allocation7 + $0x88] sm:$0xf]  ;;  %v3183_v44 = vor.u32 %v2672_v36, %v2448_v35 }
  0x19   :  { %v2673_v41 = vld [vmem:[#allocation7 + $0x94] sm:$0xf0]  ;;  %v2671_v42 = vld [vmem:[#allocation7 + $0x8c] sm:$0xf]  ;;  %v2458_v43 = vld [vmem:[#allocation7 + $0x98] sm:$0xf0]  ;;  %v3187_v45 = vor.u32 %v2670_v37, %v2450_v39 }
  0x1a   :  { %284 = vmatpush.bf16.msra.mxu0 %v3171_v29  ;;  %v3189_v46 = vor.u32 %v2673_v41, %v2456_v40  ;;  %v2432_v47 = vld [vmem:[#allocation7 + $0x60] sm:$0xf]  ;;  %v2668_v48 = vld [vmem:[#allocation7 + $0x6c] sm:$0xf0]  ;;  %v2666_v49 = vld [vmem:[#allocation7 + $0x64] sm:$0xf]  ;;  %v3192_v50 = vor.u32 %v2671_v42, %v2458_v43 }
  0x1b   :  { %298 = vmatpush.bf16.msra.mxu1 %v3175_v33  ;;  %v2434_v51 = vld [vmem:[#allocation7 + $0x70] sm:$0xf0]  ;;  %v2440_v52 = vld [vmem:[#allocation7 + $0x68] sm:$0xf]  ;;  %v2669_v53 = vld [vmem:[#allocation7 + $0x74] sm:$0xf0]  ;;  %v3195_v56 = vor.u32 %v2668_v48, %v2432_v47 }
  0x1c   :  { %312 = vmatpush.bf16.msra.mxu2 %v3177_v34  ;;  %326 = vmatpush.bf16.msra.mxu3 %v3180_v38  ;;  %v2667_v54 = vld [vmem:[#allocation7 + $0x6c] sm:$0xf]  ;;  %v2442_v55 = vld [vmem:[#allocation7 + $0x78] sm:$0xf0]  ;;  %v3199_v57 = vor.u32 %v2666_v49, %v2434_v51  ;;  %v3201_v58 = vor.u32 %v2669_v53, %v2440_v52  ;;  %v2416_v59 = vld [vmem:[#allocation7 + $0x40] sm:$0xf] }
  0x1d   :  { %v2664_v60 = vld [vmem:[#allocation7 + $0x4c] sm:$0xf0]  ;;  %v2662_v61 = vld [vmem:[#allocation7 + $0x44] sm:$0xf]  ;;  %v3204_v62 = vor.u32 %v2667_v54, %v2442_v55  ;;  %v2418_v63 = vld [vmem:[#allocation7 + $0x50] sm:$0xf0] }
  0x1e   :  { %285 = vmatpush.bf16.msra.mxu0 %v3183_v44  ;;  %v2424_v0 = vld [vmem:[#allocation7 + $0x48] sm:$0xf]  ;;  %v2665_v1 = vld [vmem:[#allocation7 + $0x54] sm:$0xf0]  ;;  %v2663_v2 = vld [vmem:[#allocation7 + $0x4c] sm:$0xf]  ;;  %v3207_v5 = vor.u32 %v2664_v60, %v2416_v59  ;;  %v3211_v6 = vor.u32 %v2662_v61, %v2418_v63 }
  0x1f   :  { %299 = vmatpush.bf16.msra.mxu1 %v3187_v45  ;;  %v2426_v4 = vld [vmem:[#allocation7 + $0x58] sm:$0xf0]  ;;  %v3213_v9 = vor.u32 %v2665_v1, %v2424_v0  ;;  %v2400_v10 = vld [vmem:[#allocation7 + $0x20] sm:$0xf]  ;;  %v2660_v11 = vld [vmem:[#allocation7 + $0x2c] sm:$0xf0] }
  0x20   :  { %313 = vmatpush.bf16.msra.mxu2 %v3189_v46  ;;  %327 = vmatpush.bf16.msra.mxu3 %v3192_v50  ;;  %v2658_v13 = vld [vmem:[#allocation7 + $0x24] sm:$0xf]  ;;  %v3216_v14 = vor.u32 %v2663_v2, %v2426_v4  ;;  %v2402_v15 = vld [vmem:[#allocation7 + $0x30] sm:$0xf0]  ;;  %v2408_v18 = vld [vmem:[#allocation7 + $0x28] sm:$0xf]  ;;  %v3219_v23 = vor.u32 %v2660_v11, %v2400_v10 }
  0x21   :  { %v2661_v19 = vld [vmem:[#allocation7 + $0x34] sm:$0xf0]  ;;  %v2659_v20 = vld [vmem:[#allocation7 + $0x2c] sm:$0xf]  ;;  %v2410_v22 = vld [vmem:[#allocation7 + $0x38] sm:$0xf0]  ;;  %v3223_v24 = vor.u32 %v2658_v13, %v2402_v15 }
  0x22   :  { %286 = vmatpush.bf16.msra.mxu0 %v3195_v56  ;;  %v3225_v26 = vor.u32 %v2661_v19, %v2408_v18  ;;  %v2384_v27 = vld [vmem:[#allocation7] sm:$0xf]  ;;  %v2656_v28 = vld [vmem:[#allocation7 + $0xc] sm:$0xf0]  ;;  %v2654_v30 = vld [vmem:[#allocation7 + $0x4] sm:$0xf]  ;;  %v3228_v31 = vor.u32 %v2659_v20, %v2410_v22 }
  0x23   :  { %300 = vmatpush.bf16.msra.mxu1 %v3199_v57  ;;  %v2386_v32 = vld [vmem:[#allocation7 + $0x10] sm:$0xf0]  ;;  %v2392_v35 = vld [vmem:[#allocation7 + $0x8] sm:$0xf]  ;;  %v2657_v36 = vld [vmem:[#allocation7 + $0x14] sm:$0xf0]  ;;  %v3231_v40 = vor.u32 %v2656_v28, %v2384_v27 }
  0x24   :  { %314 = vmatpush.bf16.msra.mxu2 %v3201_v58  ;;  %328 = vmatpush.bf16.msra.mxu3 %v3204_v62  ;;  %v2655_v37 = vld [vmem:[#allocation7 + $0xc] sm:$0xf]  ;;  %v2394_v39 = vld [vmem:[#allocation7 + $0x18] sm:$0xf0]  ;;  %v3235_v41 = vor.u32 %v2654_v30, %v2386_v32  ;;  %v3237_v42 = vor.u32 %v2657_v36, %v2392_v35  ;;  %v3108_v47 = vmov 0.0|0.0   ;;  %v109_v48 = vld [vmem:[#allocation4] sm:$0xff] }
  0x25   :  { %v3240_v43 = vor.u32 %v2655_v37, %v2394_v39  ;;  %v113_v49 = vunpack.c.l.bf16 %v109_v48  ;;  %v114_v51 = vunpack.c.h.bf16 %v109_v48  ;;  %v110_v55 = vld [vmem:[#allocation4 + $0x8] sm:$0xff]  ;;  %v111_v60 = vld [vmem:[#allocation4 + $0x10] sm:$0xff]  ;;  %v112_v19 = vld [vmem:[#allocation4 + $0x18] sm:$0xff]  ;;  %s3109_s7 = smov [#allocation10]   ;;  %s2368_s11 = sshll.u32 %s4540_s4, 4  ;;  %s2369_s11 = int_to_ptr.hbm [resolvable:$true] %s2368_s11 }
  0x26   :  { %287 = vmatpush.bf16.msra.mxu0 %v3207_v5  ;;  %4547 = vst [vmem:[#allocation14_spill] sm:$0xff] %v3235_v41  ;;  %v115_v0 = vunpack.c.l.bf16 %v110_v55  ;;  %v117_v1 = vunpack.c.l.bf16 %v111_v60  ;;  %v118_v2 = vunpack.c.h.bf16 %v111_v60  ;;  %v116_v10 = vunpack.c.h.bf16 %v110_v55  ;;  %s2366_s8 = sshll.u32 %s3109_s7, 4  ;;  %s2367_s8 = int_to_ptr.vmem [resolvable:$true] %s2366_s8 }
  0x27   :  { %301 = vmatpush.bf16.msra.mxu1 %v3211_v6  ;;  %4548 = vst [vmem:[#allocation15_spill] sm:$0xff] %v3237_v42  ;;  %v119_v37 = vunpack.c.l.bf16 %v112_v19 }
  0x28   :  { %315 = vmatpush.bf16.msra.mxu2 %v3213_v9  ;;  %329 = vmatpush.bf16.msra.mxu3 %v3216_v14  ;;  %4549 = vst [vmem:[#allocation16_spill] sm:$0xff] %v3240_v43 }
  0x2a   :  { %288 = vmatpush.bf16.msra.mxu0 %v3219_v23 }
  0x2b   :  { %302 = vmatpush.bf16.msra.mxu1 %v3223_v24 }
  0x2c   :  { %316 = vmatpush.bf16.msra.mxu2 %v3225_v26  ;;  %330 = vmatpush.bf16.msra.mxu3 %v3228_v31 }
  0x2e   :  { %289 = vmatpush.bf16.msra.mxu0 %v3231_v40 }
  0x2f   :  { %303 = vmatpush.bf16.msra.mxu1 %v3235_v41 }
  0x30   :  { %317 = vmatpush.bf16.msra.mxu2 %v3237_v42  ;;  %331 = vmatpush.bf16.msra.mxu3 %v3240_v43 }
  0x31   :  { %290 = vmatmul.bf16.vlgmr.msra.gmra.mxu0 %v3108_v47 }
  0x32   :  { %526 = vmatpush.bf16.msrb.mxu0 %v3150_v3  ;;  %304 = vmatmul.bf16.vlgmr.msra.gmra.mxu1 %v3108_v47 }
  0x33   :  { %540 = vmatpush.bf16.msrb.mxu1 %v3152_v7  ;;  %318 = vmatmul.bf16.vlgmr.msra.gmra.mxu2 %v3108_v47 }
  0x34   :  { %332 = vmatmul.bf16.vlgmr.msra.gmra.mxu3 %v3108_v47  ;;  %554 = vmatpush.bf16.msrb.mxu2 %v3154_v8 }
  0x35   :  { %568 = vmatpush.bf16.msrb.mxu3 %v3157_v12 }
  0x36   :  { %527 = vmatpush.bf16.msrb.mxu0 %v3161_v16 }
  0x37   :  { %541 = vmatpush.bf16.msrb.mxu1 %v3163_v17 }
  0x38   :  { %555 = vmatpush.bf16.msrb.mxu2 %v3166_v21 }
  0x39   :  { %569 = vmatpush.bf16.msrb.mxu3 %v3168_v25 }
  0x3a   :  { %528 = vmatpush.bf16.msrb.mxu0 %v3171_v29 }
  0x3b   :  { %542 = vmatpush.bf16.msrb.mxu1 %v3175_v33 }
  0x3c   :  { %556 = vmatpush.bf16.msrb.mxu2 %v3177_v34 }
  0x3d   :  { %570 = vmatpush.bf16.msrb.mxu3 %v3180_v38 }
  0x3e   :  { %529 = vmatpush.bf16.msrb.mxu0 %v3183_v44 }
  0x3f   :  { %543 = vmatpush.bf16.msrb.mxu1 %v3187_v45 }
  0x40   :  { %557 = vmatpush.bf16.msrb.mxu2 %v3189_v46 }
  0x41   :  { %571 = vmatpush.bf16.msrb.mxu3 %v3192_v50 }
  0x42   :  { %530 = vmatpush.bf16.msrb.mxu0 %v3195_v56 }
  0x43   :  { %544 = vmatpush.bf16.msrb.mxu1 %v3199_v57 }
  0x44   :  { %558 = vmatpush.bf16.msrb.mxu2 %v3201_v58 }
  0x45   :  { %572 = vmatpush.bf16.msrb.mxu3 %v3204_v62 }
  0x46   :  { %531 = vmatpush.bf16.msrb.mxu0 %v3207_v5 }
  0x47   :  { %545 = vmatpush.bf16.msrb.mxu1 %v3211_v6 }
  0x48   :  { %559 = vmatpush.bf16.msrb.mxu2 %v3213_v9 }
  0x49   :  { %573 = vmatpush.bf16.msrb.mxu3 %v3216_v14 }
  0x4a   :  { %532 = vmatpush.bf16.msrb.mxu0 %v3219_v23 }
  0x4b   :  { %546 = vmatpush.bf16.msrb.mxu1 %v3223_v24 }
  0x4c   :  { %560 = vmatpush.bf16.msrb.mxu2 %v3225_v26 }
  0x4d   :  { %574 = vmatpush.bf16.msrb.mxu3 %v3228_v31 }
  0x4e   :  { %533 = vmatpush.bf16.msrb.mxu0 %v3231_v40 }
  0x4f   :  { %547 = vmatpush.bf16.msrb.mxu1 %v3235_v41 }
  0x50   :  { %561 = vmatpush.bf16.msrb.mxu2 %v3237_v42 }
  0x51   :  { %575 = vmatpush.bf16.msrb.mxu3 %v3240_v43 }
  0x52   :  { %770 = vmatpush.bf16.msra.mxu0 %v3150_v3 }
  0x53   :  { %784 = vmatpush.bf16.msra.mxu1 %v3152_v7 }
  0x54   :  { %798 = vmatpush.bf16.msra.mxu2 %v3154_v8 }
  0x55   :  { %812 = vmatpush.bf16.msra.mxu3 %v3157_v12 }
  0x56   :  { %771 = vmatpush.bf16.msra.mxu0 %v3161_v16 }
  0x57   :  { %785 = vmatpush.bf16.msra.mxu1 %v3163_v17 }
  0x58   :  { %799 = vmatpush.bf16.msra.mxu2 %v3166_v21 }
  0x59   :  { %813 = vmatpush.bf16.msra.mxu3 %v3168_v25 }
  0x5a   :  { %772 = vmatpush.bf16.msra.mxu0 %v3171_v29 }
  0x5b   :  { %786 = vmatpush.bf16.msra.mxu1 %v3175_v33 }
  0x5c   :  { %800 = vmatpush.bf16.msra.mxu2 %v3177_v34 }
  0x5d   :  { %814 = vmatpush.bf16.msra.mxu3 %v3180_v38 }
  0x5e   :  { %773 = vmatpush.bf16.msra.mxu0 %v3183_v44 }
  0x5f   :  { %787 = vmatpush.bf16.msra.mxu1 %v3187_v45 }
  0x60   :  { %801 = vmatpush.bf16.msra.mxu2 %v3189_v46 }
  0x61   :  { %815 = vmatpush.bf16.msra.mxu3 %v3192_v50 }
  0x62   :  { %774 = vmatpush.bf16.msra.mxu0 %v3195_v56 }
  0x63   :  { %788 = vmatpush.bf16.msra.mxu1 %v3199_v57 }
  0x64   :  { %802 = vmatpush.bf16.msra.mxu2 %v3201_v58 }
  0x65   :  { %816 = vmatpush.bf16.msra.mxu3 %v3204_v62 }
  0x66   :  { %775 = vmatpush.bf16.msra.mxu0 %v3207_v5 }
  0x67   :  { %789 = vmatpush.bf16.msra.mxu1 %v3211_v6 }
  0x68   :  { %803 = vmatpush.bf16.msra.mxu2 %v3213_v9 }
  0x69   :  { %817 = vmatpush.bf16.msra.mxu3 %v3216_v14 }
  0x6a   :  { %776 = vmatpush.bf16.msra.mxu0 %v3219_v23 }
  0x6b   :  { %790 = vmatpush.bf16.msra.mxu1 %v3223_v24 }
  0x6c   :  { %804 = vmatpush.bf16.msra.mxu2 %v3225_v26 }
  0x6d   :  { %818 = vmatpush.bf16.msra.mxu3 %v3228_v31 }
  0x6e   :  { %777 = vmatpush.bf16.msra.mxu0 %v3231_v40 }
  0x6f   :  { %791 = vmatpush.bf16.msra.mxu1 %v3235_v41 }
  0x70   :  { %805 = vmatpush.bf16.msra.mxu2 %v3237_v42 }
  0x71   :  { %819 = vmatpush.bf16.msra.mxu3 %v3240_v43 }
  0xae   :  { %v291_v52 = vpop.f32.mrf.mxu0 }
  0xaf   :  { %v338_v53 = vadd.f32 %v291_v52, %v113_v49  ;;  %v305_v54 = vpop.f32.mrf.mxu1 }
  0xb0   :  { %v339_v59 = vadd.f32 %v305_v54, %v114_v51 }
  0xb1   :  { %v2510_v61 = vmul.f32 -1.442695, %v338_v53 }
  0xb2   :  { %v2511_v63 = vmul.f32 -1.442695, %v339_v59 }
  0xb3   :  { %2711 = vpow2.f32 %v2510_v61  ;;  %v120_v61 = vunpack.c.h.bf16 %v112_v19 }
  0xb4   :  { %2713 = vpow2.f32 %v2511_v63 }
  0xb6   :  { %v319_v4 = vpop.f32.mrf.mxu2  ;;  %v293_v13 = vpop.f32.mrf.mxu0 }
  0xb7   :  { %v340_v11 = vadd.f32 %v319_v4, %v115_v0  ;;  %v342_v15 = vadd.f32 %v293_v13, %v117_v1  ;;  %v307_v18 = vpop.f32.mrf.mxu1  ;;  %v333_v22 = vpop.f32.mrf.mxu3 }
  0xb8   :  { %v343_v27 = vadd.f32 %v307_v18, %v118_v2  ;;  %v341_v30 = vadd.f32 %v333_v22, %v116_v10 }
  0xb9   :  { %v2512_v20 = vmul.f32 -1.442695, %v340_v11  ;;  %v2712_v28 = vpop.eup %2711  ;;  %v2514_v36 = vmul.f32 -1.442695, %v342_v15 }
  0xba   :  { %v2714_v32 = vpop.eup %2713  ;;  %v3310_v35 = vadd.f32 1.0, %v2712_v28  ;;  %v2515_v47 = vmul.f32 -1.442695, %v343_v27  ;;  %v2513_v48 = vmul.f32 -1.442695, %v341_v30 }
  0xbb   :  { %2715 = vpow2.f32 %v2512_v20  ;;  %v3312_v39 = vadd.f32 1.0, %v2714_v32 }
  0xbc   :  { %2717 = vrcp.f32 %v3310_v35  ;;  %vm383_vm0 = vweird.f32 %v3310_v35  ;;  %v387_v27 = vand.u32 2147483647, %v3310_v35  ;;  %v389_v28 = vand.u32 2147483648, %v3310_v35 }
  0xbd   :  { %2719 = vrcp.f32 %v3312_v39  ;;  %vm398_vm1 = vweird.f32 %v3312_v39 }
  0xbe   :  { %v321_v49 = vpop.f32.mrf.mxu2  ;;  %2721 = vpow2.f32 %v2514_v36  ;;  %vm3356_vm8 = vcmp.eq.f32.partialorder %v387_v27, 8.507059e+37 }
  0xbf   :  { %v344_v51 = vadd.f32 %v321_v49, %v119_v37  ;;  %2723 = vpow2.f32 %v2515_v47  ;;  %v335_v2 = vpop.f32.mrf.mxu3 }
  0xc0   :  { %2725 = vpow2.f32 %v2513_v48  ;;  %v345_v15 = vadd.f32 %v335_v2, %v120_v61 }
  0xc1   :  { %v2716_v52 = vpop.eup %2715  ;;  %v2516_v53 = vmul.f32 -1.442695, %v344_v51 }
  0xc2   :  { %v372_v54 = vadd.f32 1.0, %v2716_v52  ;;  %v3316_v55 = vpop.eup %2717  ;;  %v2517_v37 = vmul.f32 -1.442695, %v345_v15 }
  0xc3   :  { %2727 = vpow2.f32 %v2516_v53  ;;  %v3318_v59 = vpop.eup %2719  ;;  %v379_v0 = vmul.f32 %v3316_v55, %v3310_v35  ;;  %vm384_vm3 = vweird.f32 %v3316_v55 }
  0xc4   :  { %2729 = vrcp.f32 %v372_v54  ;;  %v2722_v60 = vpop.eup %2721  ;;  %v394_v4 = vmul.f32 %v3318_v59, %v3312_v39  ;;  %v417_v49 = vand.u32 2147483647, %v372_v54  ;;  %v419_v51 = vand.u32 2147483648, %v372_v54  ;;  %vm3364_vm9 = vmor %vm383_vm0, %vm384_vm3 }
  0xc5   :  { %v2724_v63 = vpop.eup %2723  ;;  %v3322_v1 = vadd.f32 1.0, %v2722_v60  ;;  %v380_v19 = vsub.f32 1.0, %v379_v0  ;;  %v404_v0 = vand.u32 2147483648, %v3312_v39  ;;  %vm399_vm4 = vweird.f32 %v3318_v59 }
  0xc6   :  { %v3326_v10 = vadd.f32 1.0, %v2724_v63  ;;  %v2726_v11 = vpop.eup %2725  ;;  %v395_v20 = vsub.f32 1.0, %v394_v4  ;;  %v402_v63 = vand.u32 2147483647, %v3312_v39  ;;  %vm413_vm5 = vweird.f32 %v372_v54  ;;  %vm3378_vm11 = vmor %vm398_vm1, %vm399_vm4 }
  0xc7   :  { %2731 = vrcp.f32 %v3322_v1  ;;  %v3336_v36 = vadd.f32 1.0, %v2726_v11  ;;  %v381_v48 = vmul.f32 %v3316_v55, %v380_v19  ;;  %vm418_vm7 = vcmp.eq.f32.partialorder %v417_v49, 8.507059e+37 }
  0xc8   :  { %2733 = vrcp.f32 %v3326_v10  ;;  %v396_v53 = vmul.f32 %v3318_v59, %v395_v20  ;;  %v420_v11 = vor.u32 1.1754944e-38, %v419_v51  ;;  %vm3368_vm10 = vcmp.eq.f32.partialorder %v402_v63, 8.507059e+37 }
  0xc9   :  { %v2728_v13 = vpop.eup %2727  ;;  %v382_v15 = vadd.f32 %v3316_v55, %v381_v48  ;;  %v405_v35 = vor.u32 1.1754944e-38, %v404_v0  ;;  %vm443_vm12 = vweird.f32 %v3322_v1  ;;  %v447_v51 = vand.u32 2147483647, %v3322_v1 }
  0xca   :  { %v2730_v18 = vpop.eup %2729  ;;  %v3333_v30 = vadd.f32 1.0, %v2728_v13  ;;  %v397_v19 = vadd.f32 %v3318_v59, %v396_v53  ;;  %vm458_vm13 = vweird.f32 %v3326_v10 }
  0xcb   :  { %v409_v22 = vmul.f32 %v2730_v18, %v372_v54  ;;  %vm414_vm2 = vweird.f32 %v2730_v18 }
  0xcc   :  { %2735 = vrcp.f32 %v3333_v30  ;;  %vm415_vm6 = vmor %vm413_vm5, %vm414_vm2  ;;  %v401_v39 = vsel %vm3378_vm11, %v3318_v59, %v397_v19  ;;  %v462_v59 = vand.u32 2147483647, %v3326_v10  ;;  %v464_v19 = vand.u32 2147483648, %v3326_v10 }
  0xcd   :  { %v410_v32 = vsub.f32 1.0, %v409_v22  ;;  %v3338_v47 = vpop.eup %2731  ;;  %2737 = vrcp.f32 %v3336_v36  ;;  %vm473_vm0 = vweird.f32 %v3333_v30 }
  0xce   :  { %v3342_v52 = vpop.eup %2733  ;;  %v439_v61 = vmul.f32 %v3338_v47, %v3322_v1  ;;  %2739 = vpow2.f32 %v2517_v37  ;;  %vm444_vm1 = vweird.f32 %v3338_v47  ;;  %v465_v43 = vor.u32 1.1754944e-38, %v464_v19 }
  0xcf   :  { %v411_v60 = vmul.f32 %v2730_v18, %v410_v32  ;;  %v454_v2 = vmul.f32 %v3342_v52, %v3326_v10  ;;  %vm459_vm14 = vweird.f32 %v3342_v52  ;;  %vm445_vm5 = vmor %vm443_vm12, %vm444_vm1 }
  0xd0   :  { %v440_v22 = vsub.f32 1.0, %v439_v61  ;;  %v386_v61 = vsel %vm3364_vm9, %v3316_v55, %v382_v15  ;;  %vm3407_vm2 = vmor %vm458_vm13, %vm459_vm14 }
  0xd1   :  { %v412_v4 = vadd.f32 %v2730_v18, %v411_v60  ;;  %v455_v13 = vsub.f32 1.0, %v454_v2  ;;  %v390_v60 = vor.u32 1.1754944e-38, %v389_v28 }
  0xd2   :  { %v2736_v32 = vpop.eup %2735  ;;  %v441_v63 = vmul.f32 %v3338_v47, %v440_v22 }
  0xd3   :  { %v416_v20 = vsel %vm415_vm6, %v2730_v18, %v412_v4  ;;  %v456_v27 = vmul.f32 %v3342_v52, %v455_v13  ;;  %v469_v48 = vmul.f32 %v2736_v32, %v3333_v30  ;;  %v3385_v53 = vpop.eup %2737  ;;  %vm474_vm15 = vweird.f32 %v2736_v32 }
  0xd4   :  { %v421_v54 = vsel %vm418_vm7, %v420_v11, %v416_v20  ;;  %v2740_v0 = vpop.eup %2739  ;;  %v477_v4 = vand.u32 2147483647, %v3333_v30  ;;  %v479_v11 = vand.u32 2147483648, %v3333_v30  ;;  %v424_v15 = vmul.f32 %v3385_v53, %v3336_v36  ;;  %vm475_vm3 = vmor %vm473_vm0, %vm474_vm15 }
  0xd5   :  { %v498_v18 = vmul.f32 2.0, %v421_v54  ;;  %v470_v2 = vsub.f32 1.0, %v469_v48  ;;  %v457_v20 = vadd.f32 %v3342_v52, %v456_v27  ;;  %v377_v55 = vadd.f32 1.0, %v2740_v0 }
  0xd6   :  { %v442_v22 = vadd.f32 %v3338_v47, %v441_v63  ;;  %v391_v27 = vsel %vm3356_vm8, %v390_v60, %v386_v61  ;;  %v406_v48 = vsel %vm3368_vm10, %v405_v35, %v401_v39  ;;  %v449_v30 = vand.u32 2147483648, %v3322_v1 }
  0xd7   :  { %v2518_v13 = vadd.f32 -1.0, %v498_v18  ;;  %v471_v54 = vmul.f32 %v2736_v32, %v470_v2  ;;  %2741 = vrcp.f32 %v377_v55  ;;  %v480_v28 = vor.u32 1.1754944e-38, %v479_v11 }
  0xd8   :  { %v461_v10 = vsel %vm3407_vm2, %v3342_v52, %v457_v20  ;;  %vm478_vm4 = vcmp.eq.f32.partialorder %v477_v4, 8.507059e+37  ;;  %v425_v0 = vsub.f32 1.0, %v424_v15  ;;  %v502_v37 = vmul.f32 0.0, %v406_v48 }
  0xd9   :  { %v472_v18 = vadd.f32 %v2736_v32, %v471_v54  ;;  %v504_v2 = vmul.f32 %v2518_v13, %v391_v27  ;;  %v446_v35 = vsel %vm445_vm5, %v3338_v47, %v442_v22  ;;  %vm463_vm6 = vcmp.eq.f32.partialorder %v462_v59, 8.507059e+37 }
  0xda   :  { %v450_v39 = vor.u32 1.1754944e-38, %v449_v30  ;;  %v466_v11 = vsel %vm463_vm6, %v465_v43, %v461_v10  ;;  %vm448_vm7 = vcmp.eq.f32.partialorder %v447_v51, 8.507059e+37  ;;  %vm428_vm8 = vweird.f32 %v3336_v36 }
  0xdb   :  { %v476_v63 = vsel %vm475_vm3, %v2736_v32, %v472_v18  ;;  %v3423_v52 = vadd.f32 %v504_v2, %v502_v37  ;;  %v426_v32 = vmul.f32 %v3385_v53, %v425_v0  ;;  %v503_v1 = vmul.f32 0.0, %v466_v11 }
  0xdc   :  { %v481_v60 = vsel %vm478_vm4, %v480_v28, %v476_v63  ;;  %v451_v4 = vsel %vm448_vm7, %v450_v39, %v446_v35  ;;  %vm429_vm9 = vweird.f32 %v3385_v53  ;;  %v432_v47 = vand.u32 2147483647, %v3336_v36 }
  0xdd   :  { %v499_v61 = vmul.f32 2.0, %v481_v60  ;;  %v2742_v54 = vpop.eup %2741  ;;  %v434_v59 = vand.u32 2147483648, %v3336_v36  ;;  %2743 = vtanh.f32 %v3423_v52  ;;  %vm488_vm10 = vweird.f32 %v377_v55  ;;  %vm430_vm12 = vmor %vm428_vm8, %vm429_vm9 }
  0xde   :  { %v484_v13 = vmul.f32 %v2742_v54, %v377_v55  ;;  %v427_v22 = vadd.f32 %v3385_v53, %v426_v32  ;;  %vm489_vm11 = vweird.f32 %v2742_v54  ;;  %v494_v18 = vand.u32 2147483648, %v377_v55 }
  0xdf   :  { %v2519_v49 = vadd.f32 -1.0, %v499_v61  ;;  %v492_v48 = vand.u32 2147483647, %v377_v55  ;;  %v435_v30 = vor.u32 1.1754944e-38, %v434_v59  ;;  %vm490_vm13 = vmor %vm488_vm10, %vm489_vm11  ;;  %vm433_vm14 = vcmp.eq.f32.partialorder %v432_v47, 8.507059e+37  ;;  %v513_v55 = vld [vmem:[#allocation4 + $0x20] sm:$0xff] }
  0xe0   :  { %v485_v15 = vsub.f32 1.0, %v484_v13  ;;  %v431_v28 = vsel %vm430_vm12, %v3385_v53, %v427_v22  ;;  %v495_v63 = vor.u32 1.1754944e-38, %v494_v18  ;;  %v4560_v53 = vld [vmem:[#allocation16_spill] sm:$0xff]  ;;  %v517_v61 = vunpack.c.l.bf16 %v513_v55 }
  0xe1   :  { %v505_v20 = vmul.f32 %v2519_v49, %v451_v4  ;;  %vm493_vm15 = vcmp.eq.f32.partialorder %v492_v48, 8.507059e+37  ;;  %v436_v0 = vsel %vm433_vm14, %v435_v30, %v431_v28  ;;  %v518_v39 = vunpack.c.h.bf16 %v513_v55  ;;  %v514_v4 = vld [vmem:[#allocation4 + $0x28] sm:$0xff]  ;;  %v515_v13 = vld [vmem:[#allocation4 + $0x30] sm:$0xff] }
  0xe2   :  { %v486_v51 = vmul.f32 %v2742_v54, %v485_v15  ;;  %v519_v15 = vunpack.c.l.bf16 %v514_v4  ;;  %v521_v47 = vunpack.c.l.bf16 %v515_v13  ;;  %v522_v59 = vunpack.c.h.bf16 %v515_v13 }
  0xe3   :  { %v3430_v19 = vadd.f32 %v505_v20, %v503_v1  ;;  %v2744_v10 = vpop.eup %2743  ;;  %v520_v22 = vunpack.c.h.bf16 %v514_v4 }
  0xe4   :  { %v487_v27 = vadd.f32 %v2742_v54, %v486_v51  ;;  %v510_v60 = vmul.f32 %v2744_v10, %v436_v0  ;;  %v516_v10 = vld [vmem:[#allocation4 + $0x38] sm:$0xff] }
  0xe5   :  { %2745 = vtanh.f32 %v3430_v19 }
  0xe6   :  { %v491_v36 = vsel %vm490_vm13, %v2742_v54, %v487_v27 }
  0xe7   :  { %v496_v43 = vsel %vm493_vm15, %v495_v63, %v491_v36 }
  0xeb   :  { %v2746_v2 = vpop.eup %2745 }
  0xec   :  { %v511_v37 = vmul.f32 %v2746_v2, %v496_v43 }
  0xee   :  { %v525_v35 = vpack.c.bf16 %v511_v37, %v510_v60 }
  0xf0   :  { %534 = vmatmul.bf16.vlgmr.msrb.gmra.mxu0 %v525_v35  ;;  %548 = vmatmul.bf16.vlgmr.msrb.gmra.mxu1 %v525_v35 }
  0xf1   :  { %562 = vmatmul.bf16.vlgmr.msrb.gmra.mxu2 %v525_v35  ;;  %576 = vmatmul.bf16.vlgmr.msrb.gmra.mxu3 %v525_v35  ;;  %v523_v35 = vunpack.c.l.bf16 %v516_v10 }
  0xf2   :  { %1014 = vmatpush.bf16.msrb.mxu0 %v3150_v3  ;;  %1028 = vmatpush.bf16.msrb.mxu1 %v3152_v7 }
  0xf3   :  { %1042 = vmatpush.bf16.msrb.mxu2 %v3154_v8  ;;  %1056 = vmatpush.bf16.msrb.mxu3 %v3157_v12 }
  0xf6   :  { %1015 = vmatpush.bf16.msrb.mxu0 %v3161_v16  ;;  %1029 = vmatpush.bf16.msrb.mxu1 %v3163_v17 }
  0xf7   :  { %1043 = vmatpush.bf16.msrb.mxu2 %v3166_v21  ;;  %1057 = vmatpush.bf16.msrb.mxu3 %v3168_v25 }
  0xfa   :  { %1016 = vmatpush.bf16.msrb.mxu0 %v3171_v29  ;;  %1030 = vmatpush.bf16.msrb.mxu1 %v3175_v33 }
  0xfb   :  { %1044 = vmatpush.bf16.msrb.mxu2 %v3177_v34  ;;  %1058 = vmatpush.bf16.msrb.mxu3 %v3180_v38 }
  0xfe   :  { %1017 = vmatpush.bf16.msrb.mxu0 %v3183_v44  ;;  %1031 = vmatpush.bf16.msrb.mxu1 %v3187_v45 }
  0xff   :  { %1045 = vmatpush.bf16.msrb.mxu2 %v3189_v46  ;;  %1059 = vmatpush.bf16.msrb.mxu3 %v3192_v50 }
 0x102   :  { %1018 = vmatpush.bf16.msrb.mxu0 %v3195_v56  ;;  %1032 = vmatpush.bf16.msrb.mxu1 %v3199_v57 }
 0x103   :  { %1046 = vmatpush.bf16.msrb.mxu2 %v3201_v58  ;;  %1060 = vmatpush.bf16.msrb.mxu3 %v3204_v62 }
 0x106   :  { %1019 = vmatpush.bf16.msrb.mxu0 %v3207_v5  ;;  %1033 = vmatpush.bf16.msrb.mxu1 %v3211_v6 }
 0x107   :  { %1047 = vmatpush.bf16.msrb.mxu2 %v3213_v9  ;;  %1061 = vmatpush.bf16.msrb.mxu3 %v3216_v14 }
 0x10a   :  { %1020 = vmatpush.bf16.msrb.mxu0 %v3219_v23  ;;  %1034 = vmatpush.bf16.msrb.mxu1 %v3223_v24 }
 0x10b   :  { %1048 = vmatpush.bf16.msrb.mxu2 %v3225_v26  ;;  %1062 = vmatpush.bf16.msrb.mxu3 %v3228_v31 }
 0x10e   :  { %1021 = vmatpush.bf16.msrb.mxu0 %v3231_v40  ;;  %1035 = vmatpush.bf16.msrb.mxu1 %v3235_v41 }
 0x10f   :  { %1049 = vmatpush.bf16.msrb.mxu2 %v3237_v42  ;;  %1063 = vmatpush.bf16.msrb.mxu3 %v4560_v53 }
 0x16d   :  { %v535_v11 = vpop.f32.mrf.mxu0  ;;  %v549_v54 = vpop.f32.mrf.mxu1 }
 0x16e   :  { %v582_v49 = vadd.f32 %v535_v11, %v517_v61  ;;  %v583_v32 = vadd.f32 %v549_v54, %v518_v39 }
 0x170   :  { %v2520_v1 = vmul.f32 -1.442695, %v582_v49  ;;  %v2521_v20 = vmul.f32 -1.442695, %v583_v32 }
 0x172   :  { %2747 = vpow2.f32 %v2520_v1 }
 0x173   :  { %2749 = vpow2.f32 %v2521_v20 }
 0x174   :  { %v563_v51 = vpop.f32.mrf.mxu2  ;;  %v577_v18 = vpop.f32.mrf.mxu3 }
 0x175   :  { %v584_v27 = vadd.f32 %v563_v51, %v519_v15  ;;  %v537_v48 = vpop.f32.mrf.mxu0  ;;  %v551_v30 = vpop.f32.mrf.mxu1  ;;  %v585_v0 = vadd.f32 %v577_v18, %v520_v22  ;;  %v524_v15 = vunpack.c.h.bf16 %v516_v10 }
 0x176   :  { %v586_v28 = vadd.f32 %v537_v48, %v521_v47  ;;  %v587_v36 = vadd.f32 %v551_v30, %v522_v59 }
 0x177   :  { %v2522_v63 = vmul.f32 -1.442695, %v584_v27  ;;  %v2523_v39 = vmul.f32 -1.442695, %v585_v0 }
 0x178   :  { %v2748_v2 = vpop.eup %2747  ;;  %v2524_v37 = vmul.f32 -1.442695, %v586_v28  ;;  %v2525_v61 = vmul.f32 -1.442695, %v587_v36 }
 0x179   :  { %v2750_v43 = vpop.eup %2749  ;;  %v3468_v60 = vadd.f32 1.0, %v2748_v2  ;;  %2751 = vpow2.f32 %v2522_v63 }
 0x17a   :  { %v3470_v55 = vadd.f32 1.0, %v2750_v43 }
 0x17b   :  { %2753 = vrcp.f32 %v3468_v60  ;;  %vm627_vm0 = vweird.f32 %v3468_v60  ;;  %v631_v0 = vand.u32 2147483647, %v3468_v60 }
 0x17c   :  { %2755 = vrcp.f32 %v3470_v55  ;;  %v565_v11 = vpop.f32.mrf.mxu2  ;;  %v579_v22 = vpop.f32.mrf.mxu3  ;;  %vm642_vm8 = vweird.f32 %v3470_v55 }
 0x17d   :  { %2757 = vpow2.f32 %v2524_v37  ;;  %v588_v54 = vadd.f32 %v565_v11, %v523_v35  ;;  %v589_v28 = vadd.f32 %v579_v22, %v524_v15  ;;  %v633_v37 = vand.u32 2147483648, %v3468_v60 }
 0x17e   :  { %2759 = vpow2.f32 %v2525_v61  ;;  %v646_v22 = vand.u32 2147483647, %v3470_v55  ;;  %vm3513_vm7 = vcmp.eq.f32.partialorder %v631_v0, 8.507059e+37 }
 0x17f   :  { %v2752_v49 = vpop.eup %2751  ;;  %v2526_v32 = vmul.f32 -1.442695, %v588_v54  ;;  %2761 = vpow2.f32 %v2523_v39  ;;  %v2527_v39 = vmul.f32 -1.442695, %v589_v28 }
 0x180   :  { %v616_v4 = vadd.f32 1.0, %v2752_v49  ;;  %vm3526_vm10 = vcmp.eq.f32.partialorder %v646_v22, 8.507059e+37 }
 0x181   :  { %v3474_v13 = vpop.eup %2753  ;;  %2763 = vpow2.f32 %v2526_v32 }
 0x182   :  { %v3476_v1 = vpop.eup %2755  ;;  %2765 = vrcp.f32 %v616_v4  ;;  %v623_v59 = vmul.f32 %v3474_v13, %v3468_v60  ;;  %v661_v49 = vand.u32 2147483647, %v616_v4  ;;  %v663_v32 = vand.u32 2147483648, %v616_v4 }
 0x183   :  { %v2758_v20 = vpop.eup %2757  ;;  %v638_v18 = vmul.f32 %v3476_v1, %v3470_v55  ;;  %vm628_vm2 = vweird.f32 %v3474_v13  ;;  %vm643_vm3 = vweird.f32 %v3476_v1  ;;  %vm657_vm4 = vweird.f32 %v616_v4 }
 0x184   :  { %v2760_v47 = vpop.eup %2759  ;;  %v3480_v51 = vadd.f32 1.0, %v2758_v20  ;;  %v624_v10 = vsub.f32 1.0, %v623_v59  ;;  %vm662_vm6 = vcmp.eq.f32.partialorder %v661_v49, 8.507059e+37  ;;  %v664_v28 = vor.u32 1.1754944e-38, %v663_v32  ;;  %vm3522_vm9 = vmor %vm627_vm0, %vm628_vm2 }
 0x185   :  { %v3484_v27 = vadd.f32 1.0, %v2760_v47  ;;  %v2762_v48 = vpop.eup %2761  ;;  %v639_v63 = vsub.f32 1.0, %v638_v18  ;;  %v648_v18 = vand.u32 2147483648, %v3470_v55  ;;  %vm3534_vm11 = vmor %vm642_vm8, %vm643_vm3 }
 0x186   :  { %2767 = vrcp.f32 %v3480_v51  ;;  %v3493_v61 = vadd.f32 1.0, %v2762_v48  ;;  %v625_v54 = vmul.f32 %v3474_v13, %v624_v10  ;;  %vm687_vm12 = vweird.f32 %v3480_v51 }
 0x187   :  { %v2764_v30 = vpop.eup %2763  ;;  %2769 = vrcp.f32 %v3484_v27  ;;  %v640_v15 = vmul.f32 %v3476_v1, %v639_v63  ;;  %v649_v60 = vor.u32 1.1754944e-38, %v648_v18  ;;  %v691_v49 = vand.u32 2147483647, %v3480_v51 }
 0x188   :  { %v2766_v36 = vpop.eup %2765  ;;  %v3490_v43 = vadd.f32 1.0, %v2764_v30  ;;  %v626_v63 = vadd.f32 %v3474_v13, %v625_v54  ;;  %vm702_vm13 = vweird.f32 %v3484_v27 }
 0x189   :  { %v653_v2 = vmul.f32 %v2766_v36, %v616_v4  ;;  %vm658_vm1 = vweird.f32 %v2766_v36 }
 0x18a   :  { %2771 = vrcp.f32 %v3490_v43  ;;  %vm659_vm5 = vmor %vm657_vm4, %vm658_vm1  ;;  %vm717_vm0 = vweird.f32 %v3490_v43 }
 0x18b   :  { %v654_v35 = vsub.f32 1.0, %v653_v2  ;;  %2773 = vrcp.f32 %v3493_v61  ;;  %v641_v2 = vadd.f32 %v3476_v1, %v640_v15  ;;  %v630_v15 = vsel %vm3522_vm9, %v3474_v13, %v626_v63 }
 0x18c   :  { %v3495_v11 = vpop.eup %2767  ;;  %2775 = vpow2.f32 %v2527_v39 }
 0x18d   :  { %v3499_v20 = vpop.eup %2769  ;;  %v655_v47 = vmul.f32 %v2766_v36, %v654_v35  ;;  %v683_v59 = vmul.f32 %v3495_v11, %v3480_v51  ;;  %vm688_vm1 = vweird.f32 %v3495_v11 }
 0x18e   :  { %v698_v48 = vmul.f32 %v3499_v20, %v3484_v27  ;;  %vm703_vm14 = vweird.f32 %v3499_v20 }
 0x18f   :  { %v656_v30 = vadd.f32 %v2766_v36, %v655_v47  ;;  %v684_v53 = vsub.f32 1.0, %v683_v59  ;;  %v634_v47 = vor.u32 1.1754944e-38, %v633_v37  ;;  %v645_v59 = vsel %vm3534_vm11, %v3476_v1, %v641_v2  ;;  %vm3563_vm2 = vmor %vm702_vm13, %vm703_vm14 }
 0x190   :  { %v699_v10 = vsub.f32 1.0, %v698_v48  ;;  %v2772_v42 = vpop.eup %2771  ;;  %v706_v1 = vand.u32 2147483647, %v3484_v27 }
 0x191   :  { %v660_v35 = vsel %vm659_vm5, %v2766_v36, %v656_v30  ;;  %v713_v37 = vmul.f32 %v2772_v42, %v3490_v43  ;;  %v3541_v32 = vpop.eup %2773  ;;  %v685_v22 = vmul.f32 %v3495_v11, %v684_v53  ;;  %vm718_vm15 = vweird.f32 %v2772_v42  ;;  %vm689_vm5 = vmor %vm687_vm12, %vm688_vm1 }
 0x192   :  { %v665_v4 = vsel %vm662_vm6, %v664_v28, %v660_v35  ;;  %v700_v54 = vmul.f32 %v3499_v20, %v699_v10  ;;  %v2776_v18 = vpop.eup %2775  ;;  %v721_v30 = vand.u32 2147483647, %v3490_v43  ;;  %v723_v28 = vand.u32 2147483648, %v3490_v43  ;;  %vm719_vm3 = vmor %vm717_vm0, %vm718_vm15 }
 0x193   :  { %v742_v0 = vmul.f32 2.0, %v665_v4  ;;  %v714_v48 = vsub.f32 1.0, %v713_v37  ;;  %v621_v13 = vadd.f32 1.0, %v2776_v18  ;;  %v668_v63 = vmul.f32 %v3541_v32, %v3493_v61 }
 0x194   :  { %v701_v35 = vadd.f32 %v3499_v20, %v700_v54  ;;  %v708_v53 = vand.u32 2147483648, %v3484_v27  ;;  %v686_v2 = vadd.f32 %v3495_v11, %v685_v22  ;;  %v635_v54 = vsel %vm3513_vm7, %v634_v47, %v630_v15 }
 0x195   :  { %v2528_v10 = vadd.f32 -1.0, %v742_v0  ;;  %v715_v4 = vmul.f32 %v2772_v42, %v714_v48  ;;  %2777 = vrcp.f32 %v621_v13  ;;  %v650_v37 = vsel %vm3526_vm10, %v649_v60, %v645_v59 }
 0x196   :  { %v693_v43 = vand.u32 2147483648, %v3480_v51  ;;  %v724_v55 = vor.u32 1.1754944e-38, %v723_v28  ;;  %v705_v27 = vsel %vm3563_vm2, %v3499_v20, %v701_v35  ;;  %vm722_vm4 = vcmp.eq.f32.partialorder %v721_v30, 8.507059e+37 }
 0x197   :  { %v716_v0 = vadd.f32 %v2772_v42, %v715_v4  ;;  %v748_v48 = vmul.f32 %v2528_v10, %v635_v54  ;;  %v669_v18 = vsub.f32 1.0, %v668_v63  ;;  %v709_v41 = vor.u32 1.1754944e-38, %v708_v53 }
 0x198   :  { %v746_v36 = vmul.f32 %v650_v37, %v3423_v52  ;;  %v690_v60 = vsel %vm689_vm5, %v3495_v11, %v686_v2  ;;  %vm707_vm6 = vcmp.eq.f32.partialorder %v706_v1, 8.507059e+37  ;;  %v694_v59 = vor.u32 1.1754944e-38, %v693_v43 }
 0x199   :  { %v720_v22 = vsel %vm719_vm3, %v2772_v42, %v716_v0  ;;  %v710_v28 = vsel %vm707_vm6, %v709_v41, %v705_v27  ;;  %vm692_vm7 = vcmp.eq.f32.partialorder %v691_v49, 8.507059e+37  ;;  %v670_v30 = vmul.f32 %v3541_v32, %v669_v18 }
 0x19a   :  { %v725_v47 = vsel %vm722_vm4, %v724_v55, %v720_v22  ;;  %v3580_v42 = vadd.f32 %v748_v48, %v746_v36  ;;  %v695_v10 = vsel %vm692_vm7, %v694_v59, %v690_v60  ;;  %v747_v35 = vmul.f32 %v710_v28, %v3430_v19  ;;  %v757_v60 = vld [vmem:[#allocation4 + $0x40] sm:$0xff] }
 0x19b   :  { %v743_v15 = vmul.f32 2.0, %v725_v47  ;;  %v2778_v4 = vpop.eup %2777  ;;  %vm673_vm8 = vweird.f32 %v3541_v32  ;;  %v671_v49 = vadd.f32 %v3541_v32, %v670_v30  ;;  %vm672_vm10 = vweird.f32 %v3493_v61 }
 0x19c   :  { %v728_v51 = vmul.f32 %v2778_v4, %v621_v13  ;;  %2779 = vtanh.f32 %v3580_v42  ;;  %vm733_vm9 = vweird.f32 %v2778_v4  ;;  %v678_v1 = vand.u32 2147483648, %v3493_v61  ;;  %vm674_vm12 = vmor %vm672_vm10, %vm673_vm8 }
 0x19d   :  { %v2529_v20 = vadd.f32 -1.0, %v743_v15  ;;  %v738_v2 = vand.u32 2147483648, %v621_v13  ;;  %vm732_vm11 = vweird.f32 %v621_v13  ;;  %v676_v19 = vand.u32 2147483647, %v3493_v61  ;;  %v4571_v61 = vld [vmem:[#allocation14_spill] sm:$0xff] }
 0x19e   :  { %v729_v53 = vsub.f32 1.0, %v728_v51  ;;  %v736_v0 = vand.u32 2147483647, %v621_v13  ;;  %vm734_vm13 = vmor %vm732_vm11, %vm733_vm9  ;;  %v675_v54 = vsel %vm674_vm12, %v3541_v32, %v671_v49  ;;  %v679_v55 = vor.u32 1.1754944e-38, %v678_v1  ;;  %v4572_v32 = vld [vmem:[#allocation15_spill] sm:$0xff]  ;;  %v4573_v13 = vld [vmem:[#allocation16_spill] sm:$0xff] }
 0x19f   :  { %v749_v63 = vmul.f32 %v2529_v20, %v695_v10  ;;  %v739_v27 = vor.u32 1.1754944e-38, %v738_v2  ;;  %vm677_vm14 = vcmp.eq.f32.partialorder %v676_v19, 8.507059e+37  ;;  %v761_v15 = vunpack.c.l.bf16 %v757_v60  ;;  %v758_v10 = vld [vmem:[#allocation4 + $0x48] sm:$0xff]  ;;  %v759_v51 = vld [vmem:[#allocation4 + $0x50] sm:$0xff] }
 0x1a0   :  { %v730_v11 = vmul.f32 %v2778_v4, %v729_v53  ;;  %vm737_vm15 = vcmp.eq.f32.partialorder %v736_v0, 8.507059e+37  ;;  %v680_v48 = vsel %vm677_vm14, %v679_v55, %v675_v54  ;;  %v762_v59 = vunpack.c.h.bf16 %v757_v60  ;;  %v760_v55 = vld [vmem:[#allocation4 + $0x58] sm:$0xff] }
 0x1a1   :  { %v3585_v52 = vadd.f32 %v749_v63, %v747_v35  ;;  %v763_v53 = vunpack.c.l.bf16 %v758_v10  ;;  %v766_v49 = vunpack.c.h.bf16 %v759_v51  ;;  %v764_v2 = vunpack.c.h.bf16 %v758_v10 }
 0x1a2   :  { %v731_v39 = vadd.f32 %v2778_v4, %v730_v11  ;;  %v2780_v43 = vpop.eup %2779  ;;  %v765_v11 = vunpack.c.l.bf16 %v759_v51 }
 0x1a3   :  { %2781 = vtanh.f32 %v3585_v52  ;;  %v754_v41 = vmul.f32 %v2780_v43, %v680_v48 }
 0x1a4   :  { %v735_v37 = vsel %vm734_vm13, %v2778_v4, %v731_v39 }
 0x1a5   :  { %v740_v18 = vsel %vm737_vm15, %v739_v27, %v735_v37 }
 0x1a9   :  { %v2782_v22 = vpop.eup %2781 }
 0x1aa   :  { %v755_v47 = vmul.f32 %v2782_v22, %v740_v18 }
 0x1ac   :  { %v769_v36 = vpack.c.bf16 %v755_v47, %v754_v41 }
 0x1ae   :  { %778 = vmatmul.bf16.vlgmr.msra.gmra.mxu0 %v769_v36  ;;  %792 = vmatmul.bf16.vlgmr.msra.gmra.mxu1 %v769_v36 }
 0x1af   :  { %806 = vmatmul.bf16.vlgmr.msra.gmra.mxu2 %v769_v36  ;;  %820 = vmatmul.bf16.vlgmr.msra.gmra.mxu3 %v769_v36  ;;  %v767_v36 = vunpack.c.l.bf16 %v760_v55 }
 0x1b0   :  { %1258 = vmatpush.bf16.msra.mxu0 %v3150_v3  ;;  %1272 = vmatpush.bf16.msra.mxu1 %v3152_v7 }
 0x1b1   :  { %1286 = vmatpush.bf16.msra.mxu2 %v3154_v8  ;;  %1300 = vmatpush.bf16.msra.mxu3 %v3157_v12 }
 0x1b4   :  { %1259 = vmatpush.bf16.msra.mxu0 %v3161_v16  ;;  %1273 = vmatpush.bf16.msra.mxu1 %v3163_v17 }
 0x1b5   :  { %1287 = vmatpush.bf16.msra.mxu2 %v3166_v21  ;;  %1301 = vmatpush.bf16.msra.mxu3 %v3168_v25 }
 0x1b8   :  { %1260 = vmatpush.bf16.msra.mxu0 %v3171_v29  ;;  %1274 = vmatpush.bf16.msra.mxu1 %v3175_v33 }
 0x1b9   :  { %1288 = vmatpush.bf16.msra.mxu2 %v3177_v34  ;;  %1302 = vmatpush.bf16.msra.mxu3 %v3180_v38 }
 0x1bc   :  { %1261 = vmatpush.bf16.msra.mxu0 %v3183_v44  ;;  %1275 = vmatpush.bf16.msra.mxu1 %v3187_v45 }
 0x1bd   :  { %1289 = vmatpush.bf16.msra.mxu2 %v3189_v46  ;;  %1303 = vmatpush.bf16.msra.mxu3 %v3192_v50 }
 0x1c0   :  { %1262 = vmatpush.bf16.msra.mxu0 %v3195_v56  ;;  %1276 = vmatpush.bf16.msra.mxu1 %v3199_v57 }
 0x1c1   :  { %1290 = vmatpush.bf16.msra.mxu2 %v3201_v58  ;;  %1304 = vmatpush.bf16.msra.mxu3 %v3204_v62 }
 0x1c4   :  { %1263 = vmatpush.bf16.msra.mxu0 %v3207_v5  ;;  %1277 = vmatpush.bf16.msra.mxu1 %v3211_v6 }
 0x1c5   :  { %1291 = vmatpush.bf16.msra.mxu2 %v3213_v9  ;;  %1305 = vmatpush.bf16.msra.mxu3 %v3216_v14 }
 0x1c8   :  { %1264 = vmatpush.bf16.msra.mxu0 %v3219_v23  ;;  %1278 = vmatpush.bf16.msra.mxu1 %v3223_v24 }
 0x1c9   :  { %1292 = vmatpush.bf16.msra.mxu2 %v3225_v26  ;;  %1306 = vmatpush.bf16.msra.mxu3 %v3228_v31 }
 0x1cc   :  { %1265 = vmatpush.bf16.msra.mxu0 %v3231_v40  ;;  %1279 = vmatpush.bf16.msra.mxu1 %v4571_v61 }
 0x1cd   :  { %1293 = vmatpush.bf16.msra.mxu2 %v4572_v32  ;;  %1307 = vmatpush.bf16.msra.mxu3 %v4573_v13 }
 0x22b   :  { %v779_v28 = vpop.f32.mrf.mxu0  ;;  %v793_v4 = vpop.f32.mrf.mxu1 }
 0x22c   :  { %v826_v20 = vadd.f32 %v779_v28, %v761_v15  ;;  %v827_v30 = vadd.f32 %v793_v4, %v762_v59 }
 0x22e   :  { %v2530_v35 = vmul.f32 -1.442695, %v826_v20  ;;  %v2531_v63 = vmul.f32 -1.442695, %v827_v30 }
 0x230   :  { %2783 = vpow2.f32 %v2530_v35 }
 0x231   :  { %2785 = vpow2.f32 %v2531_v63 }
 0x232   :  { %v807_v1 = vpop.f32.mrf.mxu2  ;;  %v821_v19 = vpop.f32.mrf.mxu3 }
 0x233   :  { %v828_v39 = vadd.f32 %v807_v1, %v763_v53  ;;  %v781_v0 = vpop.f32.mrf.mxu0  ;;  %v795_v54 = vpop.f32.mrf.mxu1  ;;  %v829_v48 = vadd.f32 %v821_v19, %v764_v2  ;;  %v768_v53 = vunpack.c.h.bf16 %v760_v55 }
 0x234   :  { %v830_v37 = vadd.f32 %v781_v0, %v765_v11  ;;  %v831_v43 = vadd.f32 %v795_v54, %v766_v49 }
 0x235   :  { %v2532_v27 = vmul.f32 -1.442695, %v828_v39  ;;  %v2533_v59 = vmul.f32 -1.442695, %v829_v48 }
 0x236   :  { %v2784_v22 = vpop.eup %2783  ;;  %v2534_v47 = vmul.f32 -1.442695, %v830_v37  ;;  %v2535_v15 = vmul.f32 -1.442695, %v831_v43 }
 0x237   :  { %v2786_v18 = vpop.eup %2785  ;;  %v3626_v41 = vadd.f32 1.0, %v2784_v22  ;;  %2787 = vpow2.f32 %v2532_v27 }
 0x238   :  { %v3628_v60 = vadd.f32 1.0, %v2786_v18 }
 0x239   :  { %2789 = vrcp.f32 %v3626_v41  ;;  %vm871_vm0 = vweird.f32 %v3626_v41  ;;  %v875_v48 = vand.u32 2147483647, %v3626_v41 }
 0x23a   :  { %2791 = vrcp.f32 %v3628_v60  ;;  %v809_v28 = vpop.f32.mrf.mxu2  ;;  %v823_v2 = vpop.f32.mrf.mxu3  ;;  %vm886_vm8 = vweird.f32 %v3628_v60 }
 0x23b   :  { %2793 = vpow2.f32 %v2534_v47  ;;  %v832_v4 = vadd.f32 %v809_v28, %v767_v36  ;;  %v833_v37 = vadd.f32 %v823_v2, %v768_v53  ;;  %v877_v47 = vand.u32 2147483648, %v3626_v41 }
 0x23c   :  { %2795 = vpow2.f32 %v2535_v15  ;;  %v890_v2 = vand.u32 2147483647, %v3628_v60  ;;  %vm3671_vm7 = vcmp.eq.f32.partialorder %v875_v48, 8.507059e+37 }
 0x23d   :  { %v2788_v20 = vpop.eup %2787  ;;  %v2536_v30 = vmul.f32 -1.442695, %v832_v4  ;;  %2797 = vpow2.f32 %v2533_v59  ;;  %v2537_v59 = vmul.f32 -1.442695, %v833_v37 }
 0x23e   :  { %v860_v10 = vadd.f32 1.0, %v2788_v20  ;;  %vm3684_vm10 = vcmp.eq.f32.partialorder %v890_v2, 8.507059e+37 }
 0x23f   :  { %v3632_v51 = vpop.eup %2789  ;;  %2799 = vpow2.f32 %v2536_v30 }
 0x240   :  { %v3634_v35 = vpop.eup %2791  ;;  %2801 = vrcp.f32 %v860_v10  ;;  %v867_v49 = vmul.f32 %v3632_v51, %v3626_v41  ;;  %v905_v20 = vand.u32 2147483647, %v860_v10  ;;  %v907_v30 = vand.u32 2147483648, %v860_v10 }
 0x241   :  { %v2794_v63 = vpop.eup %2793  ;;  %v882_v19 = vmul.f32 %v3634_v35, %v3628_v60  ;;  %vm872_vm2 = vweird.f32 %v3632_v51  ;;  %vm887_vm3 = vweird.f32 %v3634_v35  ;;  %vm901_vm4 = vweird.f32 %v860_v10 }
 0x242   :  { %v2796_v11 = vpop.eup %2795  ;;  %v3638_v1 = vadd.f32 1.0, %v2794_v63  ;;  %v868_v55 = vsub.f32 1.0, %v867_v49  ;;  %vm906_vm6 = vcmp.eq.f32.partialorder %v905_v20, 8.507059e+37  ;;  %v908_v37 = vor.u32 1.1754944e-38, %v907_v30  ;;  %vm3680_vm9 = vmor %vm871_vm0, %vm872_vm2 }
 0x243   :  { %v3642_v39 = vadd.f32 1.0, %v2796_v11  ;;  %v2798_v0 = vpop.eup %2797  ;;  %v883_v27 = vsub.f32 1.0, %v882_v19  ;;  %v892_v19 = vand.u32 2147483648, %v3628_v60  ;;  %vm3692_vm11 = vmor %vm886_vm8, %vm887_vm3 }
 0x244   :  { %2803 = vrcp.f32 %v3638_v1  ;;  %v3651_v15 = vadd.f32 1.0, %v2798_v0  ;;  %v869_v4 = vmul.f32 %v3632_v51, %v868_v55  ;;  %vm931_vm12 = vweird.f32 %v3638_v1 }
 0x245   :  { %v2800_v54 = vpop.eup %2799  ;;  %2805 = vrcp.f32 %v3642_v39  ;;  %v884_v53 = vmul.f32 %v3634_v35, %v883_v27  ;;  %v893_v41 = vor.u32 1.1754944e-38, %v892_v19  ;;  %v935_v20 = vand.u32 2147483647, %v3638_v1 }
 0x246   :  { %v2802_v43 = vpop.eup %2801  ;;  %v3648_v18 = vadd.f32 1.0, %v2800_v54  ;;  %v870_v27 = vadd.f32 %v3632_v51, %v869_v4  ;;  %vm946_vm13 = vweird.f32 %v3642_v39 }
 0x247   :  { %v897_v22 = vmul.f32 %v2802_v43, %v860_v10  ;;  %vm902_vm1 = vweird.f32 %v2802_v43 }
 0x248   :  { %2807 = vrcp.f32 %v3648_v18  ;;  %vm903_vm5 = vmor %vm901_vm4, %vm902_vm1  ;;  %vm961_vm0 = vweird.f32 %v3648_v18 }
 0x249   :  { %v898_v36 = vsub.f32 1.0, %v897_v22  ;;  %2809 = vrcp.f32 %v3651_v15  ;;  %v885_v22 = vadd.f32 %v3634_v35, %v884_v53  ;;  %v874_v53 = vsel %vm3680_vm9, %v3632_v51, %v870_v27 }
 0x24a   :  { %v3653_v28 = vpop.eup %2803  ;;  %2811 = vpow2.f32 %v2537_v59 }
 0x24b   :  { %v3657_v63 = vpop.eup %2805  ;;  %v899_v11 = vmul.f32 %v2802_v43, %v898_v36  ;;  %v927_v49 = vmul.f32 %v3653_v28, %v3638_v1  ;;  %vm932_vm1 = vweird.f32 %v3653_v28 }
 0x24c   :  { %v942_v0 = vmul.f32 %v3657_v63, %v3642_v39  ;;  %vm947_vm14 = vweird.f32 %v3657_v63 }
 0x24d   :  { %v900_v54 = vadd.f32 %v2802_v43, %v899_v11  ;;  %v928_v13 = vsub.f32 1.0, %v927_v49  ;;  %v878_v11 = vor.u32 1.1754944e-38, %v877_v47  ;;  %v889_v49 = vsel %vm3692_vm11, %v3634_v35, %v885_v22  ;;  %vm3721_vm2 = vmor %vm946_vm13, %vm947_vm14 }
 0x24e   :  { %v943_v55 = vsub.f32 1.0, %v942_v0  ;;  %v2808_v32 = vpop.eup %2807  ;;  %v950_v35 = vand.u32 2147483647, %v3642_v39 }
 0x24f   :  { %v904_v36 = vsel %vm903_vm5, %v2802_v43, %v900_v54  ;;  %v957_v47 = vmul.f32 %v2808_v32, %v3648_v18  ;;  %v3699_v30 = vpop.eup %2809  ;;  %v929_v2 = vmul.f32 %v3653_v28, %v928_v13  ;;  %vm962_vm15 = vweird.f32 %v2808_v32  ;;  %vm933_vm5 = vmor %vm931_vm12, %vm932_vm1 }
 0x250   :  { %v909_v10 = vsel %vm906_vm6, %v908_v37, %v904_v36  ;;  %v944_v4 = vmul.f32 %v3657_v63, %v943_v55  ;;  %v2812_v19 = vpop.eup %2811  ;;  %v965_v54 = vand.u32 2147483647, %v3648_v18  ;;  %v967_v37 = vand.u32 2147483648, %v3648_v18  ;;  %vm963_vm3 = vmor %vm961_vm0, %vm962_vm15 }
 0x251   :  { %v986_v48 = vmul.f32 2.0, %v909_v10  ;;  %v958_v0 = vsub.f32 1.0, %v957_v47  ;;  %v865_v51 = vadd.f32 1.0, %v2812_v19  ;;  %v912_v27 = vmul.f32 %v3699_v30, %v3651_v15 }
 0x252   :  { %v945_v36 = vadd.f32 %v3657_v63, %v944_v4  ;;  %v952_v13 = vand.u32 2147483648, %v3642_v39  ;;  %v930_v22 = vadd.f32 %v3653_v28, %v929_v2  ;;  %v879_v4 = vsel %vm3671_vm7, %v878_v11, %v874_v53 }
 0x253   :  { %v2538_v55 = vadd.f32 -1.0, %v986_v48  ;;  %v959_v10 = vmul.f32 %v2808_v32, %v958_v0  ;;  %2813 = vrcp.f32 %v865_v51  ;;  %v894_v47 = vsel %vm3684_vm10, %v893_v41, %v889_v49 }
 0x254   :  { %v937_v18 = vand.u32 2147483648, %v3638_v1  ;;  %v968_v60 = vor.u32 1.1754944e-38, %v967_v37  ;;  %v949_v39 = vsel %vm3721_vm2, %v3657_v63, %v945_v36  ;;  %vm966_vm4 = vcmp.eq.f32.partialorder %v965_v54, 8.507059e+37 }
 0x255   :  { %v960_v48 = vadd.f32 %v2808_v32, %v959_v10  ;;  %v992_v0 = vmul.f32 %v2538_v55, %v879_v4  ;;  %v913_v19 = vsub.f32 1.0, %v912_v27  ;;  %v953_v61 = vor.u32 1.1754944e-38, %v952_v13 }
 0x256   :  { %v990_v43 = vmul.f32 %v894_v47, %v3580_v42  ;;  %v934_v41 = vsel %vm933_vm5, %v3653_v28, %v930_v22  ;;  %vm951_vm6 = vcmp.eq.f32.partialorder %v950_v35, 8.507059e+37  ;;  %v938_v49 = vor.u32 1.1754944e-38, %v937_v18 }
 0x257   :  { %v964_v2 = vsel %vm963_vm3, %v2808_v32, %v960_v48  ;;  %v954_v37 = vsel %vm951_vm6, %v953_v61, %v949_v39  ;;  %vm936_vm7 = vcmp.eq.f32.partialorder %v935_v20, 8.507059e+37  ;;  %v914_v54 = vmul.f32 %v3699_v30, %v913_v19 }
 0x258   :  { %v969_v11 = vsel %vm966_vm4, %v968_v60, %v964_v2  ;;  %v3738_v32 = vadd.f32 %v992_v0, %v990_v43  ;;  %v939_v55 = vsel %vm936_vm7, %v938_v49, %v934_v41  ;;  %v991_v36 = vmul.f32 %v954_v37, %v3585_v52  ;;  %v1001_v41 = vld [vmem:[#allocation4 + $0x60] sm:$0xff] }
 0x259   :  { %v987_v53 = vmul.f32 2.0, %v969_v11  ;;  %v2814_v10 = vpop.eup %2813  ;;  %vm917_vm8 = vweird.f32 %v3699_v30  ;;  %v915_v20 = vadd.f32 %v3699_v30, %v914_v54  ;;  %vm916_vm10 = vweird.f32 %v3651_v15 }
 0x25a   :  { %v972_v1 = vmul.f32 %v2814_v10, %v865_v51  ;;  %2815 = vtanh.f32 %v3738_v32  ;;  %vm977_vm9 = vweird.f32 %v2814_v10  ;;  %v922_v35 = vand.u32 2147483648, %v3651_v15  ;;  %vm918_vm12 = vmor %vm916_vm10, %vm917_vm8 }
 0x25b   :  { %v2539_v63 = vadd.f32 -1.0, %v987_v53  ;;  %v982_v22 = vand.u32 2147483648, %v865_v51  ;;  %vm976_vm11 = vweird.f32 %v865_v51  ;;  %v920_v52 = vand.u32 2147483647, %v3651_v15  ;;  %v4584_v15 = vld [vmem:[#allocation14_spill] sm:$0xff] }
 0x25c   :  { %v973_v13 = vsub.f32 1.0, %v972_v1  ;;  %v980_v48 = vand.u32 2147483647, %v865_v51  ;;  %vm978_vm13 = vmor %vm976_vm11, %vm977_vm9  ;;  %v919_v4 = vsel %vm918_vm12, %v3699_v30, %v915_v20  ;;  %v923_v60 = vor.u32 1.1754944e-38, %v922_v35  ;;  %v4585_v30 = vld [vmem:[#allocation15_spill] sm:$0xff]  ;;  %v4586_v51 = vld [vmem:[#allocation16_spill] sm:$0xff] }
 0x25d   :  { %v993_v27 = vmul.f32 %v2539_v63, %v939_v55  ;;  %v983_v39 = vor.u32 1.1754944e-38, %v982_v22  ;;  %vm921_vm14 = vcmp.eq.f32.partialorder %v920_v52, 8.507059e+37  ;;  %v1005_v53 = vunpack.c.l.bf16 %v1001_v41  ;;  %v1002_v55 = vld [vmem:[#allocation4 + $0x68] sm:$0xff]  ;;  %v1003_v1 = vld [vmem:[#allocation4 + $0x70] sm:$0xff] }
 0x25e   :  { %v974_v28 = vmul.f32 %v2814_v10, %v973_v13  ;;  %vm981_vm15 = vcmp.eq.f32.partialorder %v980_v48, 8.507059e+37  ;;  %v924_v0 = vsel %vm921_vm14, %v923_v60, %v919_v4  ;;  %v1006_v49 = vunpack.c.h.bf16 %v1001_v41  ;;  %v1004_v60 = vld [vmem:[#allocation4 + $0x78] sm:$0xff] }
 0x25f   :  { %v3743_v42 = vadd.f32 %v993_v27, %v991_v36  ;;  %v1007_v13 = vunpack.c.l.bf16 %v1002_v55  ;;  %v1010_v20 = vunpack.c.h.bf16 %v1003_v1  ;;  %v1008_v22 = vunpack.c.h.bf16 %v1002_v55 }
 0x260   :  { %v975_v59 = vadd.f32 %v2814_v10, %v974_v28  ;;  %v2816_v18 = vpop.eup %2815  ;;  %v1009_v28 = vunpack.c.l.bf16 %v1003_v1 }
 0x261   :  { %2817 = vtanh.f32 %v3743_v42  ;;  %v998_v61 = vmul.f32 %v2816_v18, %v924_v0 }
 0x262   :  { %v979_v47 = vsel %vm978_vm13, %v2814_v10, %v975_v59 }
 0x263   :  { %v984_v19 = vsel %vm981_vm15, %v983_v39, %v979_v47 }
 0x267   :  { %v2818_v2 = vpop.eup %2817 }
 0x268   :  { %v999_v11 = vmul.f32 %v2818_v2, %v984_v19 }
 0x26a   :  { %v1013_v43 = vpack.c.bf16 %v999_v11, %v998_v61 }
 0x26c   :  { %1022 = vmatmul.bf16.vlgmr.msrb.gmra.mxu0 %v1013_v43  ;;  %1036 = vmatmul.bf16.vlgmr.msrb.gmra.mxu1 %v1013_v43 }
 0x26d   :  { %1050 = vmatmul.bf16.vlgmr.msrb.gmra.mxu2 %v1013_v43  ;;  %1064 = vmatmul.bf16.vlgmr.msrb.gmra.mxu3 %v1013_v43  ;;  %v1011_v43 = vunpack.c.l.bf16 %v1004_v60 }
 0x26e   :  { %1502 = vmatpush.bf16.msrb.mxu0 %v3150_v3  ;;  %1516 = vmatpush.bf16.msrb.mxu1 %v3152_v7 }
 0x26f   :  { %1530 = vmatpush.bf16.msrb.mxu2 %v3154_v8  ;;  %1544 = vmatpush.bf16.msrb.mxu3 %v3157_v12 }
 0x272   :  { %1503 = vmatpush.bf16.msrb.mxu0 %v3161_v16  ;;  %1517 = vmatpush.bf16.msrb.mxu1 %v3163_v17 }
 0x273   :  { %1531 = vmatpush.bf16.msrb.mxu2 %v3166_v21  ;;  %1545 = vmatpush.bf16.msrb.mxu3 %v3168_v25 }
 0x276   :  { %1504 = vmatpush.bf16.msrb.mxu0 %v3171_v29  ;;  %1518 = vmatpush.bf16.msrb.mxu1 %v3175_v33 }
 0x277   :  { %1532 = vmatpush.bf16.msrb.mxu2 %v3177_v34  ;;  %1546 = vmatpush.bf16.msrb.mxu3 %v3180_v38 }
 0x27a   :  { %1505 = vmatpush.bf16.msrb.mxu0 %v3183_v44  ;;  %1519 = vmatpush.bf16.msrb.mxu1 %v3187_v45 }
 0x27b   :  { %1533 = vmatpush.bf16.msrb.mxu2 %v3189_v46  ;;  %1547 = vmatpush.bf16.msrb.mxu3 %v3192_v50 }
 0x27e   :  { %1506 = vmatpush.bf16.msrb.mxu0 %v3195_v56  ;;  %1520 = vmatpush.bf16.msrb.mxu1 %v3199_v57 }
 0x27f   :  { %1534 = vmatpush.bf16.msrb.mxu2 %v3201_v58  ;;  %1548 = vmatpush.bf16.msrb.mxu3 %v3204_v62 }
 0x282   :  { %1507 = vmatpush.bf16.msrb.mxu0 %v3207_v5  ;;  %1521 = vmatpush.bf16.msrb.mxu1 %v3211_v6 }
 0x283   :  { %1535 = vmatpush.bf16.msrb.mxu2 %v3213_v9  ;;  %1549 = vmatpush.bf16.msrb.mxu3 %v3216_v14 }
 0x286   :  { %1508 = vmatpush.bf16.msrb.mxu0 %v3219_v23  ;;  %1522 = vmatpush.bf16.msrb.mxu1 %v3223_v24 }
 0x287   :  { %1536 = vmatpush.bf16.msrb.mxu2 %v3225_v26  ;;  %1550 = vmatpush.bf16.msrb.mxu3 %v3228_v31 }
 0x28a   :  { %1509 = vmatpush.bf16.msrb.mxu0 %v3231_v40  ;;  %1523 = vmatpush.bf16.msrb.mxu1 %v4584_v15 }
 0x28b   :  { %1537 = vmatpush.bf16.msrb.mxu2 %v4585_v30  ;;  %1551 = vmatpush.bf16.msrb.mxu3 %v4586_v51 }
 0x2e9   :  { %v1023_v37 = vpop.f32.mrf.mxu0  ;;  %v1037_v10 = vpop.f32.mrf.mxu1 }
 0x2ea   :  { %v1070_v63 = vadd.f32 %v1023_v37, %v1005_v53  ;;  %v1071_v54 = vadd.f32 %v1037_v10, %v1006_v49 }
 0x2ec   :  { %v2540_v36 = vmul.f32 -1.442695, %v1070_v63  ;;  %v2541_v27 = vmul.f32 -1.442695, %v1071_v54 }
 0x2ee   :  { %2819 = vpow2.f32 %v2540_v36 }
 0x2ef   :  { %2821 = vpow2.f32 %v2541_v27 }
 0x2f0   :  { %v1051_v35 = vpop.f32.mrf.mxu2  ;;  %v1065_v52 = vpop.f32.mrf.mxu3 }
 0x2f1   :  { %v1072_v59 = vadd.f32 %v1051_v35, %v1007_v13  ;;  %v1025_v48 = vpop.f32.mrf.mxu0  ;;  %v1039_v4 = vpop.f32.mrf.mxu1  ;;  %v1073_v0 = vadd.f32 %v1065_v52, %v1008_v22  ;;  %v1012_v13 = vunpack.c.h.bf16 %v1004_v60 }
 0x2f2   :  { %v1074_v47 = vadd.f32 %v1025_v48, %v1009_v28  ;;  %v1075_v18 = vadd.f32 %v1039_v4, %v1010_v20 }
 0x2f3   :  { %v2542_v39 = vmul.f32 -1.442695, %v1072_v59  ;;  %v2543_v49 = vmul.f32 -1.442695, %v1073_v0 }
 0x2f4   :  { %v2820_v2 = vpop.eup %2819  ;;  %v2544_v11 = vmul.f32 -1.442695, %v1074_v47  ;;  %v2545_v53 = vmul.f32 -1.442695, %v1075_v18 }
 0x2f5   :  { %v2822_v19 = vpop.eup %2821  ;;  %v3784_v61 = vadd.f32 1.0, %v2820_v2  ;;  %2823 = vpow2.f32 %v2542_v39 }
 0x2f6   :  { %v3786_v41 = vadd.f32 1.0, %v2822_v19 }
 0x2f7   :  { %2825 = vrcp.f32 %v3784_v61  ;;  %vm1115_vm0 = vweird.f32 %v3784_v61  ;;  %v1119_v0 = vand.u32 2147483647, %v3784_v61 }
 0x2f8   :  { %2827 = vrcp.f32 %v3786_v41  ;;  %v1053_v37 = vpop.f32.mrf.mxu2  ;;  %v1067_v22 = vpop.f32.mrf.mxu3  ;;  %vm1130_vm8 = vweird.f32 %v3786_v41 }
 0x2f9   :  { %2829 = vpow2.f32 %v2544_v11  ;;  %v1076_v10 = vadd.f32 %v1053_v37, %v1011_v43  ;;  %v1077_v47 = vadd.f32 %v1067_v22, %v1012_v13  ;;  %v1121_v11 = vand.u32 2147483648, %v3784_v61 }
 0x2fa   :  { %2831 = vpow2.f32 %v2545_v53  ;;  %v1134_v22 = vand.u32 2147483647, %v3786_v41  ;;  %vm3829_vm7 = vcmp.eq.f32.partialorder %v1119_v0, 8.507059e+37 }
 0x2fb   :  { %v2824_v63 = vpop.eup %2823  ;;  %v2546_v54 = vmul.f32 -1.442695, %v1076_v10  ;;  %2833 = vpow2.f32 %v2543_v49  ;;  %v2547_v49 = vmul.f32 -1.442695, %v1077_v47 }
 0x2fc   :  { %v1104_v55 = vadd.f32 1.0, %v2824_v63  ;;  %vm3842_vm10 = vcmp.eq.f32.partialorder %v1134_v22, 8.507059e+37 }
 0x2fd   :  { %v3790_v1 = vpop.eup %2825  ;;  %2835 = vpow2.f32 %v2546_v54 }
 0x2fe   :  { %v3792_v36 = vpop.eup %2827  ;;  %2837 = vrcp.f32 %v1104_v55  ;;  %v1111_v20 = vmul.f32 %v3790_v1, %v3784_v61  ;;  %v1149_v63 = vand.u32 2147483647, %v1104_v55  ;;  %v1151_v54 = vand.u32 2147483648, %v1104_v55 }
 0x2ff   :  { %v2830_v27 = vpop.eup %2829  ;;  %v1126_v52 = vmul.f32 %v3792_v36, %v3786_v41  ;;  %vm1116_vm2 = vweird.f32 %v3790_v1  ;;  %vm1131_vm3 = vweird.f32 %v3792_v36  ;;  %vm1145_vm4 = vweird.f32 %v1104_v55 }
 0x300   :  { %v2832_v28 = vpop.eup %2831  ;;  %v3796_v35 = vadd.f32 1.0, %v2830_v27  ;;  %v1112_v60 = vsub.f32 1.0, %v1111_v20  ;;  %vm1150_vm6 = vcmp.eq.f32.partialorder %v1149_v63, 8.507059e+37  ;;  %v1152_v47 = vor.u32 1.1754944e-38, %v1151_v54  ;;  %vm3838_vm9 = vmor %vm1115_vm0, %vm1116_vm2 }
 0x301   :  { %v3800_v59 = vadd.f32 1.0, %v2832_v28  ;;  %v2834_v48 = vpop.eup %2833  ;;  %v1127_v39 = vsub.f32 1.0, %v1126_v52  ;;  %v1136_v52 = vand.u32 2147483648, %v3786_v41  ;;  %vm3850_vm11 = vmor %vm1130_vm8, %vm1131_vm3 }
 0x302   :  { %2839 = vrcp.f32 %v3796_v35  ;;  %v3809_v53 = vadd.f32 1.0, %v2834_v48  ;;  %v1113_v10 = vmul.f32 %v3790_v1, %v1112_v60  ;;  %vm1175_vm12 = vweird.f32 %v3796_v35 }
 0x303   :  { %v2836_v4 = vpop.eup %2835  ;;  %2841 = vrcp.f32 %v3800_v59  ;;  %v1128_v13 = vmul.f32 %v3792_v36, %v1127_v39  ;;  %v1137_v61 = vor.u32 1.1754944e-38, %v1136_v52  ;;  %v1179_v63 = vand.u32 2147483647, %v3796_v35 }
 0x304   :  { %v2838_v18 = vpop.eup %2837  ;;  %v3806_v19 = vadd.f32 1.0, %v2836_v4  ;;  %v1114_v39 = vadd.f32 %v3790_v1, %v1113_v10  ;;  %vm1190_vm13 = vweird.f32 %v3800_v59 }
 0x305   :  { %v1141_v2 = vmul.f32 %v2838_v18, %v1104_v55  ;;  %vm1146_vm1 = vweird.f32 %v2838_v18 }
 0x306   :  { %2843 = vrcp.f32 %v3806_v19  ;;  %vm1147_vm5 = vmor %vm1145_vm4, %vm1146_vm1  ;;  %vm1205_vm0 = vweird.f32 %v3806_v19 }
 0x307   :  { %v1142_v43 = vsub.f32 1.0, %v1141_v2  ;;  %2845 = vrcp.f32 %v3809_v53  ;;  %v1129_v2 = vadd.f32 %v3792_v36, %v1128_v13  ;;  %v1118_v13 = vsel %vm3838_vm9, %v3790_v1, %v1114_v39 }
 0x308   :  { %v3811_v37 = vpop.eup %2839  ;;  %2847 = vpow2.f32 %v2547_v49 }
 0x309   :  { %v3815_v27 = vpop.eup %2841  ;;  %v1143_v28 = vmul.f32 %v2838_v18, %v1142_v43  ;;  %v1171_v20 = vmul.f32 %v3811_v37, %v3796_v35  ;;  %vm1176_vm1 = vweird.f32 %v3811_v37 }
 0x30a   :  { %v1186_v48 = vmul.f32 %v3815_v27, %v3800_v59  ;;  %vm1191_vm14 = vweird.f32 %v3815_v27 }
 0x30b   :  { %v1144_v4 = vadd.f32 %v2838_v18, %v1143_v28  ;;  %v1172_v51 = vsub.f32 1.0, %v1171_v20  ;;  %v1122_v28 = vor.u32 1.1754944e-38, %v1121_v11  ;;  %v1133_v20 = vsel %vm3850_vm11, %v3792_v36, %v1129_v2  ;;  %vm3879_vm2 = vmor %vm1190_vm13, %vm1191_vm14 }
 0x30c   :  { %v1187_v60 = vsub.f32 1.0, %v1186_v48  ;;  %v2844_v30 = vpop.eup %2843  ;;  %v1194_v36 = vand.u32 2147483647, %v3800_v59 }
 0x30d   :  { %v1148_v43 = vsel %vm1147_vm5, %v2838_v18, %v1144_v4  ;;  %v1201_v11 = vmul.f32 %v2844_v30, %v3806_v19  ;;  %v3857_v54 = vpop.eup %2845  ;;  %v1173_v22 = vmul.f32 %v3811_v37, %v1172_v51  ;;  %vm1206_vm15 = vweird.f32 %v2844_v30  ;;  %vm1177_vm5 = vmor %vm1175_vm12, %vm1176_vm1 }
 0x30e   :  { %v1153_v55 = vsel %vm1150_vm6, %v1152_v47, %v1148_v43  ;;  %v1188_v10 = vmul.f32 %v3815_v27, %v1187_v60  ;;  %v2848_v52 = vpop.eup %2847  ;;  %v1209_v4 = vand.u32 2147483647, %v3806_v19  ;;  %v1211_v47 = vand.u32 2147483648, %v3806_v19  ;;  %vm1207_vm3 = vmor %vm1205_vm0, %vm1206_vm15 }
 0x30f   :  { %v1230_v0 = vmul.f32 2.0, %v1153_v55  ;;  %v1202_v48 = vsub.f32 1.0, %v1201_v11  ;;  %v1109_v1 = vadd.f32 1.0, %v2848_v52  ;;  %v1156_v39 = vmul.f32 %v3857_v54, %v3809_v53 }
 0x310   :  { %v1189_v43 = vadd.f32 %v3815_v27, %v1188_v10  ;;  %v1196_v51 = vand.u32 2147483648, %v3800_v59  ;;  %v1174_v2 = vadd.f32 %v3811_v37, %v1173_v22  ;;  %v1123_v10 = vsel %vm3829_vm7, %v1122_v28, %v1118_v13 }
 0x311   :  { %v2548_v60 = vadd.f32 -1.0, %v1230_v0  ;;  %v1203_v55 = vmul.f32 %v2844_v30, %v1202_v48  ;;  %2849 = vrcp.f32 %v1109_v1  ;;  %v1138_v11 = vsel %vm3842_vm10, %v1137_v61, %v1133_v20 }
 0x312   :  { %v1181_v19 = vand.u32 2147483648, %v3796_v35  ;;  %v1212_v41 = vor.u32 1.1754944e-38, %v1211_v47  ;;  %v1193_v59 = vsel %vm3879_vm2, %v3815_v27, %v1189_v43  ;;  %vm1210_vm4 = vcmp.eq.f32.partialorder %v1209_v4, 8.507059e+37 }
 0x313   :  { %v1204_v0 = vadd.f32 %v2844_v30, %v1203_v55  ;;  %v1236_v48 = vmul.f32 %v2548_v60, %v1123_v10  ;;  %v1157_v52 = vsub.f32 1.0, %v1156_v39  ;;  %v1197_v15 = vor.u32 1.1754944e-38, %v1196_v51 }
 0x314   :  { %v1234_v18 = vmul.f32 %v1138_v11, %v3738_v32  ;;  %v1178_v61 = vsel %vm1177_vm5, %v3811_v37, %v1174_v2  ;;  %vm1195_vm6 = vcmp.eq.f32.partialorder %v1194_v36, 8.507059e+37  ;;  %v1182_v20 = vor.u32 1.1754944e-38, %v1181_v19 }
 0x315   :  { %v1208_v22 = vsel %vm1207_vm3, %v2844_v30, %v1204_v0  ;;  %v1198_v47 = vsel %vm1195_vm6, %v1197_v15, %v1193_v59  ;;  %vm1180_vm7 = vcmp.eq.f32.partialorder %v1179_v63, 8.507059e+37  ;;  %v1158_v4 = vmul.f32 %v3857_v54, %v1157_v52 }
 0x316   :  { %v1213_v28 = vsel %vm1210_vm4, %v1212_v41, %v1208_v22  ;;  %v3896_v30 = vadd.f32 %v1236_v48, %v1234_v18  ;;  %v1183_v60 = vsel %vm1180_vm7, %v1182_v20, %v1178_v61  ;;  %v1235_v43 = vmul.f32 %v1198_v47, %v3743_v42  ;;  %v1245_v61 = vld [vmem:[#allocation4 + $0x80] sm:$0xff] }
 0x317   :  { %v1231_v13 = vmul.f32 2.0, %v1213_v28  ;;  %v2850_v55 = vpop.eup %2849  ;;  %vm1161_vm8 = vweird.f32 %v3857_v54  ;;  %v1159_v63 = vadd.f32 %v3857_v54, %v1158_v4  ;;  %vm1160_vm10 = vweird.f32 %v3809_v53 }
 0x318   :  { %v1216_v35 = vmul.f32 %v2850_v55, %v1109_v1  ;;  %2851 = vtanh.f32 %v3896_v30  ;;  %vm1221_vm9 = vweird.f32 %v2850_v55  ;;  %v1166_v36 = vand.u32 2147483648, %v3809_v53  ;;  %vm1162_vm12 = vmor %vm1160_vm10, %vm1161_vm8 }
 0x319   :  { %v2549_v27 = vadd.f32 -1.0, %v1231_v13  ;;  %v1226_v2 = vand.u32 2147483648, %v1109_v1  ;;  %vm1220_vm11 = vweird.f32 %v1109_v1  ;;  %v1164_v42 = vand.u32 2147483647, %v3809_v53  ;;  %v4597_v53 = vld [vmem:[#allocation14_spill] sm:$0xff] }
 0x31a   :  { %v1217_v51 = vsub.f32 1.0, %v1216_v35  ;;  %v1224_v0 = vand.u32 2147483647, %v1109_v1  ;;  %vm1222_vm13 = vmor %vm1220_vm11, %vm1221_vm9  ;;  %v1163_v10 = vsel %vm1162_vm12, %v3857_v54, %v1159_v63  ;;  %v1167_v41 = vor.u32 1.1754944e-38, %v1166_v36  ;;  %v4598_v54 = vld [vmem:[#allocation15_spill] sm:$0xff]  ;;  %v4599_v1 = vld [vmem:[#allocation16_spill] sm:$0xff] }
 0x31b   :  { %v1237_v39 = vmul.f32 %v2549_v27, %v1183_v60  ;;  %v1227_v59 = vor.u32 1.1754944e-38, %v1226_v2  ;;  %vm1165_vm14 = vcmp.eq.f32.partialorder %v1164_v42, 8.507059e+37  ;;  %v1249_v13 = vunpack.c.l.bf16 %v1245_v61  ;;  %v1246_v60 = vld [vmem:[#allocation4 + $0x88] sm:$0xff]  ;;  %v1247_v35 = vld [vmem:[#allocation4 + $0x90] sm:$0xff] }
 0x31c   :  { %v1218_v37 = vmul.f32 %v2850_v55, %v1217_v51  ;;  %vm1225_vm15 = vcmp.eq.f32.partialorder %v1224_v0, 8.507059e+37  ;;  %v1168_v48 = vsel %vm1165_vm14, %v1167_v41, %v1163_v10  ;;  %v1250_v20 = vunpack.c.h.bf16 %v1245_v61  ;;  %v1248_v41 = vld [vmem:[#allocation4 + $0x98] sm:$0xff] }
 0x31d   :  { %v3901_v32 = vadd.f32 %v1237_v39, %v1235_v43  ;;  %v1251_v51 = vunpack.c.l.bf16 %v1246_v60  ;;  %v1254_v63 = vunpack.c.h.bf16 %v1247_v35  ;;  %v1252_v2 = vunpack.c.h.bf16 %v1246_v60 }
 0x31e   :  { %v1219_v49 = vadd.f32 %v2850_v55, %v1218_v37  ;;  %v2852_v19 = vpop.eup %2851  ;;  %v1253_v37 = vunpack.c.l.bf16 %v1247_v35 }
 0x31f   :  { %2853 = vtanh.f32 %v3901_v32  ;;  %v1242_v15 = vmul.f32 %v2852_v19, %v1168_v48 }
 0x320   :  { %v1223_v11 = vsel %vm1222_vm13, %v2850_v55, %v1219_v49 }
 0x321   :  { %v1228_v52 = vsel %vm1225_vm15, %v1227_v59, %v1223_v11 }
 0x325   :  { %v2854_v22 = vpop.eup %2853 }
 0x326   :  { %v1243_v28 = vmul.f32 %v2854_v22, %v1228_v52 }
 0x328   :  { %v1257_v18 = vpack.c.bf16 %v1243_v28, %v1242_v15 }
 0x32a   :  { %1266 = vmatmul.bf16.vlgmr.msra.gmra.mxu0 %v1257_v18  ;;  %1280 = vmatmul.bf16.vlgmr.msra.gmra.mxu1 %v1257_v18 }
 0x32b   :  { %1294 = vmatmul.bf16.vlgmr.msra.gmra.mxu2 %v1257_v18  ;;  %1308 = vmatmul.bf16.vlgmr.msra.gmra.mxu3 %v1257_v18  ;;  %v1255_v18 = vunpack.c.l.bf16 %v1248_v41 }
 0x32c   :  { %1746 = vmatpush.bf16.msra.mxu0 %v3150_v3  ;;  %1760 = vmatpush.bf16.msra.mxu1 %v3152_v7 }
 0x32d   :  { %1774 = vmatpush.bf16.msra.mxu2 %v3154_v8  ;;  %1788 = vmatpush.bf16.msra.mxu3 %v3157_v12 }
 0x330   :  { %1747 = vmatpush.bf16.msra.mxu0 %v3161_v16  ;;  %1761 = vmatpush.bf16.msra.mxu1 %v3163_v17 }
 0x331   :  { %1775 = vmatpush.bf16.msra.mxu2 %v3166_v21  ;;  %1789 = vmatpush.bf16.msra.mxu3 %v3168_v25 }
 0x334   :  { %1748 = vmatpush.bf16.msra.mxu0 %v3171_v29  ;;  %1762 = vmatpush.bf16.msra.mxu1 %v3175_v33 }
 0x335   :  { %1776 = vmatpush.bf16.msra.mxu2 %v3177_v34  ;;  %1790 = vmatpush.bf16.msra.mxu3 %v3180_v38 }
 0x338   :  { %1749 = vmatpush.bf16.msra.mxu0 %v3183_v44  ;;  %1763 = vmatpush.bf16.msra.mxu1 %v3187_v45 }
 0x339   :  { %1777 = vmatpush.bf16.msra.mxu2 %v3189_v46  ;;  %1791 = vmatpush.bf16.msra.mxu3 %v3192_v50 }
 0x33c   :  { %1750 = vmatpush.bf16.msra.mxu0 %v3195_v56  ;;  %1764 = vmatpush.bf16.msra.mxu1 %v3199_v57 }
 0x33d   :  { %1778 = vmatpush.bf16.msra.mxu2 %v3201_v58  ;;  %1792 = vmatpush.bf16.msra.mxu3 %v3204_v62 }
 0x340   :  { %1751 = vmatpush.bf16.msra.mxu0 %v3207_v5  ;;  %1765 = vmatpush.bf16.msra.mxu1 %v3211_v6 }
 0x341   :  { %1779 = vmatpush.bf16.msra.mxu2 %v3213_v9  ;;  %1793 = vmatpush.bf16.msra.mxu3 %v3216_v14 }
 0x344   :  { %1752 = vmatpush.bf16.msra.mxu0 %v3219_v23  ;;  %1766 = vmatpush.bf16.msra.mxu1 %v3223_v24 }
 0x345   :  { %1780 = vmatpush.bf16.msra.mxu2 %v3225_v26  ;;  %1794 = vmatpush.bf16.msra.mxu3 %v3228_v31 }
 0x348   :  { %1753 = vmatpush.bf16.msra.mxu0 %v3231_v40  ;;  %1767 = vmatpush.bf16.msra.mxu1 %v4597_v53 }
 0x349   :  { %1781 = vmatpush.bf16.msra.mxu2 %v4598_v54  ;;  %1795 = vmatpush.bf16.msra.mxu3 %v4599_v1 }
 0x3a7   :  { %v1267_v47 = vpop.f32.mrf.mxu0  ;;  %v1281_v55 = vpop.f32.mrf.mxu1 }
 0x3a8   :  { %v1314_v27 = vadd.f32 %v1267_v47, %v1249_v13  ;;  %v1315_v4 = vadd.f32 %v1281_v55, %v1250_v20 }
 0x3aa   :  { %v2550_v43 = vmul.f32 -1.442695, %v1314_v27  ;;  %v2551_v39 = vmul.f32 -1.442695, %v1315_v4 }
 0x3ac   :  { %2855 = vpow2.f32 %v2550_v43 }
 0x3ad   :  { %2857 = vpow2.f32 %v2551_v39 }
 0x3ae   :  { %v1295_v36 = vpop.f32.mrf.mxu2  ;;  %v1309_v42 = vpop.f32.mrf.mxu3 }
 0x3af   :  { %v1316_v49 = vadd.f32 %v1295_v36, %v1251_v51  ;;  %v1269_v0 = vpop.f32.mrf.mxu0  ;;  %v1283_v10 = vpop.f32.mrf.mxu1  ;;  %v1317_v48 = vadd.f32 %v1309_v42, %v1252_v2  ;;  %v1256_v51 = vunpack.c.h.bf16 %v1248_v41 }
 0x3b0   :  { %v1318_v11 = vadd.f32 %v1269_v0, %v1253_v37  ;;  %v1319_v19 = vadd.f32 %v1283_v10, %v1254_v63 }
 0x3b1   :  { %v2552_v59 = vmul.f32 -1.442695, %v1316_v49  ;;  %v2553_v20 = vmul.f32 -1.442695, %v1317_v48 }
 0x3b2   :  { %v2856_v22 = vpop.eup %2855  ;;  %v2554_v28 = vmul.f32 -1.442695, %v1318_v11  ;;  %v2555_v13 = vmul.f32 -1.442695, %v1319_v19 }
 0x3b3   :  { %v2858_v52 = vpop.eup %2857  ;;  %v3942_v15 = vadd.f32 1.0, %v2856_v22  ;;  %2859 = vpow2.f32 %v2552_v59 }
 0x3b4   :  { %v3944_v61 = vadd.f32 1.0, %v2858_v52 }
 0x3b5   :  { %2861 = vrcp.f32 %v3942_v15  ;;  %vm1359_vm0 = vweird.f32 %v3942_v15  ;;  %v1363_v48 = vand.u32 2147483647, %v3942_v15 }
 0x3b6   :  { %2863 = vrcp.f32 %v3944_v61  ;;  %v1297_v47 = vpop.f32.mrf.mxu2  ;;  %v1311_v2 = vpop.f32.mrf.mxu3  ;;  %vm1374_vm8 = vweird.f32 %v3944_v61 }
 0x3b7   :  { %2865 = vpow2.f32 %v2554_v28  ;;  %v1320_v55 = vadd.f32 %v1297_v47, %v1255_v18  ;;  %v1321_v11 = vadd.f32 %v1311_v2, %v1256_v51  ;;  %v1365_v28 = vand.u32 2147483648, %v3942_v15 }
 0x3b8   :  { %2867 = vpow2.f32 %v2555_v13  ;;  %v1378_v2 = vand.u32 2147483647, %v3944_v61  ;;  %vm3987_vm7 = vcmp.eq.f32.partialorder %v1363_v48, 8.507059e+37 }
 0x3b9   :  { %v2860_v27 = vpop.eup %2859  ;;  %v2556_v4 = vmul.f32 -1.442695, %v1320_v55  ;;  %2869 = vpow2.f32 %v2553_v20  ;;  %v2557_v20 = vmul.f32 -1.442695, %v1321_v11 }
 0x3ba   :  { %v1348_v60 = vadd.f32 1.0, %v2860_v27  ;;  %vm4000_vm10 = vcmp.eq.f32.partialorder %v1378_v2, 8.507059e+37 }
 0x3bb   :  { %v3948_v35 = vpop.eup %2861  ;;  %2871 = vpow2.f32 %v2556_v4 }
 0x3bc   :  { %v3950_v43 = vpop.eup %2863  ;;  %2873 = vrcp.f32 %v1348_v60  ;;  %v1355_v63 = vmul.f32 %v3948_v35, %v3942_v15  ;;  %v1393_v27 = vand.u32 2147483647, %v1348_v60  ;;  %v1395_v4 = vand.u32 2147483648, %v1348_v60 }
 0x3bd   :  { %v2866_v39 = vpop.eup %2865  ;;  %v1370_v42 = vmul.f32 %v3950_v43, %v3944_v61  ;;  %vm1360_vm2 = vweird.f32 %v3948_v35  ;;  %vm1375_vm3 = vweird.f32 %v3950_v43  ;;  %vm1389_vm4 = vweird.f32 %v1348_v60 }
 0x3be   :  { %v2868_v37 = vpop.eup %2867  ;;  %v3954_v36 = vadd.f32 1.0, %v2866_v39  ;;  %v1356_v41 = vsub.f32 1.0, %v1355_v63  ;;  %vm1394_vm6 = vcmp.eq.f32.partialorder %v1393_v27, 8.507059e+37  ;;  %v1396_v11 = vor.u32 1.1754944e-38, %v1395_v4  ;;  %vm3996_vm9 = vmor %vm1359_vm0, %vm1360_vm2 }
 0x3bf   :  { %v3958_v49 = vadd.f32 1.0, %v2868_v37  ;;  %v2870_v0 = vpop.eup %2869  ;;  %v1371_v59 = vsub.f32 1.0, %v1370_v42  ;;  %v1380_v42 = vand.u32 2147483648, %v3944_v61  ;;  %vm4008_vm11 = vmor %vm1374_vm8, %vm1375_vm3 }
 0x3c0   :  { %2875 = vrcp.f32 %v3954_v36  ;;  %v3967_v13 = vadd.f32 1.0, %v2870_v0  ;;  %v1357_v55 = vmul.f32 %v3948_v35, %v1356_v41  ;;  %vm1419_vm12 = vweird.f32 %v3954_v36 }
 0x3c1   :  { %v2872_v10 = vpop.eup %2871  ;;  %2877 = vrcp.f32 %v3958_v49  ;;  %v1372_v51 = vmul.f32 %v3950_v43, %v1371_v59  ;;  %v1381_v15 = vor.u32 1.1754944e-38, %v1380_v42  ;;  %v1423_v27 = vand.u32 2147483647, %v3954_v36 }
 0x3c2   :  { %v2874_v19 = vpop.eup %2873  ;;  %v3964_v52 = vadd.f32 1.0, %v2872_v10  ;;  %v1358_v59 = vadd.f32 %v3948_v35, %v1357_v55  ;;  %vm1434_vm13 = vweird.f32 %v3958_v49 }
 0x3c3   :  { %v1385_v22 = vmul.f32 %v2874_v19, %v1348_v60  ;;  %vm1390_vm1 = vweird.f32 %v2874_v19 }
 0x3c4   :  { %2879 = vrcp.f32 %v3964_v52  ;;  %vm1391_vm5 = vmor %vm1389_vm4, %vm1390_vm1  ;;  %vm1449_vm0 = vweird.f32 %v3964_v52 }
 0x3c5   :  { %v1386_v18 = vsub.f32 1.0, %v1385_v22  ;;  %2881 = vrcp.f32 %v3967_v13  ;;  %v1373_v22 = vadd.f32 %v3950_v43, %v1372_v51  ;;  %v1362_v51 = vsel %vm3996_vm9, %v3948_v35, %v1358_v59 }
 0x3c6   :  { %v3969_v47 = vpop.eup %2875  ;;  %2883 = vpow2.f32 %v2557_v20 }
 0x3c7   :  { %v3973_v39 = vpop.eup %2877  ;;  %v1387_v37 = vmul.f32 %v2874_v19, %v1386_v18  ;;  %v1415_v63 = vmul.f32 %v3969_v47, %v3954_v36  ;;  %vm1420_vm1 = vweird.f32 %v3969_v47 }
 0x3c8   :  { %v1430_v0 = vmul.f32 %v3973_v39, %v3958_v49  ;;  %vm1435_vm14 = vweird.f32 %v3973_v39 }
 0x3c9   :  { %v1388_v10 = vadd.f32 %v2874_v19, %v1387_v37  ;;  %v1416_v1 = vsub.f32 1.0, %v1415_v63  ;;  %v1366_v37 = vor.u32 1.1754944e-38, %v1365_v28  ;;  %v1377_v63 = vsel %vm4008_vm11, %v3950_v43, %v1373_v22  ;;  %vm4037_vm2 = vmor %vm1434_vm13, %vm1435_vm14 }
 0x3ca   :  { %v1431_v41 = vsub.f32 1.0, %v1430_v0  ;;  %v2880_v54 = vpop.eup %2879  ;;  %v1438_v43 = vand.u32 2147483647, %v3958_v49 }
 0x3cb   :  { %v1392_v18 = vsel %vm1391_vm5, %v2874_v19, %v1388_v10  ;;  %v1445_v28 = vmul.f32 %v2880_v54, %v3964_v52  ;;  %v4015_v4 = vpop.eup %2881  ;;  %v1417_v2 = vmul.f32 %v3969_v47, %v1416_v1  ;;  %vm1450_vm15 = vweird.f32 %v2880_v54  ;;  %vm1421_vm5 = vmor %vm1419_vm12, %vm1420_vm1 }
 0x3cc   :  { %v1397_v60 = vsel %vm1394_vm6, %v1396_v11, %v1392_v18  ;;  %v1432_v55 = vmul.f32 %v3973_v39, %v1431_v41  ;;  %v2884_v42 = vpop.eup %2883  ;;  %v1453_v10 = vand.u32 2147483647, %v3964_v52  ;;  %v1455_v11 = vand.u32 2147483648, %v3964_v52  ;;  %vm1451_vm3 = vmor %vm1449_vm0, %vm1450_vm15 }
 0x3cd   :  { %v1474_v48 = vmul.f32 2.0, %v1397_v60  ;;  %v1446_v0 = vsub.f32 1.0, %v1445_v28  ;;  %v1353_v35 = vadd.f32 1.0, %v2884_v42  ;;  %v1400_v59 = vmul.f32 %v4015_v4, %v3967_v13 }
 0x3ce   :  { %v1433_v18 = vadd.f32 %v3973_v39, %v1432_v55  ;;  %v1440_v1 = vand.u32 2147483648, %v3958_v49  ;;  %v1418_v22 = vadd.f32 %v3969_v47, %v1417_v2  ;;  %v1367_v55 = vsel %vm3987_vm7, %v1366_v37, %v1362_v51 }
 0x3cf   :  { %v2558_v41 = vadd.f32 -1.0, %v1474_v48  ;;  %v1447_v60 = vmul.f32 %v2880_v54, %v1446_v0  ;;  %2885 = vrcp.f32 %v1353_v35  ;;  %v1382_v28 = vsel %vm4000_vm10, %v1381_v15, %v1377_v63 }
 0x3d0   :  { %v1425_v52 = vand.u32 2147483648, %v3954_v36  ;;  %v1456_v61 = vor.u32 1.1754944e-38, %v1455_v11  ;;  %v1437_v49 = vsel %vm4037_vm2, %v3973_v39, %v1433_v18  ;;  %vm1454_vm4 = vcmp.eq.f32.partialorder %v1453_v10, 8.507059e+37 }
 0x3d1   :  { %v1448_v48 = vadd.f32 %v2880_v54, %v1447_v60  ;;  %v1480_v0 = vmul.f32 %v2558_v41, %v1367_v55  ;;  %v1401_v42 = vsub.f32 1.0, %v1400_v59  ;;  %v1441_v53 = vor.u32 1.1754944e-38, %v1440_v1 }
 0x3d2   :  { %v1478_v19 = vmul.f32 %v1382_v28, %v3896_v30  ;;  %v1422_v15 = vsel %vm1421_vm5, %v3969_v47, %v1418_v22  ;;  %vm1439_vm6 = vcmp.eq.f32.partialorder %v1438_v43, 8.507059e+37  ;;  %v1426_v63 = vor.u32 1.1754944e-38, %v1425_v52 }
 0x3d3   :  { %v1452_v2 = vsel %vm1451_vm3, %v2880_v54, %v1448_v48  ;;  %v1442_v11 = vsel %vm1439_vm6, %v1441_v53, %v1437_v49  ;;  %vm1424_vm7 = vcmp.eq.f32.partialorder %v1423_v27, 8.507059e+37  ;;  %v1402_v10 = vmul.f32 %v4015_v4, %v1401_v42 }
 0x3d4   :  { %v1457_v37 = vsel %vm1454_vm4, %v1456_v61, %v1452_v2  ;;  %v4054_v54 = vadd.f32 %v1480_v0, %v1478_v19  ;;  %v1427_v41 = vsel %vm1424_vm7, %v1426_v63, %v1422_v15  ;;  %v1479_v18 = vmul.f32 %v1442_v11, %v3901_v32 }
 0x3d5   :  { %v1475_v51 = vmul.f32 2.0, %v1457_v37  ;;  %v2886_v60 = vpop.eup %2885  ;;  %vm1405_vm8 = vweird.f32 %v4015_v4  ;;  %v1403_v27 = vadd.f32 %v4015_v4, %v1402_v10  ;;  %vm1404_vm10 = vweird.f32 %v3967_v13 }
 0x3d6   :  { %v1460_v36 = vmul.f32 %v2886_v60, %v1353_v35  ;;  %2887 = vtanh.f32 %v4054_v54  ;;  %vm1465_vm9 = vweird.f32 %v2886_v60  ;;  %v1410_v43 = vand.u32 2147483648, %v3967_v13  ;;  %vm1406_vm12 = vmor %vm1404_vm10, %vm1405_vm8 }
 0x3d7   :  { %v2559_v39 = vadd.f32 -1.0, %v1475_v51  ;;  %v1470_v22 = vand.u32 2147483648, %v1353_v35  ;;  %vm1464_vm11 = vweird.f32 %v1353_v35  ;;  %v1408_v32 = vand.u32 2147483647, %v3967_v13 }
 0x3d8   :  { %v1461_v1 = vsub.f32 1.0, %v1460_v36  ;;  %v1468_v48 = vand.u32 2147483647, %v1353_v35  ;;  %vm1466_vm13 = vmor %vm1464_vm11, %vm1465_vm9  ;;  %v1407_v55 = vsel %vm1406_vm12, %v4015_v4, %v1403_v27  ;;  %v1411_v61 = vor.u32 1.1754944e-38, %v1410_v43 }
 0x3d9   :  { %v1481_v59 = vmul.f32 %v2559_v39, %v1427_v41  ;;  %v1471_v49 = vor.u32 1.1754944e-38, %v1470_v22  ;;  %vm1409_vm14 = vcmp.eq.f32.partialorder %v1408_v32, 8.507059e+37 }
 0x3da   :  { %v1462_v47 = vmul.f32 %v2886_v60, %v1461_v1  ;;  %vm1469_vm15 = vcmp.eq.f32.partialorder %v1468_v48, 8.507059e+37  ;;  %v1412_v0 = vsel %vm1409_vm14, %v1411_v61, %v1407_v55 }
 0x3db   :  { %v4059_v30 = vadd.f32 %v1481_v59, %v1479_v18 }
 0x3dc   :  { %v1463_v20 = vadd.f32 %v2886_v60, %v1462_v47  ;;  %v2888_v52 = vpop.eup %2887 }
 0x3dd   :  { %2889 = vtanh.f32 %v4059_v30  ;;  %v1486_v53 = vmul.f32 %v2888_v52, %v1412_v0 }
 0x3de   :  { %v1467_v28 = vsel %vm1466_vm13, %v2886_v60, %v1463_v20 }
 0x3df   :  { %v1472_v42 = vsel %vm1469_vm15, %v1471_v49, %v1467_v28 }
 0x3e3   :  { %v2890_v2 = vpop.eup %2889 }
 0x3e4   :  { %v1487_v37 = vmul.f32 %v2890_v2, %v1472_v42 }
 0x3e6   :  { %v1501_v19 = vpack.c.bf16 %v1487_v37, %v1486_v53 }
 0x3e8   :  { %1510 = vmatmul.bf16.vlgmr.msrb.gmra.mxu0 %v1501_v19  ;;  %1524 = vmatmul.bf16.vlgmr.msrb.gmra.mxu1 %v1501_v19 }
 0x3e9   :  { %1538 = vmatmul.bf16.vlgmr.msrb.gmra.mxu2 %v1501_v19  ;;  %1552 = vmatmul.bf16.vlgmr.msrb.gmra.mxu3 %v1501_v19 }
 0x3ea   :  { %1990 = vmatpush.bf16.msrb.mxu0 %v3150_v3  ;;  %2004 = vmatpush.bf16.msrb.mxu1 %v3152_v7  ;;  %v4610_v3 = vld [vmem:[#allocation14_spill] sm:$0xff]  ;;  %v4611_v7 = vld [vmem:[#allocation15_spill] sm:$0xff] }
 0x3eb   :  { %2018 = vmatpush.bf16.msrb.mxu2 %v3154_v8  ;;  %2032 = vmatpush.bf16.msrb.mxu3 %v3157_v12  ;;  %v4612_v8 = vld [vmem:[#allocation16_spill] sm:$0xff]  ;;  %v1489_v12 = vld [vmem:[#allocation4 + $0xa0] sm:$0xff] }
 0x3ee   :  { %1991 = vmatpush.bf16.msrb.mxu0 %v3161_v16  ;;  %2005 = vmatpush.bf16.msrb.mxu1 %v3163_v17  ;;  %v1493_v16 = vunpack.c.l.bf16 %v1489_v12  ;;  %v1494_v17 = vunpack.c.h.bf16 %v1489_v12 }
 0x3ef   :  { %2019 = vmatpush.bf16.msrb.mxu2 %v3166_v21  ;;  %2033 = vmatpush.bf16.msrb.mxu3 %v3168_v25 }
 0x3f2   :  { %1992 = vmatpush.bf16.msrb.mxu0 %v3171_v29  ;;  %2006 = vmatpush.bf16.msrb.mxu1 %v3175_v33 }
 0x3f3   :  { %2020 = vmatpush.bf16.msrb.mxu2 %v3177_v34  ;;  %2034 = vmatpush.bf16.msrb.mxu3 %v3180_v38  ;;  %v1490_v34 = vld [vmem:[#allocation4 + $0xa8] sm:$0xff]  ;;  %v1491_v38 = vld [vmem:[#allocation4 + $0xb0] sm:$0xff] }
 0x3f6   :  { %1993 = vmatpush.bf16.msrb.mxu0 %v3183_v44  ;;  %2007 = vmatpush.bf16.msrb.mxu1 %v3187_v45 }
 0x3f7   :  { %2021 = vmatpush.bf16.msrb.mxu2 %v3189_v46  ;;  %2035 = vmatpush.bf16.msrb.mxu3 %v3192_v50  ;;  %v1495_v46 = vunpack.c.l.bf16 %v1490_v34  ;;  %v1497_v50 = vunpack.c.l.bf16 %v1491_v38 }
 0x3fa   :  { %1994 = vmatpush.bf16.msrb.mxu0 %v3195_v56  ;;  %2008 = vmatpush.bf16.msrb.mxu1 %v3199_v57  ;;  %v1498_v56 = vunpack.c.h.bf16 %v1491_v38 }
 0x3fb   :  { %2022 = vmatpush.bf16.msrb.mxu2 %v3201_v58  ;;  %2036 = vmatpush.bf16.msrb.mxu3 %v3204_v62  ;;  %v1496_v58 = vunpack.c.h.bf16 %v1490_v34 }
 0x3fe   :  { %1995 = vmatpush.bf16.msrb.mxu0 %v3207_v5  ;;  %2009 = vmatpush.bf16.msrb.mxu1 %v3211_v6 }
 0x3ff   :  { %2023 = vmatpush.bf16.msrb.mxu2 %v3213_v9  ;;  %2037 = vmatpush.bf16.msrb.mxu3 %v3216_v14 }
 0x402   :  { %1996 = vmatpush.bf16.msrb.mxu0 %v3219_v23  ;;  %2010 = vmatpush.bf16.msrb.mxu1 %v3223_v24  ;;  %v1492_v24 = vld [vmem:[#allocation4 + $0xb8] sm:$0xff] }
 0x403   :  { %2024 = vmatpush.bf16.msrb.mxu2 %v3225_v26  ;;  %2038 = vmatpush.bf16.msrb.mxu3 %v3228_v31  ;;  %v1499_v15 = vunpack.c.l.bf16 %v1492_v24  ;;  %v1500_v47 = vunpack.c.h.bf16 %v1492_v24 }
 0x406   :  { %1997 = vmatpush.bf16.msrb.mxu0 %v3231_v40  ;;  %2011 = vmatpush.bf16.msrb.mxu1 %v4610_v3 }
 0x407   :  { %2025 = vmatpush.bf16.msrb.mxu2 %v4611_v7  ;;  %2039 = vmatpush.bf16.msrb.mxu3 %v4612_v8 }
 0x465   :  { %v1511_v21 = vpop.f32.mrf.mxu0  ;;  %v1525_v25 = vpop.f32.mrf.mxu1 }
 0x466   :  { %v1558_v29 = vadd.f32 %v1511_v21, %v1493_v16  ;;  %v1559_v33 = vadd.f32 %v1525_v25, %v1494_v17 }
 0x468   :  { %v2560_v44 = vmul.f32 -1.442695, %v1558_v29  ;;  %v2561_v45 = vmul.f32 -1.442695, %v1559_v33 }
 0x46a   :  { %2891 = vpow2.f32 %v2560_v44 }
 0x46b   :  { %2893 = vpow2.f32 %v2561_v45 }
 0x46c   :  { %v1539_v57 = vpop.f32.mrf.mxu2  ;;  %v1553_v62 = vpop.f32.mrf.mxu3 }
 0x46d   :  { %v1560_v5 = vadd.f32 %v1539_v57, %v1495_v46  ;;  %v1513_v6 = vpop.f32.mrf.mxu0  ;;  %v1527_v9 = vpop.f32.mrf.mxu1  ;;  %v1561_v40 = vadd.f32 %v1553_v62, %v1496_v58 }
 0x46e   :  { %v1562_v14 = vadd.f32 %v1513_v6, %v1497_v50  ;;  %v1563_v23 = vadd.f32 %v1527_v9, %v1498_v56 }
 0x46f   :  { %v2562_v26 = vmul.f32 -1.442695, %v1560_v5  ;;  %v2563_v11 = vmul.f32 -1.442695, %v1561_v40 }
 0x470   :  { %v2892_v31 = vpop.eup %2891  ;;  %v2564_v35 = vmul.f32 -1.442695, %v1562_v14  ;;  %v2565_v63 = vmul.f32 -1.442695, %v1563_v23 }
 0x471   :  { %v2894_v13 = vpop.eup %2893  ;;  %v4100_v4 = vadd.f32 1.0, %v2892_v31  ;;  %2895 = vpow2.f32 %v2562_v26 }
 0x472   :  { %v4102_v51 = vadd.f32 1.0, %v2894_v13 }
 0x473   :  { %2897 = vrcp.f32 %v4100_v4  ;;  %vm1603_vm0 = vweird.f32 %v4100_v4  ;;  %v1607_v42 = vand.u32 2147483647, %v4100_v4  ;;  %v1609_v37 = vand.u32 2147483648, %v4100_v4 }
 0x474   :  { %2899 = vrcp.f32 %v4102_v51  ;;  %v1541_v60 = vpop.f32.mrf.mxu2  ;;  %v1555_v32 = vpop.f32.mrf.mxu3  ;;  %v1622_v34 = vand.u32 2147483647, %v4102_v51  ;;  %v1624_v38 = vand.u32 2147483648, %v4102_v51  ;;  %vm1618_vm8 = vweird.f32 %v4102_v51 }
 0x475   :  { %2901 = vpow2.f32 %v2564_v35  ;;  %v1564_v39 = vadd.f32 %v1541_v60, %v1499_v15  ;;  %v1565_v52 = vadd.f32 %v1555_v32, %v1500_v47  ;;  %vm4145_vm7 = vcmp.eq.f32.partialorder %v1607_v42, 8.507059e+37 }
 0x476   :  { %2903 = vpow2.f32 %v2565_v63  ;;  %v1610_v9 = vor.u32 1.1754944e-38, %v1609_v37  ;;  %vm4158_vm10 = vcmp.eq.f32.partialorder %v1622_v34, 8.507059e+37 }
 0x477   :  { %v2896_v10 = vpop.eup %2895  ;;  %v2566_v41 = vmul.f32 -1.442695, %v1564_v39  ;;  %2905 = vpow2.f32 %v2563_v11  ;;  %v2567_v7 = vmul.f32 -1.442695, %v1565_v52 }
 0x478   :  { %v1592_v36 = vadd.f32 1.0, %v2896_v10 }
 0x479   :  { %v4106_v18 = vpop.eup %2897  ;;  %2907 = vpow2.f32 %v2566_v41 }
 0x47a   :  { %v4108_v59 = vpop.eup %2899  ;;  %2909 = vrcp.f32 %v1592_v36  ;;  %v1599_v43 = vmul.f32 %v4106_v18, %v4100_v4  ;;  %v1637_v16 = vand.u32 2147483647, %v1592_v36  ;;  %v1639_v17 = vand.u32 2147483648, %v1592_v36 }
 0x47b   :  { %v2902_v1 = vpop.eup %2901  ;;  %v1614_v20 = vmul.f32 %v4108_v59, %v4102_v51  ;;  %vm1604_vm2 = vweird.f32 %v4106_v18  ;;  %vm1619_vm3 = vweird.f32 %v4108_v59  ;;  %vm1633_vm4 = vweird.f32 %v1592_v36 }
 0x47c   :  { %v2904_v27 = vpop.eup %2903  ;;  %v4112_v22 = vadd.f32 1.0, %v2902_v1  ;;  %v1600_v49 = vsub.f32 1.0, %v1599_v43  ;;  %vm1638_vm6 = vcmp.eq.f32.partialorder %v1637_v16, 8.507059e+37  ;;  %v1640_v46 = vor.u32 1.1754944e-38, %v1639_v17  ;;  %vm4154_vm9 = vmor %vm1603_vm0, %vm1604_vm2 }
 0x47d   :  { %v4116_v48 = vadd.f32 1.0, %v2904_v27  ;;  %v2906_v55 = vpop.eup %2905  ;;  %v1615_v2 = vsub.f32 1.0, %v1614_v20  ;;  %vm4166_vm11 = vmor %vm1618_vm8, %vm1619_vm3  ;;  %v1625_v4 = vor.u32 1.1754944e-38, %v1624_v38 }
 0x47e   :  { %2911 = vrcp.f32 %v4112_v22  ;;  %v4125_v3 = vadd.f32 1.0, %v2906_v55  ;;  %v1601_v12 = vmul.f32 %v4106_v18, %v1600_v49  ;;  %vm1663_vm12 = vweird.f32 %v4112_v22 }
 0x47f   :  { %v2908_v28 = vpop.eup %2907  ;;  %2913 = vrcp.f32 %v4116_v48  ;;  %v1616_v25 = vmul.f32 %v4108_v59, %v1615_v2  ;;  %v1667_v35 = vand.u32 2147483647, %v4112_v22  ;;  %vm1678_vm13 = vweird.f32 %v4116_v48 }
 0x480   :  { %v2910_v61 = vpop.eup %2909  ;;  %v4122_v53 = vadd.f32 1.0, %v2908_v28  ;;  %v1602_v56 = vadd.f32 %v4106_v18, %v1601_v12  ;;  %v1684_v43 = vand.u32 2147483648, %v4116_v48 }
 0x481   :  { %v1629_v0 = vmul.f32 %v2910_v61, %v1592_v36  ;;  %vm1634_vm1 = vweird.f32 %v2910_v61  ;;  %v1617_v57 = vadd.f32 %v4108_v59, %v1616_v25 }
 0x482   :  { %2915 = vrcp.f32 %v4122_v53  ;;  %vm1635_vm5 = vmor %vm1633_vm4, %vm1634_vm1  ;;  %v1606_v51 = vsel %vm4154_vm9, %v4106_v18, %v1602_v56  ;;  %v1697_v10 = vand.u32 2147483647, %v4122_v53  ;;  %v1699_v41 = vand.u32 2147483648, %v4122_v53 }
 0x483   :  { %v1630_v19 = vsub.f32 1.0, %v1629_v0  ;;  %2917 = vrcp.f32 %v4125_v3  ;;  %v1621_v63 = vsel %vm4166_vm11, %v4108_v59, %v1617_v57  ;;  %v1682_v59 = vand.u32 2147483647, %v4116_v48 }
 0x484   :  { %v4127_v8 = vpop.eup %2911  ;;  %2919 = vpow2.f32 %v2567_v7  ;;  %vm1693_vm0 = vweird.f32 %v4122_v53  ;;  %v1611_v28 = vsel %vm4145_vm7, %v1610_v9, %v1606_v51  ;;  %v1626_v52 = vsel %vm4158_vm10, %v1625_v4, %v1621_v63 }
 0x485   :  { %v4131_v21 = vpop.eup %2913  ;;  %v1631_v29 = vmul.f32 %v2910_v61, %v1630_v19  ;;  %v1659_v33 = vmul.f32 %v4127_v8, %v4112_v22  ;;  %vm1664_vm1 = vweird.f32 %v4127_v8  ;;  %v1700_v49 = vor.u32 1.1754944e-38, %v1699_v41 }
 0x486   :  { %v1674_v44 = vmul.f32 %v4131_v21, %v4116_v48  ;;  %vm1679_vm14 = vweird.f32 %v4131_v21  ;;  %vm1698_vm4 = vcmp.eq.f32.partialorder %v1697_v10, 8.507059e+37  ;;  %v1722_v19 = vmul.f32 %v1626_v52, %v4054_v54  ;;  %v1736_v52 = vld [vmem:[#allocation4 + $0xd8] sm:$0xff] }
 0x487   :  { %v1632_v45 = vadd.f32 %v2910_v61, %v1631_v29  ;;  %v1660_v62 = vsub.f32 1.0, %v1659_v33  ;;  %vm4195_vm2 = vmor %vm1678_vm13, %vm1679_vm14  ;;  %vm1668_vm7 = vcmp.eq.f32.partialorder %v1667_v35, 8.507059e+37  ;;  %vm1648_vm10 = vweird.f32 %v4125_v3 }
 0x488   :  { %v1675_v50 = vsub.f32 1.0, %v1674_v44  ;;  %v2916_v5 = vpop.eup %2915 }
 0x489   :  { %v1636_v58 = vsel %vm1635_vm5, %v2910_v61, %v1632_v45  ;;  %v1689_v40 = vmul.f32 %v2916_v5, %v4122_v53  ;;  %v4173_v15 = vpop.eup %2917  ;;  %v1661_v11 = vmul.f32 %v4127_v8, %v1660_v62  ;;  %vm1694_vm15 = vweird.f32 %v2916_v5  ;;  %vm1665_vm5 = vmor %vm1663_vm12, %vm1664_vm1 }
 0x48a   :  { %v1641_v14 = vsel %vm1638_vm6, %v1640_v46, %v1636_v58  ;;  %v1676_v31 = vmul.f32 %v4131_v21, %v1675_v50  ;;  %v2920_v39 = vpop.eup %2919  ;;  %v1644_v27 = vmul.f32 %v4173_v15, %v4125_v3  ;;  %v1669_v61 = vand.u32 2147483648, %v4112_v22  ;;  %vm1695_vm3 = vmor %vm1693_vm0, %vm1694_vm15 }
 0x48b   :  { %v1718_v26 = vmul.f32 2.0, %v1641_v14  ;;  %v1690_v60 = vsub.f32 1.0, %v1689_v40  ;;  %v1597_v18 = vadd.f32 1.0, %v2920_v39  ;;  %v1662_v32 = vadd.f32 %v4127_v8, %v1661_v11  ;;  %v1735_v39 = vld [vmem:[#allocation4 + $0xd0] sm:$0xff] }
 0x48c   :  { %v1677_v1 = vadd.f32 %v4131_v21, %v1676_v31  ;;  %v1645_v42 = vsub.f32 1.0, %v1644_v27  ;;  %v1685_v53 = vor.u32 1.1754944e-38, %v1684_v43  ;;  %vm1683_vm6 = vcmp.eq.f32.partialorder %v1682_v59, 8.507059e+37 }
 0x48d   :  { %v2568_v36 = vadd.f32 -1.0, %v1718_v26  ;;  %v1691_v47 = vmul.f32 %v2916_v5, %v1690_v60  ;;  %2921 = vrcp.f32 %v1597_v18  ;;  %v1666_v7 = vsel %vm1665_vm5, %v4127_v8, %v1662_v32  ;;  %v1734_v60 = vld [vmem:[#allocation4 + $0xc8] sm:$0xff] }
 0x48e   :  { %v1681_v48 = vsel %vm4195_vm2, %v4131_v21, %v1677_v1  ;;  %v1670_v16 = vor.u32 1.1754944e-38, %v1669_v61  ;;  %v1646_v33 = vmul.f32 %v4173_v15, %v1645_v42  ;;  %vm1649_vm8 = vweird.f32 %v4173_v15 }
 0x48f   :  { %v1692_v55 = vadd.f32 %v2916_v5, %v1691_v47  ;;  %v1724_v0 = vmul.f32 %v2568_v36, %v1611_v28  ;;  %v1686_v17 = vsel %vm1683_vm6, %v1685_v53, %v1681_v48  ;;  %v1654_v50 = vand.u32 2147483648, %v4125_v3  ;;  %vm1650_vm12 = vmor %vm1648_vm10, %vm1649_vm8 }
 0x490   :  { %v1671_v34 = vsel %vm1668_vm7, %v1670_v16, %v1666_v7  ;;  %v1723_v38 = vmul.f32 %v1686_v17, %v4059_v30  ;;  %v1647_v46 = vadd.f32 %v4173_v15, %v1646_v33  ;;  %v1714_v56 = vand.u32 2147483648, %v1597_v18 }
 0x491   :  { %v1696_v2 = vsel %vm1695_vm3, %v2916_v5, %v1692_v55  ;;  %v4212_v29 = vadd.f32 %v1724_v0, %v1722_v19  ;;  %vm1708_vm11 = vweird.f32 %v1597_v18  ;;  %v1652_v30 = vand.u32 2147483647, %v4125_v3  ;;  %v1733_v3 = vld [vmem:[#allocation4 + $0xc0] sm:$0xff] }
 0x492   :  { %v1701_v37 = vsel %vm1698_vm4, %v1700_v49, %v1696_v2  ;;  %v1712_v58 = vand.u32 2147483647, %v1597_v18  ;;  %v1651_v62 = vsel %vm1650_vm12, %v4173_v15, %v1647_v46  ;;  %v1655_v9 = vor.u32 1.1754944e-38, %v1654_v50 }
 0x493   :  { %v1719_v12 = vmul.f32 2.0, %v1701_v37  ;;  %v2922_v25 = vpop.eup %2921  ;;  %2923 = vtanh.f32 %v4212_v29  ;;  %v1715_v14 = vor.u32 1.1754944e-38, %v1714_v56  ;;  %vm1653_vm14 = vcmp.eq.f32.partialorder %v1652_v30, 8.507059e+37 }
 0x494   :  { %v1704_v22 = vmul.f32 %v2922_v25, %v1597_v18  ;;  %vm1709_vm9 = vweird.f32 %v2922_v25  ;;  %vm1713_vm15 = vcmp.eq.f32.partialorder %v1712_v58, 8.507059e+37  ;;  %v1656_v24 = vsel %vm1653_vm14, %v1655_v9, %v1651_v62 }
 0x495   :  { %v2569_v21 = vadd.f32 -1.0, %v1719_v12  ;;  %vm1710_vm13 = vmor %vm1708_vm11, %vm1709_vm9  ;;  %v1737_v4 = vunpack.c.l.bf16 %v1733_v3  ;;  %v1738_v35 = vunpack.c.h.bf16 %v1733_v3  ;;  %v1739_v36 = vunpack.c.l.bf16 %v1734_v60 }
 0x496   :  { %v1705_v45 = vsub.f32 1.0, %v1704_v22  ;;  %v1741_v1 = vunpack.c.l.bf16 %v1735_v39  ;;  %v1742_v47 = vunpack.c.h.bf16 %v1735_v39  ;;  %v1740_v27 = vunpack.c.h.bf16 %v1734_v60 }
 0x497   :  { %v1725_v44 = vmul.f32 %v2569_v21, %v1671_v34  ;;  %v1743_v53 = vunpack.c.l.bf16 %v1736_v52 }
 0x498   :  { %v1706_v8 = vmul.f32 %v2922_v25, %v1705_v45 }
 0x499   :  { %v4217_v54 = vadd.f32 %v1725_v44, %v1723_v38  ;;  %v2924_v6 = vpop.eup %2923  ;;  %v1744_v38 = vunpack.c.h.bf16 %v1736_v52 }
 0x49a   :  { %v1707_v57 = vadd.f32 %v2922_v25, %v1706_v8  ;;  %v1730_v31 = vmul.f32 %v2924_v6, %v1656_v24 }
 0x49b   :  { %2925 = vtanh.f32 %v4217_v54 }
 0x49c   :  { %v1711_v5 = vsel %vm1710_vm13, %v2922_v25, %v1707_v57 }
 0x49d   :  { %v1716_v26 = vsel %vm1713_vm15, %v1715_v14, %v1711_v5 }
 0x4a1   :  { %v2926_v23 = vpop.eup %2925 }
 0x4a2   :  { %v1731_v40 = vmul.f32 %v2926_v23, %v1716_v26 }
 0x4a4   :  { %v1745_v13 = vpack.c.bf16 %v1731_v40, %v1730_v31 }
 0x4a6   :  { %1754 = vmatmul.bf16.vlgmr.msra.gmra.mxu0 %v1745_v13  ;;  %1768 = vmatmul.bf16.vlgmr.msra.gmra.mxu1 %v1745_v13 }
 0x4a7   :  { %1782 = vmatmul.bf16.vlgmr.msra.gmra.mxu2 %v1745_v13  ;;  %1796 = vmatmul.bf16.vlgmr.msra.gmra.mxu3 %v1745_v13 }
 0x523   :  { %v1755_v15 = vpop.f32.mrf.mxu0  ;;  %v1769_v51 = vpop.f32.mrf.mxu1 }
 0x524   :  { %v1802_v63 = vadd.f32 %v1755_v15, %v1737_v4  ;;  %v1803_v11 = vadd.f32 %v1769_v51, %v1738_v35 }
 0x526   :  { %v2570_v10 = vmul.f32 -1.442695, %v1802_v63  ;;  %v2571_v41 = vmul.f32 -1.442695, %v1803_v11 }
 0x528   :  { %2927 = vpow2.f32 %v2570_v10 }
 0x529   :  { %2929 = vpow2.f32 %v2571_v41 }
 0x52a   :  { %v1783_v18 = vpop.f32.mrf.mxu2  ;;  %v1797_v59 = vpop.f32.mrf.mxu3 }
 0x52b   :  { %v1804_v43 = vadd.f32 %v1783_v18, %v1739_v36  ;;  %v1757_v32 = vpop.f32.mrf.mxu0  ;;  %v1771_v20 = vpop.f32.mrf.mxu1  ;;  %v1805_v48 = vadd.f32 %v1797_v59, %v1740_v27 }
 0x52c   :  { %v1806_v55 = vadd.f32 %v1757_v32, %v1741_v1  ;;  %v1807_v28 = vadd.f32 %v1771_v20, %v1742_v47 }
 0x52d   :  { %v2572_v61 = vmul.f32 -1.442695, %v1804_v43  ;;  %v2573_v7 = vmul.f32 -1.442695, %v1805_v48 }
 0x52e   :  { %v2928_v49 = vpop.eup %2927  ;;  %v2574_v42 = vmul.f32 -1.442695, %v1806_v55  ;;  %v2575_v19 = vmul.f32 -1.442695, %v1807_v28 }
 0x52f   :  { %v2930_v2 = vpop.eup %2929  ;;  %v4226_v0 = vadd.f32 1.0, %v2928_v49  ;;  %2931 = vpow2.f32 %v2572_v61 }
 0x530   :  { %v4228_v37 = vadd.f32 1.0, %v2930_v2 }
 0x531   :  { %2933 = vrcp.f32 %v4226_v0  ;;  %vm1847_vm0 = vweird.f32 %v4226_v0  ;;  %v1851_v14 = vand.u32 2147483647, %v4226_v0  ;;  %v1853_v24 = vand.u32 2147483648, %v4226_v0 }
 0x532   :  { %2935 = vrcp.f32 %v4228_v37  ;;  %v1785_v12 = vpop.f32.mrf.mxu2  ;;  %v1799_v46 = vpop.f32.mrf.mxu3  ;;  %v1866_v60 = vand.u32 2147483647, %v4228_v37  ;;  %v1868_v39 = vand.u32 2147483648, %v4228_v37  ;;  %vm1862_vm8 = vweird.f32 %v4228_v37 }
 0x533   :  { %2937 = vpow2.f32 %v2574_v42  ;;  %v1808_v16 = vadd.f32 %v1785_v12, %v1743_v53  ;;  %v1809_v58 = vadd.f32 %v1799_v46, %v1744_v38  ;;  %vm4271_vm7 = vcmp.eq.f32.partialorder %v1851_v14, 8.507059e+37 }
 0x534   :  { %2939 = vpow2.f32 %v2575_v19  ;;  %v1854_v20 = vor.u32 1.1754944e-38, %v1853_v24  ;;  %vm4284_vm10 = vcmp.eq.f32.partialorder %v1866_v60, 8.507059e+37 }
 0x535   :  { %v2932_v17 = vpop.eup %2931  ;;  %v2576_v25 = vmul.f32 -1.442695, %v1808_v16  ;;  %2941 = vpow2.f32 %v2573_v7  ;;  %v2577_v40 = vmul.f32 -1.442695, %v1809_v58 }
 0x536   :  { %v1836_v21 = vadd.f32 1.0, %v2932_v17 }
 0x537   :  { %v4232_v33 = vpop.eup %2933  ;;  %2943 = vpow2.f32 %v2576_v25 }
 0x538   :  { %v4234_v34 = vpop.eup %2935  ;;  %2945 = vrcp.f32 %v1836_v21  ;;  %v1843_v45 = vmul.f32 %v4232_v33, %v4226_v0  ;;  %v1881_v4 = vand.u32 2147483647, %v1836_v21  ;;  %v1883_v35 = vand.u32 2147483648, %v1836_v21 }
 0x539   :  { %v2938_v22 = vpop.eup %2937  ;;  %v1858_v50 = vmul.f32 %v4234_v34, %v4228_v37  ;;  %vm1848_vm2 = vweird.f32 %v4232_v33  ;;  %vm1863_vm3 = vweird.f32 %v4234_v34  ;;  %vm1877_vm4 = vweird.f32 %v1836_v21 }
 0x53a   :  { %v2940_v44 = vpop.eup %2939  ;;  %v4238_v8 = vadd.f32 1.0, %v2938_v22  ;;  %v1844_v5 = vsub.f32 1.0, %v1843_v45  ;;  %vm1882_vm6 = vcmp.eq.f32.partialorder %v1881_v4, 8.507059e+37  ;;  %v1884_v36 = vor.u32 1.1754944e-38, %v1883_v35  ;;  %vm4280_vm9 = vmor %vm1847_vm0, %vm1848_vm2 }
 0x53b   :  { %v4242_v56 = vadd.f32 1.0, %v2940_v44  ;;  %v2942_v30 = vpop.eup %2941  ;;  %v1859_v6 = vsub.f32 1.0, %v1858_v50  ;;  %vm4292_vm11 = vmor %vm1862_vm8, %vm1863_vm3  ;;  %v1869_v0 = vor.u32 1.1754944e-38, %v1868_v39 }
 0x53c   :  { %2947 = vrcp.f32 %v4238_v8  ;;  %v4251_v31 = vadd.f32 1.0, %v2942_v30  ;;  %v1845_v3 = vmul.f32 %v4232_v33, %v1844_v5  ;;  %vm1907_vm12 = vweird.f32 %v4238_v8 }
 0x53d   :  { %v2944_v57 = vpop.eup %2943  ;;  %2949 = vrcp.f32 %v4242_v56  ;;  %v1860_v51 = vmul.f32 %v4234_v34, %v1859_v6  ;;  %v1911_v42 = vand.u32 2147483647, %v4238_v8  ;;  %vm1922_vm13 = vweird.f32 %v4242_v56 }
 0x53e   :  { %v2946_v62 = vpop.eup %2945  ;;  %v4248_v23 = vadd.f32 1.0, %v2944_v57  ;;  %v1846_v47 = vadd.f32 %v4232_v33, %v1845_v3  ;;  %v1928_v45 = vand.u32 2147483648, %v4242_v56 }
 0x53f   :  { %v1873_v9 = vmul.f32 %v2946_v62, %v1836_v21  ;;  %vm1878_vm1 = vweird.f32 %v2946_v62  ;;  %v1861_v18 = vadd.f32 %v4234_v34, %v1860_v51 }
 0x540   :  { %2951 = vrcp.f32 %v4248_v23  ;;  %vm1879_vm5 = vmor %vm1877_vm4, %vm1878_vm1  ;;  %v1850_v37 = vsel %vm4280_vm9, %v4232_v33, %v1846_v47  ;;  %v1941_v17 = vand.u32 2147483647, %v4248_v23  ;;  %v1943_v25 = vand.u32 2147483648, %v4248_v23 }
 0x541   :  { %v1874_v26 = vsub.f32 1.0, %v1873_v9  ;;  %2953 = vrcp.f32 %v4251_v31  ;;  %v1865_v19 = vsel %vm4292_vm11, %v4234_v34, %v1861_v18  ;;  %v1926_v34 = vand.u32 2147483647, %v4242_v56 }
 0x542   :  { %v4253_v13 = vpop.eup %2947  ;;  %2955 = vpow2.f32 %v2577_v40  ;;  %vm1937_vm0 = vweird.f32 %v4248_v23  ;;  %v1855_v57 = vsel %vm4271_vm7, %v1854_v20, %v1850_v37  ;;  %v1870_v58 = vsel %vm4284_vm10, %v1869_v0, %v1865_v19 }
 0x543   :  { %v4257_v15 = vpop.eup %2949  ;;  %v1875_v63 = vmul.f32 %v2946_v62, %v1874_v26  ;;  %v1903_v11 = vmul.f32 %v4253_v13, %v4238_v8  ;;  %vm1908_vm1 = vweird.f32 %v4253_v13  ;;  %v1944_v5 = vor.u32 1.1754944e-38, %v1943_v25 }
 0x544   :  { %v1918_v10 = vmul.f32 %v4257_v15, %v4242_v56  ;;  %vm1923_vm14 = vweird.f32 %v4257_v15  ;;  %vm1942_vm4 = vcmp.eq.f32.partialorder %v1941_v17, 8.507059e+37  ;;  %v1966_v26 = vmul.f32 %v1870_v58, %v4212_v29  ;;  %v1980_v58 = vld [vmem:[#allocation4 + $0xf8] sm:$0xff] }
 0x545   :  { %v1876_v41 = vadd.f32 %v2946_v62, %v1875_v63  ;;  %v1904_v59 = vsub.f32 1.0, %v1903_v11  ;;  %vm4321_vm2 = vmor %vm1922_vm13, %vm1923_vm14  ;;  %vm1912_vm7 = vcmp.eq.f32.partialorder %v1911_v42, 8.507059e+37  ;;  %vm1892_vm10 = vweird.f32 %v4251_v31 }
 0x546   :  { %v1919_v1 = vsub.f32 1.0, %v1918_v10  ;;  %v2952_v43 = vpop.eup %2951 }
 0x547   :  { %v1880_v27 = vsel %vm1879_vm5, %v2946_v62, %v1876_v41  ;;  %v1933_v48 = vmul.f32 %v2952_v43, %v4248_v23  ;;  %v4299_v53 = vpop.eup %2953  ;;  %v1905_v7 = vmul.f32 %v4253_v13, %v1904_v59  ;;  %vm1938_vm15 = vweird.f32 %v2952_v43  ;;  %vm1909_vm5 = vmor %vm1907_vm12, %vm1908_vm1 }
 0x548   :  { %v1885_v55 = vsel %vm1882_vm6, %v1884_v36, %v1880_v27  ;;  %v1920_v49 = vmul.f32 %v4257_v15, %v1919_v1  ;;  %v2956_v16 = vpop.eup %2955  ;;  %v1888_v44 = vmul.f32 %v4299_v53, %v4251_v31  ;;  %v1913_v62 = vand.u32 2147483648, %v4238_v8  ;;  %vm1939_vm3 = vmor %vm1937_vm0, %vm1938_vm15 }
 0x549   :  { %v1962_v61 = vmul.f32 2.0, %v1885_v55  ;;  %v1934_v12 = vsub.f32 1.0, %v1933_v48  ;;  %v1841_v33 = vadd.f32 1.0, %v2956_v16  ;;  %v1906_v46 = vadd.f32 %v4253_v13, %v1905_v7  ;;  %v1979_v16 = vld [vmem:[#allocation4 + $0xf0] sm:$0xff] }
 0x54a   :  { %v1921_v22 = vadd.f32 %v4257_v15, %v1920_v49  ;;  %v1889_v14 = vsub.f32 1.0, %v1888_v44  ;;  %v1929_v23 = vor.u32 1.1754944e-38, %v1928_v45  ;;  %vm1927_vm6 = vcmp.eq.f32.partialorder %v1926_v34, 8.507059e+37 }
 0x54b   :  { %v2578_v21 = vadd.f32 -1.0, %v1962_v61  ;;  %v1935_v38 = vmul.f32 %v2952_v43, %v1934_v12  ;;  %2957 = vrcp.f32 %v1841_v33  ;;  %v1910_v40 = vsel %vm1909_vm5, %v4253_v13, %v1906_v46  ;;  %v1978_v12 = vld [vmem:[#allocation4 + $0xe8] sm:$0xff] }
 0x54c   :  { %v1925_v56 = vsel %vm4321_vm2, %v4257_v15, %v1921_v22  ;;  %v1914_v4 = vor.u32 1.1754944e-38, %v1913_v62  ;;  %v1890_v11 = vmul.f32 %v4299_v53, %v1889_v14  ;;  %vm1893_vm8 = vweird.f32 %v4299_v53 }
 0x54d   :  { %v1936_v30 = vadd.f32 %v2952_v43, %v1935_v38  ;;  %v1968_v9 = vmul.f32 %v2578_v21, %v1855_v57  ;;  %v1930_v35 = vsel %vm1927_vm6, %v1929_v23, %v1925_v56  ;;  %v1898_v1 = vand.u32 2147483648, %v4251_v31  ;;  %vm1894_vm12 = vmor %vm1892_vm10, %vm1893_vm8 }
 0x54e   :  { %v1915_v60 = vsel %vm1912_vm7, %v1914_v4, %v1910_v40  ;;  %v1967_v39 = vmul.f32 %v1930_v35, %v4217_v54  ;;  %v1891_v36 = vadd.f32 %v4299_v53, %v1890_v11  ;;  %v1958_v47 = vand.u32 2147483648, %v1841_v33  ;;  %v2701_v35 = vld [vmem:[#allocation9 + $0x74] sm:$0xf0] }
 0x54f   :  { %v1940_v6 = vsel %vm1939_vm3, %v2952_v43, %v1936_v30  ;;  %v4338_v63 = vadd.f32 %v1968_v9, %v1966_v26  ;;  %vm1952_vm11 = vweird.f32 %v1841_v33  ;;  %v1896_v54 = vand.u32 2147483647, %v4251_v31  ;;  %v1977_v31 = vld [vmem:[#allocation4 + $0xe0] sm:$0xff] }
 0x550   :  { %v1945_v24 = vsel %vm1942_vm4, %v1944_v5, %v1940_v6  ;;  %v1956_v27 = vand.u32 2147483647, %v1841_v33  ;;  %v1895_v59 = vsel %vm1894_vm12, %v4299_v53, %v1891_v36  ;;  %v1899_v20 = vor.u32 1.1754944e-38, %v1898_v1  ;;  %v2698_v36 = vld [vmem:[#allocation9 + $0x64] sm:$0xf] }
 0x551   :  { %v1963_v3 = vmul.f32 2.0, %v1945_v24  ;;  %v2958_v51 = vpop.eup %2957  ;;  %2959 = vtanh.f32 %v4338_v63  ;;  %v1959_v55 = vor.u32 1.1754944e-38, %v1958_v47  ;;  %vm1897_vm14 = vcmp.eq.f32.partialorder %v1896_v54, 8.507059e+37  ;;  %v2642_v1 = vld [vmem:[#allocation9 + $0x68] sm:$0xf0] }
 0x552   :  { %v1948_v8 = vmul.f32 %v2958_v51, %v1841_v33  ;;  %vm1953_vm9 = vweird.f32 %v2958_v51  ;;  %vm1957_vm15 = vcmp.eq.f32.partialorder %v1956_v27, 8.507059e+37  ;;  %v1900_v52 = vsel %vm1897_vm14, %v1899_v20, %v1895_v59 }
 0x553   :  { %v2579_v15 = vadd.f32 -1.0, %v1963_v3  ;;  %vm1954_vm13 = vmor %vm1952_vm11, %vm1953_vm9  ;;  %v1981_v0 = vunpack.c.l.bf16 %v1977_v31  ;;  %v1982_v42 = vunpack.c.h.bf16 %v1977_v31  ;;  %v1983_v21 = vunpack.c.l.bf16 %v1978_v12  ;;  %v2648_v3 = vld [vmem:[#allocation9 + $0x70] sm:$0xf] }
 0x554   :  { %v1949_v41 = vsub.f32 1.0, %v1948_v8  ;;  %v1985_v22 = vunpack.c.l.bf16 %v1979_v16  ;;  %v1986_v38 = vunpack.c.h.bf16 %v1979_v16  ;;  %v1984_v33 = vunpack.c.h.bf16 %v1978_v12  ;;  %v2699_v8 = vld [vmem:[#allocation9 + $0x64] sm:$0xf0] }
 0x555   :  { %v1969_v10 = vmul.f32 %v2579_v15, %v1915_v60  ;;  %v1987_v14 = vunpack.c.l.bf16 %v1980_v58  ;;  %v2650_v15 = vld [vmem:[#allocation9 + $0x78] sm:$0xf0]  ;;  %v2640_v60 = vld [vmem:[#allocation9 + $0x60] sm:$0xf] }
 0x556   :  { %v1950_v13 = vmul.f32 %v2958_v51, %v1949_v41  ;;  %v2649_v41 = vor.u32 %v2701_v35, %v2648_v3  ;;  %v2641_v54 = vor.u32 %v2699_v8, %v2640_v60  ;;  %v2626_v35 = vld [vmem:[#allocation9 + $0x48] sm:$0xf0] }
 0x557   :  { %v4343_v29 = vadd.f32 %v1969_v10, %v1967_v39  ;;  %v2960_v32 = vpop.eup %2959 }
 0x558   :  { %v1951_v18 = vadd.f32 %v2958_v51, %v1950_v13  ;;  %v1974_v49 = vmul.f32 %v2960_v32, %v1900_v52  ;;  %2330 = vmatpush.bf16.msra.mxu0 %v2649_v41 }
 0x559   :  { %2961 = vtanh.f32 %v4343_v29 }
 0x55a   :  { %v1955_v43 = vsel %vm1954_vm13, %v2958_v51, %v1951_v18  ;;  %v2700_v51 = vld [vmem:[#allocation9 + $0x74] sm:$0xf]  ;;  %v2645_v18 = vor.u32 %v2698_v36, %v2642_v1 }
 0x55b   :  { %v1960_v61 = vsel %vm1957_vm15, %v1959_v55, %v1955_v43  ;;  %v2653_v13 = vor.u32 %v2700_v51, %v2650_v15  ;;  %v1988_v43 = vunpack.c.h.bf16 %v1980_v58 }
 0x55c   :  { %2331 = vmatpush.bf16.msra.mxu0 %v2641_v54 }
 0x55d   :  { %2344 = vmatpush.bf16.msra.mxu1 %v2653_v13 }
 0x55f   :  { %v2962_v28 = vpop.eup %2961 }
 0x560   :  { %v1975_v48 = vmul.f32 %v2962_v28, %v1960_v61 }
 0x561   :  { %2345 = vmatpush.bf16.msra.mxu1 %v2645_v18 }
 0x562   :  { %v1989_v2 = vpack.c.bf16 %v1975_v48, %v1974_v49 }
 0x564   :  { %1998 = vmatmul.bf16.vlgmr.msrb.gmra.mxu0 %v1989_v2  ;;  %2012 = vmatmul.bf16.vlgmr.msrb.gmra.mxu1 %v1989_v2 }
 0x565   :  { %2026 = vmatmul.bf16.vlgmr.msrb.gmra.mxu2 %v1989_v2  ;;  %2040 = vmatmul.bf16.vlgmr.msrb.gmra.mxu3 %v1989_v2 }
 0x5e1   :  { %v1999_v53 = vpop.f32.mrf.mxu0  ;;  %v2013_v37 = vpop.f32.mrf.mxu1 }
 0x5e2   :  { %v2046_v19 = vadd.f32 %v1999_v53, %v1981_v0  ;;  %v2047_v7 = vadd.f32 %v2013_v37, %v1982_v42 }
 0x5e4   :  { %v2580_v17 = vmul.f32 -1.442695, %v2046_v19  ;;  %v2581_v25 = vmul.f32 -1.442695, %v2047_v7 }
 0x5e6   :  { %2963 = vpow2.f32 %v2580_v17 }
 0x5e7   :  { %2965 = vpow2.f32 %v2581_v25 }
 0x5e8   :  { %v2027_v44 = vpop.f32.mrf.mxu2  ;;  %v2041_v34 = vpop.f32.mrf.mxu3 }
 0x5e9   :  { %v2048_v45 = vadd.f32 %v2027_v44, %v1983_v21  ;;  %v2001_v46 = vpop.f32.mrf.mxu0  ;;  %v2015_v50 = vpop.f32.mrf.mxu1  ;;  %v2049_v5 = vadd.f32 %v2041_v34, %v1984_v33 }
 0x5ea   :  { %v2050_v30 = vadd.f32 %v2001_v46, %v1985_v22  ;;  %v2051_v57 = vadd.f32 %v2015_v50, %v1986_v38  ;;  %v2632_v46 = vld [vmem:[#allocation9 + $0x50] sm:$0xf] }
 0x5eb   :  { %v2582_v62 = vmul.f32 -1.442695, %v2048_v45  ;;  %v2583_v40 = vmul.f32 -1.442695, %v2049_v5  ;;  %v2696_v5 = vld [vmem:[#allocation9 + $0x54] sm:$0xf] }
 0x5ec   :  { %v2964_v56 = vpop.eup %2963  ;;  %v2584_v9 = vmul.f32 -1.442695, %v2050_v30  ;;  %v2585_v24 = vmul.f32 -1.442695, %v2051_v57 }
 0x5ed   :  { %v2966_v6 = vpop.eup %2965  ;;  %2967 = vpow2.f32 %v2582_v62  ;;  %v4354_v26 = vadd.f32 1.0, %v2964_v56  ;;  %v2697_v62 = vld [vmem:[#allocation9 + $0x54] sm:$0xf0]  ;;  %v2634_v56 = vld [vmem:[#allocation9 + $0x58] sm:$0xf0] }
 0x5ee   :  { %v4352_v23 = vadd.f32 1.0, %v2966_v6  ;;  %v2637_v60 = vor.u32 %v2696_v5, %v2634_v56  ;;  %v2610_v5 = vld [vmem:[#allocation9 + $0x28] sm:$0xf0] }
 0x5ef   :  { %v2097_v48 = vand.u32 2147483648, %v4354_v26  ;;  %v2095_v37 = vand.u32 2147483647, %v4354_v26  ;;  %vm2091_vm3 = vweird.f32 %v4354_v26 }
 0x5f0   :  { %2969 = vrcp.f32 %v4352_v23  ;;  %v2029_v4 = vpop.f32.mrf.mxu2  ;;  %v2043_v55 = vpop.f32.mrf.mxu3  ;;  %v2112_v53 = vand.u32 2147483648, %v4352_v23  ;;  %v2110_v16 = vand.u32 2147483647, %v4352_v23  ;;  %vm2106_vm0 = vweird.f32 %v4352_v23  ;;  %2346 = vmatpush.bf16.msra.mxu1 %v2637_v60  ;;  %v2602_v60 = vld [vmem:[#allocation9 + $0x18] sm:$0xf0] }
 0x5f1   :  { %2971 = vpow2.f32 %v2584_v9  ;;  %v2052_v11 = vadd.f32 %v2029_v4, %v1987_v14  ;;  %v2053_v31 = vadd.f32 %v2043_v55, %v1988_v43  ;;  %v4379_v12 = vor.u32 1.1754944e-38, %v2097_v48  ;;  %v2624_v9 = vld [vmem:[#allocation9 + $0x40] sm:$0xf]  ;;  %v2695_v14 = vld [vmem:[#allocation9 + $0x44] sm:$0xf0] }
 0x5f2   :  { %2973 = vpow2.f32 %v2585_v24  ;;  %v4392_v45 = vor.u32 1.1754944e-38, %v2112_v53  ;;  %v2694_v4 = vld [vmem:[#allocation9 + $0x44] sm:$0xf]  ;;  %vm4413_vm8 = vcmp.eq.f32.partialorder %v2110_v16, 8.507059e+37  ;;  %vm4420_vm9 = vcmp.eq.f32.partialorder %v2095_v37, 8.507059e+37 }
 0x5f3   :  { %v2968_v39 = vpop.eup %2967  ;;  %2975 = vrcp.f32 %v4354_v26  ;;  %v2586_v10 = vmul.f32 -1.442695, %v2052_v11  ;;  %v2587_v33 = vmul.f32 -1.442695, %v2053_v31  ;;  %v2633_v11 = vor.u32 %v2697_v62, %v2632_v46  ;;  %v2616_v43 = vld [vmem:[#allocation9 + $0x30] sm:$0xf] }
 0x5f4   :  { %v4358_v47 = vadd.f32 1.0, %v2968_v39  ;;  %2977 = vpow2.f32 %v2583_v40  ;;  %v2625_v18 = vor.u32 %v2695_v14, %v2624_v9  ;;  %v2618_v48 = vld [vmem:[#allocation9 + $0x38] sm:$0xf0]  ;;  %v2691_v46 = vld [vmem:[#allocation9 + $0x24] sm:$0xf0] }
 0x5f5   :  { %2979 = vpow2.f32 %v2586_v10  ;;  %2332 = vmatpush.bf16.msra.mxu0 %v2633_v11  ;;  %v2690_v62 = vld [vmem:[#allocation9 + $0x24] sm:$0xf]  ;;  %v2688_v11 = vld [vmem:[#allocation9 + $0x14] sm:$0xf] }
 0x5f6   :  { %v4360_v27 = vpop.eup %2969  ;;  %2981 = vrcp.f32 %v4358_v47  ;;  %v2125_v22 = vand.u32 2147483647, %v4358_v47  ;;  %v2127_v38 = vand.u32 2147483648, %v4358_v47  ;;  %vm2121_vm5 = vweird.f32 %v4358_v47 }
 0x5f7   :  { %v2972_v59 = vpop.eup %2971  ;;  %v2102_v52 = vmul.f32 %v4360_v27, %v4352_v23  ;;  %vm2107_vm4 = vweird.f32 %v4360_v27 }
 0x5f8   :  { %v2974_v32 = vpop.eup %2973  ;;  %v4363_v20 = vadd.f32 1.0, %v2972_v59  ;;  %vm4406_vm6 = vcmp.eq.f32.partialorder %v2125_v22, 8.507059e+37  ;;  %v2128_v3 = vor.u32 1.1754944e-38, %v2127_v38  ;;  %v2629_v59 = vor.u32 %v2694_v4, %v2626_v35  ;;  %vm4439_vm12 = vmor %vm2106_vm0, %vm2107_vm4  ;;  %v2600_v35 = vld [vmem:[#allocation9 + $0x10] sm:$0xf] }
 0x5f9   :  { %v4365_v28 = vpop.eup %2975  ;;  %v4369_v61 = vadd.f32 1.0, %v2974_v32  ;;  %v2103_v19 = vsub.f32 1.0, %v2102_v52  ;;  %v2693_v52 = vld [vmem:[#allocation9 + $0x34] sm:$0xf0]  ;;  %2333 = vmatpush.bf16.msra.mxu0 %v2625_v18  ;;  %v2613_v4 = vor.u32 %v2690_v62, %v2610_v5 }
 0x5fa   :  { %v2978_v49 = vpop.eup %2977  ;;  %2983 = vrcp.f32 %v4363_v20  ;;  %v2087_v42 = vmul.f32 %v4365_v28, %v4354_v26  ;;  %vm2092_vm1 = vweird.f32 %v4365_v28  ;;  %v2155_v13 = vand.u32 2147483647, %v4363_v20  ;;  %2347 = vmatpush.bf16.msra.mxu1 %v2629_v59 }
 0x5fb   :  { %v2980_v2 = vpop.eup %2979  ;;  %2985 = vrcp.f32 %v4369_v61  ;;  %v4382_v17 = vadd.f32 1.0, %v2978_v49  ;;  %v2104_v30 = vmul.f32 %v4360_v27, %v2103_v19  ;;  %v2157_v54 = vand.u32 2147483648, %v4363_v20  ;;  %v2692_v49 = vld [vmem:[#allocation9 + $0x34] sm:$0xf]  ;;  %vm4457_vm14 = vmor %vm2091_vm3, %vm2092_vm1 }
 0x5fc   :  { %v2982_v0 = vpop.eup %2981  ;;  %v4384_v25 = vadd.f32 1.0, %v2980_v2  ;;  %v2088_v34 = vsub.f32 1.0, %v2087_v42  ;;  %vm2151_vm10 = vweird.f32 %v4363_v20  ;;  %vm2166_vm11 = vweird.f32 %v4369_v61 }
 0x5fd   :  { %v2117_v7 = vmul.f32 %v2982_v0, %v4358_v47  ;;  %vm2122_vm2 = vweird.f32 %v2982_v0  ;;  %v2105_v8 = vadd.f32 %v4360_v27, %v2104_v30  ;;  %v2170_v53 = vand.u32 2147483647, %v4369_v61 }
 0x5fe   :  { %2987 = vrcp.f32 %v4384_v25  ;;  %v2089_v51 = vmul.f32 %v4365_v28, %v2088_v34  ;;  %vm2123_vm7 = vmor %vm2121_vm5, %vm2122_vm2  ;;  %v2172_v37 = vand.u32 2147483648, %v4369_v61  ;;  %v2187_v23 = vand.u32 2147483648, %v4384_v25  ;;  %v2608_v34 = vld [vmem:[#allocation9 + $0x20] sm:$0xf] }
 0x5ff   :  { %v2118_v21 = vsub.f32 1.0, %v2117_v7  ;;  %2989 = vrcp.f32 %v4382_v17  ;;  %v2109_v7 = vsel %vm4439_vm12, %v4360_v27, %v2105_v8  ;;  %v2617_v38 = vor.u32 %v2693_v52, %v2616_v43  ;;  %v2687_v52 = vld [vmem:[#allocation9 + $0x4] sm:$0xf0] }
 0x600   :  { %v4389_v44 = vpop.eup %2983  ;;  %2991 = vpow2.f32 %v2587_v33  ;;  %v2090_v31 = vadd.f32 %v4365_v28, %v2089_v51  ;;  %v2621_v33 = vor.u32 %v2692_v49, %v2618_v48  ;;  %vm2181_vm2 = vweird.f32 %v4384_v25  ;;  %v2689_v51 = vld [vmem:[#allocation9 + $0x14] sm:$0xf0]  ;;  %v2686_v48 = vld [vmem:[#allocation9 + $0x4] sm:$0xf] }
 0x601   :  { %v4395_v50 = vpop.eup %2985  ;;  %v2119_v57 = vmul.f32 %v2982_v0, %v2118_v21  ;;  %v2147_v58 = vmul.f32 %v4389_v44, %v4363_v20  ;;  %vm2152_vm0 = vweird.f32 %v4389_v44  ;;  %2334 = vmatpush.bf16.msra.mxu0 %v2617_v38  ;;  %v2158_v18 = vor.u32 1.1754944e-38, %v2157_v54 }
 0x602   :  { %v2162_v6 = vmul.f32 %v4395_v50, %v4369_v61  ;;  %vm2167_vm13 = vweird.f32 %v4395_v50  ;;  %v2094_v56 = vsel %vm4457_vm14, %v4365_v28, %v2090_v31  ;;  %2348 = vmatpush.bf16.msra.mxu1 %v2621_v33  ;;  %v2609_v61 = vor.u32 %v2691_v46, %v2608_v34  ;;  %vm4503_vm5 = vmor %vm2151_vm10, %vm2152_vm0  ;;  %v2594_v31 = vld [vmem:[#allocation9 + $0x8] sm:$0xf0] }
 0x603   :  { %v2120_v24 = vadd.f32 %v2982_v0, %v2119_v57  ;;  %v2148_v41 = vsub.f32 1.0, %v2147_v58  ;;  %v2185_v58 = vand.u32 2147483647, %v4384_v25  ;;  %vm4477_vm1 = vmor %vm2166_vm11, %vm2167_vm13  ;;  %v2601_v43 = vor.u32 %v2689_v51, %v2600_v35 }
 0x604   :  { %v2163_v15 = vsub.f32 1.0, %v2162_v6  ;;  %v4418_v36 = vpop.eup %2987  ;;  %v2140_v38 = vand.u32 2147483647, %v4382_v17 }
 0x605   :  { %v2124_v10 = vsel %vm2123_vm7, %v2982_v0, %v2120_v24  ;;  %v2177_v55 = vmul.f32 %v4418_v36, %v4384_v25  ;;  %v4432_v2 = vpop.eup %2989  ;;  %v2149_v16 = vmul.f32 %v4389_v44, %v2148_v41  ;;  %vm2182_vm15 = vweird.f32 %v4418_v36  ;;  %2335 = vmatpush.bf16.msra.mxu0 %v2609_v61 }
 0x606   :  { %v2129_v47 = vsel %vm4406_vm6, %v2128_v3, %v2124_v10  ;;  %v2164_v32 = vmul.f32 %v4395_v50, %v2163_v15  ;;  %v2992_v19 = vpop.eup %2991  ;;  %v2132_v26 = vmul.f32 %v4432_v2, %v4382_v17  ;;  %v2114_v24 = vsel %vm4413_vm8, %v4392_v45, %v2109_v7  ;;  %vm4486_vm3 = vmor %vm2181_vm2, %vm2182_vm15  ;;  %2349 = vmatpush.bf16.msra.mxu1 %v2613_v4 }
 0x607   :  { %v2206_v42 = vmul.f32 2.0, %v2129_v47  ;;  %v2178_v21 = vsub.f32 1.0, %v2177_v55  ;;  %v4451_v22 = vadd.f32 1.0, %v2992_v19  ;;  %v2150_v9 = vadd.f32 %v4389_v44, %v2149_v16  ;;  %v2592_v55 = vld [vmem:[#allocation9] sm:$0xf] }
 0x608   :  { %v2165_v30 = vadd.f32 %v4395_v50, %v2164_v32  ;;  %v2188_v3 = vor.u32 1.1754944e-38, %v2187_v23  ;;  %v2099_v15 = vsel %vm4420_vm9, %v4379_v12, %v2094_v56  ;;  %vm2186_vm4 = vcmp.eq.f32.partialorder %v2185_v58, 8.507059e+37 }
 0x609   :  { %v2179_v57 = vmul.f32 %v4418_v36, %v2178_v21  ;;  %v2588_v6 = vadd.f32 -1.0, %v2206_v42  ;;  %2993 = vrcp.f32 %v4451_v22  ;;  %v2133_v8 = vsub.f32 1.0, %v2132_v26  ;;  %2336 = vmatpush.bf16.msra.mxu0 %v2601_v43 }
 0x60a   :  { %v2169_v25 = vsel %vm4477_vm1, %v4395_v50, %v2165_v30  ;;  %v2173_v12 = vor.u32 1.1754944e-38, %v2172_v37  ;;  %v2154_v50 = vsel %vm4503_vm5, %v4389_v44, %v2150_v9  ;;  %vm2171_vm6 = vcmp.eq.f32.partialorder %v2170_v53, 8.507059e+37 }
 0x60b   :  { %v2180_v28 = vadd.f32 %v4418_v36, %v2179_v57  ;;  %v2212_v41 = vmul.f32 %v2588_v6, %v2099_v15  ;;  %v2210_v1 = vmul.f32 %v2114_v24, %v4338_v63  ;;  %v2605_v32 = vor.u32 %v2688_v11, %v2602_v60 }
 0x60c   :  { %v2174_v59 = vsel %vm2171_vm6, %v2173_v12, %v2169_v25  ;;  %vm2156_vm7 = vcmp.eq.f32.partialorder %v2155_v13, 8.507059e+37  ;;  %v2134_v0 = vmul.f32 %v4432_v2, %v2133_v8  ;;  %v2593_v19 = vor.u32 %v2687_v52, %v2592_v55 }
 0x60d   :  { %v2184_v45 = vsel %vm4486_vm3, %v4418_v36, %v2180_v28  ;;  %v2214_v63 = vadd.f32 %v2212_v41, %v2210_v1  ;;  %v2159_v42 = vsel %vm2156_vm7, %v2158_v18, %v2154_v50  ;;  %v2211_v53 = vmul.f32 %v2174_v59, %v4343_v29  ;;  %2350 = vmatpush.bf16.msra.mxu1 %v2605_v32 }
 0x60e   :  { %v2189_v10 = vsel %vm2186_vm4, %v2188_v3, %v2184_v45  ;;  %v2597_v7 = vor.u32 %v2686_v48, %v2594_v31  ;;  %vm2137_vm8 = vweird.f32 %v4432_v2  ;;  %vm2136_vm9 = vweird.f32 %v4382_v17  ;;  %2337 = vmatpush.bf16.msra.mxu0 %v2593_v19 }
 0x60f   :  { %v2207_v36 = vmul.f32 2.0, %v2189_v10  ;;  %v2994_v47 = vpop.eup %2993  ;;  %2995 = vtanh.f32 %v2214_v63  ;;  %v2135_v13 = vadd.f32 %v4432_v2, %v2134_v0  ;;  %v2142_v21 = vand.u32 2147483648, %v4382_v17  ;;  %vm2138_vm12 = vmor %vm2136_vm9, %vm2137_vm8  ;;  %v2244_v17 = vld [vmem:[%s4539_s3] sm:$0x3] }
 0x610   :  { %v2192_v44 = vmul.f32 %v2994_v47, %v4451_v22  ;;  %vm2197_vm10 = vweird.f32 %v2994_v47  ;;  %v2202_v29 = vand.u32 2147483648, %v4451_v22  ;;  %vm2196_vm11 = vweird.f32 %v4451_v22 }
 0x611   :  { %v2589_v49 = vadd.f32 -1.0, %v2207_v36  ;;  %2351 = vmatpush.bf16.msra.mxu1 %v2597_v7  ;;  %v2200_v33 = vand.u32 2147483647, %v4451_v22  ;;  %vm2198_vm13 = vmor %vm2196_vm11, %vm2197_vm10  ;;  %v2139_v34 = vsel %vm2138_vm12, %v4432_v2, %v2135_v13  ;;  %v2143_v30 = vor.u32 1.1754944e-38, %v2142_v21 }
 0x612   :  { %v2193_v54 = vsub.f32 1.0, %v2192_v44  ;;  %v2203_v57 = vor.u32 1.1754944e-38, %v2202_v29  ;;  %vm2141_vm14 = vcmp.eq.f32.partialorder %v2140_v38, 8.507059e+37  ;;  %v2246_v22 = vperm.slane %v2244_v17, 0 }
 0x613   :  { %v2213_v37 = vmul.f32 %v2589_v49, %v2159_v42  ;;  %vm2201_vm15 = vcmp.eq.f32.partialorder %v2200_v33, 8.507059e+37  ;;  %v2144_v62 = vsel %vm2141_vm14, %v2143_v30, %v2139_v34  ;;  %v2247_v2 = vperm.slane %v2244_v17, 1 }
 0x614   :  { %v2194_v16 = vmul.f32 %v2994_v47, %v2193_v54 }
 0x615   :  { %v2215_v20 = vadd.f32 %v2213_v37, %v2211_v53  ;;  %v2996_v27 = vpop.eup %2995 }
 0x616   :  { %v2195_v23 = vadd.f32 %v2994_v47, %v2194_v16  ;;  %v2218_v56 = vmul.f32 %v2996_v27, %v2144_v62 }
 0x617   :  { %2997 = vtanh.f32 %v2215_v20 }
 0x618   :  { %v2199_v46 = vsel %vm2198_vm13, %v2994_v47, %v2195_v23 }
 0x619   :  { %v2204_v5 = vsel %vm2201_vm15, %v2203_v57, %v2199_v46 }
 0x61d   :  { %v2998_v58 = vpop.eup %2997 }
 0x61e   :  { %v2219_v6 = vmul.f32 %v2998_v58, %v2204_v5 }
 0x620   :  { %v2227_v26 = vpack.c.bf16 %v2219_v6, %v2218_v56 }
 0x622   :  { %2338 = vmatmul.bf16.vlgmr.msra.gmra.mxu0 %v2227_v26  ;;  %2352 = vmatmul.bf16.vlgmr.msra.gmra.mxu1 %v2227_v26 }
 0x69f   :  { %v2339_v9 = vpop.f32.mrf.mxu0  ;;  %v2353_v14 = vpop.f32.mrf.mxu1 }
 0x6a0   :  { %v2340_v28 = vadd.f32 %v2339_v9, %v2246_v22  ;;  %v2354_v24 = vadd.f32 %v2353_v14, %v2247_v2 }
 0x6a2   :  { %2358 = vst [vmem:[#allocation10] sm:$0xff] %v2340_v28 }
 0x6a3   :  { %2359 = vst [vmem:[#allocation10 + $0x8] sm:$0xff] %v2354_v24 }
 0x6a7   :  { %v2341_v40 = vpop.f32.mrf.mxu0  ;;  %v2355_v3 = vpop.f32.mrf.mxu1 }
 0x6a8   :  { %v2342_v61 = vadd.f32 %v2341_v40, %v2246_v22  ;;  %v2356_v4 = vadd.f32 %v2355_v3, %v2247_v2 }
 0x6aa   :  { %2360 = vst [vmem:[#allocation10 + $0x10] sm:$0xff] %v2342_v61 }
 0x6ab   :  { %2361 = vst [vmem:[#allocation10 + $0x18] sm:$0xff] %v2356_v4 }
 0x6ac   :  { %2374 = dma.vmem_to_hbm [thread:$0]  %s2367_s8, 512, %s2369_s11, [#allocation6], %s3102_s23, %s3102_s23, %s3103_s24  }
 0x6ad   :  { %3099 = dma.done.wait [#allocation6], 512  }
 0x6ae   :  { %3100 = vsyncadd [#allocation6], 4294966784 }
 0x6af   :  { %2379 = vsyncpa [#allocation5], 1 }
 0x6b0   :  { %2380 = vsyncpa [#allocation8], 1 }
 0x6b1   :  { %2381 = vsyncpa [#allocation6], 1 }

</bundles_post_ra>
